<compile_context>
chip_gen: v6e
topology: v6e:2x2x1
jax: 0.10.0
libtpu: 0.0.40
codegen_flags: <defaults>
</compile_context>

<pallas_src>
import numpy as np
import jax
import jax.numpy as jnp
from jax import lax
from jax.experimental import pallas as pl
from jax.experimental.pallas import tpu as pltpu


# ----------------------------------------------------------------------------
# Fused kernel: 3-NN interpolate + (concat) + shared MLP (conv1x1/BN/ReLU)*
# ----------------------------------------------------------------------------
def _make_fused_fp_kernel(num_layers, has_known, has_skip):
    """Ref order (inputs, then output):
      if has_known : un_t (1,8,TN) f32, known (1,m,8) f32, known_feats (1,C2p,m) bf16
      else         : known_feats (1,C2p,1) bf16
      if has_skip  : skip (1,C1p,TN) f32
      layer 0      : (w0a, w0b, b0) if has_skip else (w0, b0)   [w* bf16, b f32]
      layers 1..   : (w_i, b_i)
      out          : (1, C_last_p, TN)
    """

    def kernel(*refs):
        idx = 0
        if has_known:
            un_ref, kn_ref, kf_ref = refs[0], refs[1], refs[2]
            idx = 3
        else:
            kf_ref = refs[0]
            idx = 1
        if has_skip:
            skip_ref = refs[idx]
            idx += 1
        param_refs = refs[idx:-1]
        out_ref = refs[-1]
        tn = out_ref.shape[2]

        # ---- three_nn + three_interpolate ----------------------------------
        if has_known:
            un = un_ref[0].astype(jnp.float32)        # (8, TN) lane-dense
            kn = kn_ref[0].astype(jnp.float32)        # (m, 8)
            kf = kf_ref[0]                            # (C2p, m) bf16
            m = kn.shape[0]

            # Expanded squared distances; cross term on the MXU (f32 acc).
            kn_sq = jnp.sum(kn * kn, axis=1, keepdims=True)            # (m, 1)
            un_sq = jnp.sum(un * un, axis=0, keepdims=True)            # (1, TN)
            cross = jnp.dot(kn, un, preferred_element_type=jnp.float32)
            d2 = jnp.maximum(kn_sq - 2.0 * cross + un_sq, 0.0)         # (m, TN)

            row = lax.broadcasted_iota(jnp.int32, (m, tn), 0)
            wmat = jnp.zeros((m, tn), jnp.float32)    # sparse interp weights
            norm = jnp.zeros((1, tn), jnp.float32)
            # 3 nearest neighbours: argmin / mask / exclude (ties -> lowest
            # index, matching the CUDA three_nn tie-breaking).
            for _ in range(3):
                dmin = jnp.min(d2, axis=0, keepdims=True)              # (1, TN)
                idx_min = jnp.min(jnp.where(d2 == dmin, row, m),
                                  axis=0, keepdims=True)               # (1, TN)
                mask = row == idx_min                                  # (m, TN)
                recip = 1.0 / (jnp.sqrt(dmin) + 1e-8)
                wmat = wmat + jnp.where(mask, recip, 0.0)
                norm = norm + recip
                d2 = jnp.where(mask, jnp.inf, d2)     # reuse mask, in place

            # interpolated (C2p, TN) = kf (C2p, m) @ weights (m, TN), bf16 MXU
            interp = jnp.dot(kf, wmat.astype(jnp.bfloat16),
                             preferred_element_type=jnp.float32)
            interp = interp * pl.reciprocal(norm, approx=True)
            interp = interp.astype(jnp.bfloat16)
        else:
            # PyTorch .expand() path: known_feats has a single point.
            kf = kf_ref[0]                            # (C2p, 1) bf16
            interp = jnp.broadcast_to(kf, (kf.shape[0], tn)).astype(jnp.bfloat16)

        # ---- shared MLP: conv1x1 (bf16 MXU) + folded-BN bias + ReLU ---------
        pi = 0
        if has_skip:
            skip = skip_ref[0].astype(jnp.bfloat16)
            w0a, w0b, b0 = param_refs[0], param_refs[1], param_refs[2]
            pi = 3
            h = (jnp.dot(w0a[...], interp, preferred_element_type=jnp.float32)
                 + jnp.dot(w0b[...], skip, preferred_element_type=jnp.float32)
                 + b0[...])
        else:
            w0, b0 = param_refs[0], param_refs[1]
            pi = 2
            h = jnp.dot(w0[...], interp,
                        preferred_element_type=jnp.float32) + b0[...]
        h = jnp.maximum(h, 0.0)

        for _ in range(1, num_layers):
            w, b = param_refs[pi], param_refs[pi + 1]
            pi += 2
            h = jnp.dot(w[...], h.astype(jnp.bfloat16),
                        preferred_element_type=jnp.float32) + b[...]
            h = jnp.maximum(h, 0.0)

        out_ref[0] = h.astype(out_ref.dtype)

    return kernel


# ----------------------------------------------------------------------------
# VMEM sizing helpers (generation-aware tiling)
# ----------------------------------------------------------------------------
def _vmem_capacity_bytes():
    try:
        info = pltpu.get_tpu_info()
        cap = getattr(info, "vmem_capacity_bytes", None)
        if cap:
            return int(cap)
    except Exception:
        pass
    return 64 * 1024 * 1024        # conservative: v7x per-core VMEM


def _estimate_vmem_bytes(tn, m, c2p, c1p, coutp, cmaxp, weight_bytes,
                         has_known, has_skip):
    inv = weight_bytes                              # grid-invariant params
    per = 2 * coutp * tn * 4                        # output tile (dbl-buffered)
    per += 3 * cmaxp * tn * 4                       # live MLP activations
    if has_known:
        inv += c2p * m * 2 + m * 8 * 4              # known_feats bf16 + coords
        per += 2 * 8 * tn * 4                       # unknown-coords tile
        per += 5 * m * tn * 4                       # d2/iota/wmat/mask/cross
    else:
        inv += c2p * 2
    if has_skip:
        per += 2 * c1p * tn * 4
    return int(1.5 * inv) + per


def _pick_tile_n(n_pad, m, c2p, c1p, coutp, cmaxp, weight_bytes,
                 has_known, has_skip, vmem_cap, batch, requested):
    budget = int(0.45 * vmem_cap)
    cands = [t for t in (1024, 512, 256, 128)
             if t <= n_pad and n_pad % t == 0
             and (requested is None or t <= requested)]
    if not cands:
        cands = [128]

    def est(t):
        return _estimate_vmem_bytes(t, m, c2p, c1p, coutp, cmaxp, weight_bytes,
                                    has_known, has_skip)

    tn = cands[-1]
    for t in cands:                                 # largest tile that fits
        if est(t) <= budget:
            tn = t
            break
    # Megacore / v7x: keep >= 2 independent grid steps when B == 1.
    if batch == 1 and n_pad // tn < 2:
        for t in cands:
            if t < tn and n_pad // t >= 2 and est(t) <= budget:
                tn = t
                break
    return tn, est(tn)


# ----------------------------------------------------------------------------
# Module-level forward
# ----------------------------------------------------------------------------
def pointnet_fp_forward(unknown, known, unknow_feats, known_feats, layer_params,
                        tile_n=None, channel_align=128, lane_align=128):
    """PointnetFPModule.forward.

    unknown      : (B, n, 3)        known       : (B, m, 3) or None
    unknow_feats : (B, C1, n)/None  known_feats : (B, C2, m)
    layer_params : list of (W (Cout,Cin), bn_scale (Cout,1), bn_bias (Cout,1))
                   with BN folded in inference mode.
    Returns (B, mlp[-1], n).
    """
    B, n, _ = unknown.shape
    has_known = known is not None
    has_skip = unknow_feats is not None
    out_dtype = known_feats.dtype
    C2 = known_feats.shape[1]
    num_layers = len(layer_params)
    assert num_layers >= 1

    if not has_known:
        # PyTorch .expand(): only valid when the known point dim is 1.
        assert known_feats.shape[2] == 1, (
            "known=None requires known_feats with a single point")

    def _calign(c):
        a = max(int(channel_align), 8)
        return -(-int(c) // a) * a

    # ---- fold BN scale into conv weight; pad channels; cast weights bf16 ---
    folded = [(s * w, b) for (w, s, b) in layer_params]
    c_outs = [w.shape[0] for (w, _) in folded]
    c_out = c_outs[-1]
    couts_p = [_calign(c) for c in c_outs]

    C2p = _calign(C2)
    C1 = unknow_feats.shape[1] if has_skip else 0
    C1p = _calign(C1) if has_skip else 0

    if has_skip:
        assert folded[0][0].shape[1] == C2 + C1
    else:
        assert folded[0][0].shape[1] == C2

    def _pad_w(w, rp, cp):
        return jnp.pad(w, ((0, rp - w.shape[0]), (0, cp - w.shape[1])))

    def _pad_b(b, rp):
        return jnp.pad(b, ((0, rp - b.shape[0]), (0, 0)))

    params = []
    w0, b0 = folded[0]
    if has_skip:
        # Fuse the channel concat into layer 0 by splitting its weight.
        params += [_pad_w(w0[:, :C2], couts_p[0], C2p).astype(jnp.bfloat16),
                   _pad_w(w0[:, C2:], couts_p[0], C1p).astype(jnp.bfloat16),
                   _pad_b(b0, couts_p[0]).astype(jnp.float32)]
    else:
        params += [_pad_w(w0, couts_p[0], C2p).astype(jnp.bfloat16),
                   _pad_b(b0, couts_p[0]).astype(jnp.float32)]
    for li in range(1, num_layers):
        w, b = folded[li]
        params += [_pad_w(w, couts_p[li], couts_p[li - 1]).astype(jnp.bfloat16),
                   _pad_b(b, couts_p[li]).astype(jnp.float32)]

    # ---- pad the point axis to a lane multiple, coords to 8 sublanes -------
    n_pad = -(-n // max(int(lane_align), 128)) * max(int(lane_align), 128)

    inputs = []
    if has_known:
        m = known.shape[1]
        un_t = jnp.transpose(unknown.astype(jnp.float32), (0, 2, 1))  # (B,3,n)
        un_t = jnp.pad(un_t, ((0, 0), (0, 8 - 3), (0, n_pad - n)))    # (B,8,n_pad)
        kn_p = jnp.pad(known.astype(jnp.float32),
                       ((0, 0), (0, 0), (0, 8 - 3)))                  # (B,m,8)
        kf_p = jnp.pad(known_feats,
                       ((0, 0), (0, C2p - C2), (0, 0))).astype(jnp.bfloat16)
        inputs += [un_t, kn_p, kf_p]
    else:
        m = 1
        kf_p = jnp.pad(known_feats,
                       ((0, 0), (0, C2p - C2), (0, 0))).astype(jnp.bfloat16)
        inputs += [kf_p]
    if has_skip:
        skip_p = jnp.pad(unknow_feats.astype(jnp.float32),
                         ((0, 0), (0, C1p - C1), (0, n_pad - n)))
        inputs += [skip_p]
    inputs += params

    # ---- tile selection + VMEM limit ----------------------------------------
    weight_bytes = sum(int(np.prod(p.shape)) * p.dtype.itemsize for p in params)
    cmaxp = max([C2p] + ([C1p] if has_skip else []) + couts_p)
    vmem_cap = _vmem_capacity_bytes()
    tn, est = _pick_tile_n(n_pad, m, C2p, C1p, couts_p[-1], cmaxp, weight_bytes,
                           has_known, has_skip, vmem_cap, B, tile_n)
    n_tiles = n_pad // tn
    vmem_limit = int(min(vmem_cap, max(32 * 1024 * 1024, 2 * est)))

    # ---- BlockSpecs (grid-invariant inputs single-buffered when supported) --
    def _make_in_specs(single_buffer):
        def inv_spec(shape, imap):
            if single_buffer and hasattr(pl, "Buffered"):
                try:
                    return pl.BlockSpec(shape, imap,
                                        pipeline_mode=pl.Buffered(1))
                except TypeError:
                    pass
            return pl.BlockSpec(shape, imap)

        specs = []
        if has_known:
            specs += [
                pl.BlockSpec((1, 8, tn), lambda b, t: (b, 0, t)),
                inv_spec((1, m, 8), lambda b, t: (b, 0, 0)),
                inv_spec((1, C2p, m), lambda b, t: (b, 0, 0)),
            ]
        else:
            specs += [inv_spec((1, C2p, 1), lambda b, t: (b, 0, 0))]
        if has_skip:
            specs += [pl.BlockSpec((1, C1p, tn), lambda b, t: (b, 0, t))]
        for p in params:
            specs += [inv_spec(p.shape, lambda b, t: (0, 0))]
        return specs

    kernel = _make_fused_fp_kernel(num_layers, has_known, has_skip)
    c_out_p = couts_p[-1]

    def _run(single_buffer):
        return pl.pallas_call(
            kernel,
            out_shape=jax.ShapeDtypeStruct((B, c_out_p, n_pad), out_dtype),
            grid=(B, n_tiles),
            in_specs=_make_in_specs(single_buffer),
            out_specs=pl.BlockSpec((1, c_out_p, tn), lambda b, t: (b, 0, t)),
            compiler_params=pltpu.CompilerParams(
                dimension_semantics=("parallel", "parallel"),
                vmem_limit_bytes=vmem_limit),
        )(*inputs)

    try:
        out = _run(True)
    except Exception:
        # pipeline_mode=pl.Buffered(1) not supported by this JAX build:
        # fall back to default (double-buffered) specs. Genuine kernel bugs
        # re-raise from the plain path below.
        out = _run(False)

    return out[:, :c_out, :n]


# ----------------------------------------------------------------------------
# Pure-JAX f32 reference (PyTorch semantics) for verification
# ----------------------------------------------------------------------------
def _reference(unknown, known, unknow_feats, known_feats, layer_params):
    B, n, _ = unknown.shape
    _, C2, m = known_feats.shape
    d2 = jnp.sum((unknown[:, :, None, :] - known[:, None, :, :]) ** 2, axis=-1)
    neg_top, idx = lax.top_k(-d2, 3)                        # (B, n, 3)
    dist = jnp.sqrt(jnp.maximum(-neg_top, 0.0))
    recip = 1.0 / (dist + 1e-8)
    weight = recip / jnp.sum(recip, axis=2, keepdims=True)  # (B, n, 3)
    gathered = jnp.take_along_axis(
        jnp.broadcast_to(known_feats[:, :, None, :], (B, C2, n, m)),
        jnp.broadcast_to(idx[:, None, :, :], (B, C2, n, 3)), axis=3)
    interp = jnp.sum(gathered * weight[:, None, :, :], axis=3)   # (B, C2, n)
    feats = (jnp.concatenate([interp, unknow_feats], axis=1)
             if unknow_feats is not None else interp)
    for (w, s, b) in layer_params:
        y = jnp.einsum('oc,bcn->bon', w, feats)
        y = y * s[None, :, :] + b[None, :, :]
        feats = jnp.maximum(y, 0.0)
    return feats


# ----------------------------------------------------------------------------
if __name__ == "__main__":
    key = jax.random.PRNGKey(0)
    B, n, m = 2, 16, 8
    C1, C2 = 4, 6
    mlp_spec = [C1 + C2, 32, 16]          # PointnetFPModule(mlp=[10, 32, 16])

    k = jax.random.split(key, 8)
    unknown = jax.random.normal(k[0], (B, n, 3), jnp.float32)
    known = jax.random.normal(k[1], (B, m, 3), jnp.float32)
    unknow_feats = jax.random.normal(k[2], (B, C1, n), jnp.float32)
    known_feats = jax.random.normal(k[3], (B, C2, m), jnp.float32)

    # Deterministic parameters: Conv2d 1x1 weights (no bias, bn=True) and
    # folded inference-mode BatchNorm per-channel scale/bias.
    layer_params = []
    wkeys = jax.random.split(k[4], len(mlp_spec) - 1)
    for li in range(1, len(mlp_spec)):
        cin, cout = mlp_spec[li - 1], mlp_spec[li]
        W = 0.1 * jax.random.normal(wkeys[li - 1], (cout, cin), jnp.float32)
        gamma = 1.0 + 0.05 * jnp.arange(cout, dtype=jnp.float32)
        beta = 0.01 * jnp.arange(cout, dtype=jnp.float32)
        rmean = 0.02 * jnp.arange(cout, dtype=jnp.float32)
        rvar = 1.0 + 0.03 * jnp.arange(cout, dtype=jnp.float32)
        eps = 1e-5
        scale = (gamma / jnp.sqrt(rvar + eps)).reshape(cout, 1)
        bias = (beta - rmean * gamma / jnp.sqrt(rvar + eps)).reshape(cout, 1)
        layer_params.append((W, scale, bias))

    out = pointnet_fp_forward(unknown, known, unknow_feats, known_feats,
                              layer_params)
    out = jax.block_until_ready(out)
    assert out.shape == (B, mlp_spec[-1], n), out.shape

    ref = jax.block_until_ready(
        _reference(unknown, known, unknow_feats, known_feats, layer_params))
    # Tolerance reflects bf16 operands on the MXU for the gather + MLP matmuls
    # and the approx reciprocal in the interpolation normalization.
    np.testing.assert_allclose(np.asarray(out), np.asarray(ref),
                               rtol=3e-2, atol=3e-2)

    print("KERNEL_OK")
</pallas_src>

<mosaic_0001>
module attributes {stable_mosaic.version = 11 : i64} {
  func.func @kernel(%arg0: i32, %arg1: i32, %arg2: memref<1x8x128xf32, #tpu.memory_space<vmem>>, %arg3: memref<1x8x8xf32, #tpu.memory_space<vmem>>, %arg4: memref<1x128x8xbf16, #tpu.memory_space<vmem>>, %arg5: memref<1x128x128xf32, #tpu.memory_space<vmem>>, %arg6: memref<128x128xbf16, #tpu.memory_space<vmem>>, %arg7: memref<128x128xbf16, #tpu.memory_space<vmem>>, %arg8: memref<128x1xf32, #tpu.memory_space<vmem>>, %arg9: memref<128x128xbf16, #tpu.memory_space<vmem>>, %arg10: memref<128x1xf32, #tpu.memory_space<vmem>>, %arg11: memref<1x128x128xf32, #tpu.memory_space<vmem>>) attributes {dimension_semantics = [#tpu.dimension_semantics<parallel>, #tpu.dimension_semantics<parallel>], iteration_bounds = array<i64: 2, 1>, scalar_prefetch = 0 : i64, scratch_operands = 0 : i64, tpu.core_type = #tpu.core_type<tc>, window_params = [{transform_indices = @transform_0, window_bounds = array<i64: 1, 8, 128>}, {pipeline_mode = #tpu.pipeline_mode<synchronous>, transform_indices = @transform_1, window_bounds = array<i64: 1, 8, 8>}, {pipeline_mode = #tpu.pipeline_mode<synchronous>, transform_indices = @transform_2, window_bounds = array<i64: 1, 128, 8>}, {transform_indices = @transform_3, window_bounds = array<i64: 1, 128, 128>}, {pipeline_mode = #tpu.pipeline_mode<synchronous>, transform_indices = @transform_4, window_bounds = array<i64: 128, 128>}, {pipeline_mode = #tpu.pipeline_mode<synchronous>, transform_indices = @transform_5, window_bounds = array<i64: 128, 128>}, {pipeline_mode = #tpu.pipeline_mode<synchronous>, transform_indices = @transform_6, window_bounds = array<i64: 128, 1>}, {pipeline_mode = #tpu.pipeline_mode<synchronous>, transform_indices = @transform_7, window_bounds = array<i64: 128, 128>}, {pipeline_mode = #tpu.pipeline_mode<synchronous>, transform_indices = @transform_8, window_bounds = array<i64: 128, 1>}, {transform_indices = @transform_9, window_bounds = array<i64: 1, 128, 128>}]} {
    %c0 = arith.constant 0 : index
    %c0_0 = arith.constant 0 : index
    %c0_1 = arith.constant 0 : index
    %0 = vector.load %arg2[%c0, %c0_0, %c0_1] : memref<1x8x128xf32, #tpu.memory_space<vmem>>, vector<1x8x128xf32>
    %1 = vector.shape_cast %0 : vector<1x8x128xf32> to vector<8x128xf32>
    %c0_2 = arith.constant 0 : index
    %c0_3 = arith.constant 0 : index
    %c0_4 = arith.constant 0 : index
    %2 = vector.load %arg3[%c0_2, %c0_3, %c0_4] : memref<1x8x8xf32, #tpu.memory_space<vmem>>, vector<1x8x8xf32>
    %3 = vector.shape_cast %2 : vector<1x8x8xf32> to vector<8x8xf32>
    %c0_5 = arith.constant 0 : index
    %c0_6 = arith.constant 0 : index
    %c0_7 = arith.constant 0 : index
    %4 = vector.load %arg4[%c0_5, %c0_6, %c0_7] : memref<1x128x8xbf16, #tpu.memory_space<vmem>>, vector<1x128x8xbf16>
    %5 = vector.shape_cast %4 : vector<1x128x8xbf16> to vector<128x8xbf16>
    %6 = arith.mulf %3, %3 : vector<8x8xf32>
    %cst = arith.constant dense<0.000000e+00> : vector<8xf32>
    %7 = vector.multi_reduction <add>, %6, %cst [1] : vector<8x8xf32> to vector<8xf32>
    %8 = vector.shape_cast %7 : vector<8xf32> to vector<8x1xf32>
    %9 = arith.mulf %1, %1 : vector<8x128xf32>
    %cst_8 = arith.constant dense<0.000000e+00> : vector<128xf32>
    %10 = vector.multi_reduction <add>, %9, %cst_8 [0] : vector<8x128xf32> to vector<128xf32>
    %11 = vector.shape_cast %10 : vector<128xf32> to vector<1x128xf32>
    %cst_9 = arith.constant dense<0.000000e+00> : vector<8x128xf32>
    %12 = tpu.matmul %3, %1, %cst_9 {dimension_numbers = #tpu.dot_dimension_numbers<[1], [0], [0], [1], [0, 0, 1, 1], [], []>} : vector<8x8xf32>, vector<8x128xf32>, vector<8x128xf32> -> vector<8x128xf32>
    %cst_10 = arith.constant 2.000000e+00 : f32
    %13 = vector.broadcast %cst_10 : f32 to vector<8x128xf32>
    %14 = arith.mulf %13, %12 : vector<8x128xf32>
    %15 = vector.broadcast %8 : vector<8x1xf32> to vector<8x128xf32>
    %16 = arith.subf %15, %14 : vector<8x128xf32>
    %17 = vector.broadcast %11 : vector<1x128xf32> to vector<8x128xf32>
    %18 = arith.addf %16, %17 : vector<8x128xf32>
    %cst_11 = arith.constant 0.000000e+00 : f32
    %19 = vector.broadcast %cst_11 : f32 to vector<8x128xf32>
    %20 = arith.maximumf %18, %19 : vector<8x128xf32>
    %21 = tpu.iota {dimensions = array<i32: 0>} : vector<8x128xi32>
    %cst_12 = arith.constant 0.000000e+00 : f32
    %22 = vector.broadcast %cst_12 : f32 to vector<8x128xf32>
    %cst_13 = arith.constant 0.000000e+00 : f32
    %23 = vector.broadcast %cst_13 : f32 to vector<1x128xf32>
    %cst_14 = arith.constant dense<0x7F800000> : vector<128xf32>
    %24 = vector.multi_reduction <minimumf>, %20, %cst_14 [0] : vector<8x128xf32> to vector<128xf32>
    %25 = vector.shape_cast %24 : vector<128xf32> to vector<1x128xf32>
    %26 = vector.broadcast %25 : vector<1x128xf32> to vector<8x128xf32>
    %27 = arith.cmpf oeq, %20, %26 : vector<8x128xf32>
    %c8_i32 = arith.constant 8 : i32
    %28 = vector.broadcast %c8_i32 : i32 to vector<8x128xi32>
    %29 = arith.select %27, %21, %28 : vector<8x128xi1>, vector<8x128xi32>
    %cst_15 = arith.constant dense<2147483647> : vector<128xi32>
    %30 = vector.multi_reduction <minsi>, %29, %cst_15 [0] : vector<8x128xi32> to vector<128xi32>
    %31 = vector.shape_cast %30 : vector<128xi32> to vector<1x128xi32>
    %32 = vector.broadcast %31 : vector<1x128xi32> to vector<8x128xi32>
    %33 = arith.cmpi eq, %21, %32 : vector<8x128xi32>
    %34 = math.sqrt %25 : vector<1x128xf32>
    %cst_16 = arith.constant 9.99999993E-9 : f32
    %35 = vector.broadcast %cst_16 : f32 to vector<1x128xf32>
    %36 = arith.addf %34, %35 : vector<1x128xf32>
    %cst_17 = arith.constant 1.000000e+00 : f32
    %37 = vector.broadcast %cst_17 : f32 to vector<1x128xf32>
    %38 = arith.divf %37, %36 : vector<1x128xf32>
    %cst_18 = arith.constant 0.000000e+00 : f32
    %39 = vector.shape_cast %38 : vector<1x128xf32> to vector<1x128xf32>
    %40 = vector.broadcast %39 : vector<1x128xf32> to vector<8x128xf32>
    %41 = vector.broadcast %cst_18 : f32 to vector<8x128xf32>
    %42 = arith.select %33, %40, %41 : vector<8x128xi1>, vector<8x128xf32>
    %43 = arith.addf %22, %42 : vector<8x128xf32>
    %44 = arith.addf %23, %38 : vector<1x128xf32>
    %cst_19 = arith.constant 0x7F800000 : f32
    %45 = vector.broadcast %cst_19 : f32 to vector<8x128xf32>
    %46 = arith.select %33, %45, %20 : vector<8x128xi1>, vector<8x128xf32>
    %cst_20 = arith.constant dense<0x7F800000> : vector<128xf32>
    %47 = vector.multi_reduction <minimumf>, %46, %cst_20 [0] : vector<8x128xf32> to vector<128xf32>
    %48 = vector.shape_cast %47 : vector<128xf32> to vector<1x128xf32>
    %49 = vector.broadcast %48 : vector<1x128xf32> to vector<8x128xf32>
    %50 = arith.cmpf oeq, %46, %49 : vector<8x128xf32>
    %c8_i32_21 = arith.constant 8 : i32
    %51 = vector.broadcast %c8_i32_21 : i32 to vector<8x128xi32>
    %52 = arith.select %50, %21, %51 : vector<8x128xi1>, vector<8x128xi32>
    %cst_22 = arith.constant dense<2147483647> : vector<128xi32>
    %53 = vector.multi_reduction <minsi>, %52, %cst_22 [0] : vector<8x128xi32> to vector<128xi32>
    %54 = vector.shape_cast %53 : vector<128xi32> to vector<1x128xi32>
    %55 = vector.broadcast %54 : vector<1x128xi32> to vector<8x128xi32>
    %56 = arith.cmpi eq, %21, %55 : vector<8x128xi32>
    %57 = math.sqrt %48 : vector<1x128xf32>
    %cst_23 = arith.constant 9.99999993E-9 : f32
    %58 = vector.broadcast %cst_23 : f32 to vector<1x128xf32>
    %59 = arith.addf %57, %58 : vector<1x128xf32>
    %cst_24 = arith.constant 1.000000e+00 : f32
    %60 = vector.broadcast %cst_24 : f32 to vector<1x128xf32>
    %61 = arith.divf %60, %59 : vector<1x128xf32>
    %cst_25 = arith.constant 0.000000e+00 : f32
    %62 = vector.shape_cast %61 : vector<1x128xf32> to vector<1x128xf32>
    %63 = vector.broadcast %62 : vector<1x128xf32> to vector<8x128xf32>
    %64 = vector.broadcast %cst_25 : f32 to vector<8x128xf32>
    %65 = arith.select %56, %63, %64 : vector<8x128xi1>, vector<8x128xf32>
    %66 = arith.addf %43, %65 : vector<8x128xf32>
    %67 = arith.addf %44, %61 : vector<1x128xf32>
    %cst_26 = arith.constant 0x7F800000 : f32
    %68 = vector.broadcast %cst_26 : f32 to vector<8x128xf32>
    %69 = arith.select %56, %68, %46 : vector<8x128xi1>, vector<8x128xf32>
    %cst_27 = arith.constant dense<0x7F800000> : vector<128xf32>
    %70 = vector.multi_reduction <minimumf>, %69, %cst_27 [0] : vector<8x128xf32> to vector<128xf32>
    %71 = vector.shape_cast %70 : vector<128xf32> to vector<1x128xf32>
    %72 = vector.broadcast %71 : vector<1x128xf32> to vector<8x128xf32>
    %73 = arith.cmpf oeq, %69, %72 : vector<8x128xf32>
    %c8_i32_28 = arith.constant 8 : i32
    %74 = vector.broadcast %c8_i32_28 : i32 to vector<8x128xi32>
    %75 = arith.select %73, %21, %74 : vector<8x128xi1>, vector<8x128xi32>
    %cst_29 = arith.constant dense<2147483647> : vector<128xi32>
    %76 = vector.multi_reduction <minsi>, %75, %cst_29 [0] : vector<8x128xi32> to vector<128xi32>
    %77 = vector.shape_cast %76 : vector<128xi32> to vector<1x128xi32>
    %78 = vector.broadcast %77 : vector<1x128xi32> to vector<8x128xi32>
    %79 = arith.cmpi eq, %21, %78 : vector<8x128xi32>
    %80 = math.sqrt %71 : vector<1x128xf32>
    %cst_30 = arith.constant 9.99999993E-9 : f32
    %81 = vector.broadcast %cst_30 : f32 to vector<1x128xf32>
    %82 = arith.addf %80, %81 : vector<1x128xf32>
    %cst_31 = arith.constant 1.000000e+00 : f32
    %83 = vector.broadcast %cst_31 : f32 to vector<1x128xf32>
    %84 = arith.divf %83, %82 : vector<1x128xf32>
    %cst_32 = arith.constant 0.000000e+00 : f32
    %85 = vector.shape_cast %84 : vector<1x128xf32> to vector<1x128xf32>
    %86 = vector.broadcast %85 : vector<1x128xf32> to vector<8x128xf32>
    %87 = vector.broadcast %cst_32 : f32 to vector<8x128xf32>
    %88 = arith.select %79, %86, %87 : vector<8x128xi1>, vector<8x128xf32>
    %89 = arith.addf %66, %88 : vector<8x128xf32>
    %90 = arith.addf %67, %84 : vector<1x128xf32>
    %91 = arith.truncf %89 : vector<8x128xf32> to vector<8x128xbf16>
    %cst_33 = arith.constant dense<0.000000e+00> : vector<128x128xf32>
    %92 = tpu.matmul %5, %91, %cst_33 {dimension_numbers = #tpu.dot_dimension_numbers<[1], [0], [0], [1], [0, 0, 1, 1], [], []>} : vector<128x8xbf16>, vector<8x128xbf16>, vector<128x128xf32> -> vector<128x128xf32>
    %93 = tpu.reciprocal %90 {approx = true} : vector<1x128xf32> -> vector<1x128xf32>
    %94 = vector.broadcast %93 : vector<1x128xf32> to vector<128x128xf32>
    %95 = arith.mulf %92, %94 : vector<128x128xf32>
    %96 = arith.truncf %95 : vector<128x128xf32> to vector<128x128xbf16>
    %c0_34 = arith.constant 0 : index
    %c0_35 = arith.constant 0 : index
    %c0_36 = arith.constant 0 : index
    %97 = vector.load %arg5[%c0_34, %c0_35, %c0_36] : memref<1x128x128xf32, #tpu.memory_space<vmem>>, vector<1x128x128xf32>
    %98 = vector.shape_cast %97 : vector<1x128x128xf32> to vector<128x128xf32>
    %99 = arith.truncf %98 : vector<128x128xf32> to vector<128x128xbf16>
    %c0_37 = arith.constant 0 : index
    %c0_38 = arith.constant 0 : index
    %100 = vector.load %arg6[%c0_37, %c0_38] : memref<128x128xbf16, #tpu.memory_space<vmem>>, vector<128x128xbf16>
    %cst_39 = arith.constant dense<0.000000e+00> : vector<128x128xf32>
    %101 = tpu.matmul %100, %96, %cst_39 {dimension_numbers = #tpu.dot_dimension_numbers<[1], [0], [0], [1], [0, 0, 1, 1], [], []>} : vector<128x128xbf16>, vector<128x128xbf16>, vector<128x128xf32> -> vector<128x128xf32>
    %c0_40 = arith.constant 0 : index
    %c0_41 = arith.constant 0 : index
    %102 = vector.load %arg7[%c0_40, %c0_41] : memref<128x128xbf16, #tpu.memory_space<vmem>>, vector<128x128xbf16>
    %cst_42 = arith.constant dense<0.000000e+00> : vector<128x128xf32>
    %103 = tpu.matmul %102, %99, %cst_42 {dimension_numbers = #tpu.dot_dimension_numbers<[1], [0], [0], [1], [0, 0, 1, 1], [], []>} : vector<128x128xbf16>, vector<128x128xbf16>, vector<128x128xf32> -> vector<128x128xf32>
    %104 = arith.addf %101, %103 : vector<128x128xf32>
    %c0_43 = arith.constant 0 : index
    %c0_44 = arith.constant 0 : index
    %105 = vector.load %arg8[%c0_43, %c0_44] : memref<128x1xf32, #tpu.memory_space<vmem>>, vector<128x1xf32>
    %106 = vector.broadcast %105 : vector<128x1xf32> to vector<128x128xf32>
    %107 = arith.addf %104, %106 : vector<128x128xf32>
    %cst_45 = arith.constant 0.000000e+00 : f32
    %108 = vector.broadcast %cst_45 : f32 to vector<128x128xf32>
    %109 = arith.maximumf %107, %108 : vector<128x128xf32>
    %c0_46 = arith.constant 0 : index
    %c0_47 = arith.constant 0 : index
    %110 = vector.load %arg9[%c0_46, %c0_47] : memref<128x128xbf16, #tpu.memory_space<vmem>>, vector<128x128xbf16>
    %111 = arith.truncf %109 : vector<128x128xf32> to vector<128x128xbf16>
    %cst_48 = arith.constant dense<0.000000e+00> : vector<128x128xf32>
    %112 = tpu.matmul %110, %111, %cst_48 {dimension_numbers = #tpu.dot_dimension_numbers<[1], [0], [0], [1], [0, 0, 1, 1], [], []>} : vector<128x128xbf16>, vector<128x128xbf16>, vector<128x128xf32> -> vector<128x128xf32>
    %c0_49 = arith.constant 0 : index
    %c0_50 = arith.constant 0 : index
    %113 = vector.load %arg10[%c0_49, %c0_50] : memref<128x1xf32, #tpu.memory_space<vmem>>, vector<128x1xf32>
    %114 = vector.broadcast %113 : vector<128x1xf32> to vector<128x128xf32>
    %115 = arith.addf %112, %114 : vector<128x128xf32>
    %cst_51 = arith.constant 0.000000e+00 : f32
    %116 = vector.broadcast %cst_51 : f32 to vector<128x128xf32>
    %117 = arith.maximumf %115, %116 : vector<128x128xf32>
    %c0_52 = arith.constant 0 : index
    %c0_53 = arith.constant 0 : index
    %c0_54 = arith.constant 0 : index
    %118 = vector.load %arg11[%c0_52, %c0_53, %c0_54] : memref<1x128x128xf32, #tpu.memory_space<vmem>>, vector<1x128x128xf32>
    %119 = vector.shape_cast %118 : vector<1x128x128xf32> to vector<128x128xf32>
    %120 = vector.shape_cast %117 : vector<128x128xf32> to vector<1x128x128xf32>
    tpu.vector_store %arg11[%c0_52, %c0_53, %c0_54], %120 {strides = array<i32>} : memref<1x128x128xf32, #tpu.memory_space<vmem>>, vector<1x128x128xf32>,
    return
  }
  func.func @transform_0(%arg0: i32, %arg1: i32) -> (i32, i32, i32) {
    %c0_i32 = arith.constant 0 : i32
    %c0_i32_0 = arith.constant 0 : i32
    return %arg0, %c0_i32, %arg1 : i32, i32, i32
  }
  func.func @transform_1(%arg0: i32, %arg1: i32) -> (i32, i32, i32) {
    %c0_i32 = arith.constant 0 : i32
    %c0_i32_0 = arith.constant 0 : i32
    %c0_i32_1 = arith.constant 0 : i32
    return %arg0, %c0_i32, %c0_i32_0 : i32, i32, i32
  }
  func.func @transform_2(%arg0: i32, %arg1: i32) -> (i32, i32, i32) {
    %c0_i32 = arith.constant 0 : i32
    %c0_i32_0 = arith.constant 0 : i32
    %c0_i32_1 = arith.constant 0 : i32
    return %arg0, %c0_i32, %c0_i32_0 : i32, i32, i32
  }
  func.func @transform_3(%arg0: i32, %arg1: i32) -> (i32, i32, i32) {
    %c0_i32 = arith.constant 0 : i32
    %c0_i32_0 = arith.constant 0 : i32
    return %arg0, %c0_i32, %arg1 : i32, i32, i32
  }
  func.func @transform_4(%arg0: i32, %arg1: i32) -> (i32, i32) {
    %c0_i32 = arith.constant 0 : i32
    %c0_i32_0 = arith.constant 0 : i32
    %c0_i32_1 = arith.constant 0 : i32
    return %c0_i32, %c0_i32_0 : i32, i32
  }
  func.func @transform_5(%arg0: i32, %arg1: i32) -> (i32, i32) {
    %c0_i32 = arith.constant 0 : i32
    %c0_i32_0 = arith.constant 0 : i32
    %c0_i32_1 = arith.constant 0 : i32
    return %c0_i32, %c0_i32_0 : i32, i32
  }
  func.func @transform_6(%arg0: i32, %arg1: i32) -> (i32, i32) {
    %c0_i32 = arith.constant 0 : i32
    %c0_i32_0 = arith.constant 0 : i32
    %c0_i32_1 = arith.constant 0 : i32
    return %c0_i32, %c0_i32_0 : i32, i32
  }
  func.func @transform_7(%arg0: i32, %arg1: i32) -> (i32, i32) {
    %c0_i32 = arith.constant 0 : i32
    %c0_i32_0 = arith.constant 0 : i32
    %c0_i32_1 = arith.constant 0 : i32
    return %c0_i32, %c0_i32_0 : i32, i32
  }
  func.func @transform_8(%arg0: i32, %arg1: i32) -> (i32, i32) {
    %c0_i32 = arith.constant 0 : i32
    %c0_i32_0 = arith.constant 0 : i32
    %c0_i32_1 = arith.constant 0 : i32
    return %c0_i32, %c0_i32_0 : i32, i32
  }
  func.func @transform_9(%arg0: i32, %arg1: i32) -> (i32, i32, i32) {
    %c0_i32 = arith.constant 0 : i32
    %c0_i32_0 = arith.constant 0 : i32
    return %arg0, %c0_i32, %arg1 : i32, i32, i32
  }
}

module attributes {stable_mosaic.version = 11 : i64} {
  func.func @kernel(%arg0: i32, %arg1: i32, %arg2: memref<1x8x128xf32, #tpu.memory_space<vmem>>, %arg3: memref<1x8x8xf32, #tpu.memory_space<vmem>>, %arg4: memref<1x128x8xbf16, #tpu.memory_space<vmem>>, %arg5: memref<1x128x128xf32, #tpu.memory_space<vmem>>, %arg6: memref<128x128xbf16, #tpu.memory_space<vmem>>, %arg7: memref<128x128xbf16, #tpu.memory_space<vmem>>, %arg8: memref<128x1xf32, #tpu.memory_space<vmem>>, %arg9: memref<128x128xbf16, #tpu.memory_space<vmem>>, %arg10: memref<128x1xf32, #tpu.memory_space<vmem>>, %arg11: memref<1x128x128xf32, #tpu.memory_space<vmem>>) attributes {dimension_semantics = [#tpu.dimension_semantics<parallel>, #tpu.dimension_semantics<parallel>], iteration_bounds = array<i64: 2, 1>, scalar_prefetch = 0 : i64, scratch_operands = 0 : i64, tpu.core_type = #tpu.core_type<tc>, window_params = [{transform_indices = @transform_0, window_bounds = array<i64: 1, 8, 128>}, {transform_indices = @transform_1, window_bounds = array<i64: 1, 8, 8>}, {transform_indices = @transform_2, window_bounds = array<i64: 1, 128, 8>}, {transform_indices = @transform_3, window_bounds = array<i64: 1, 128, 128>}, {pipeline_mode = #tpu.pipeline_mode<synchronous>, transform_indices = @transform_4, window_bounds = array<i64: 128, 128>}, {pipeline_mode = #tpu.pipeline_mode<synchronous>, transform_indices = @transform_5, window_bounds = array<i64: 128, 128>}, {pipeline_mode = #tpu.pipeline_mode<synchronous>, transform_indices = @transform_6, window_bounds = array<i64: 128, 1>}, {pipeline_mode = #tpu.pipeline_mode<synchronous>, transform_indices = @transform_7, window_bounds = array<i64: 128, 128>}, {pipeline_mode = #tpu.pipeline_mode<synchronous>, transform_indices = @transform_8, window_bounds = array<i64: 128, 1>}, {transform_indices = @transform_9, window_bounds = array<i64: 1, 128, 128>}]} {
    %c0 = arith.constant 0 : index
    %c0_0 = arith.constant 0 : index
    %c0_1 = arith.constant 0 : index
    %0 = vector.load %arg2[%c0, %c0_0, %c0_1] : memref<1x8x128xf32, #tpu.memory_space<vmem>>, vector<1x8x128xf32>
    %1 = vector.shape_cast %0 : vector<1x8x128xf32> to vector<8x128xf32>
    %c0_2 = arith.constant 0 : index
    %c0_3 = arith.constant 0 : index
    %c0_4 = arith.constant 0 : index
    %2 = vector.load %arg3[%c0_2, %c0_3, %c0_4] : memref<1x8x8xf32, #tpu.memory_space<vmem>>, vector<1x8x8xf32>
    %3 = vector.shape_cast %2 : vector<1x8x8xf32> to vector<8x8xf32>
    %c0_5 = arith.constant 0 : index
    %c0_6 = arith.constant 0 : index
    %c0_7 = arith.constant 0 : index
    %4 = vector.load %arg4[%c0_5, %c0_6, %c0_7] : memref<1x128x8xbf16, #tpu.memory_space<vmem>>, vector<1x128x8xbf16>
    %5 = vector.shape_cast %4 : vector<1x128x8xbf16> to vector<128x8xbf16>
    %6 = arith.mulf %3, %3 : vector<8x8xf32>
    %cst = arith.constant dense<0.000000e+00> : vector<8xf32>
    %7 = vector.multi_reduction <add>, %6, %cst [1] : vector<8x8xf32> to vector<8xf32>
    %8 = vector.shape_cast %7 : vector<8xf32> to vector<8x1xf32>
    %9 = arith.mulf %1, %1 : vector<8x128xf32>
    %cst_8 = arith.constant dense<0.000000e+00> : vector<128xf32>
    %10 = vector.multi_reduction <add>, %9, %cst_8 [0] : vector<8x128xf32> to vector<128xf32>
    %11 = vector.shape_cast %10 : vector<128xf32> to vector<1x128xf32>
    %cst_9 = arith.constant dense<0.000000e+00> : vector<8x128xf32>
    %12 = tpu.matmul %3, %1, %cst_9 {dimension_numbers = #tpu.dot_dimension_numbers<[1], [0], [0], [1], [0, 0, 1, 1], [], []>} : vector<8x8xf32>, vector<8x128xf32>, vector<8x128xf32> -> vector<8x128xf32>
    %cst_10 = arith.constant 2.000000e+00 : f32
    %13 = vector.broadcast %cst_10 : f32 to vector<8x128xf32>
    %14 = arith.mulf %13, %12 : vector<8x128xf32>
    %15 = vector.broadcast %8 : vector<8x1xf32> to vector<8x128xf32>
    %16 = arith.subf %15, %14 : vector<8x128xf32>
    %17 = vector.broadcast %11 : vector<1x128xf32> to vector<8x128xf32>
    %18 = arith.addf %16, %17 : vector<8x128xf32>
    %cst_11 = arith.constant 0.000000e+00 : f32
    %19 = vector.broadcast %cst_11 : f32 to vector<8x128xf32>
    %20 = arith.maximumf %18, %19 : vector<8x128xf32>
    %21 = tpu.iota {dimensions = array<i32: 0>} : vector<8x128xi32>
    %cst_12 = arith.constant 0.000000e+00 : f32
    %22 = vector.broadcast %cst_12 : f32 to vector<8x128xf32>
    %cst_13 = arith.constant 0.000000e+00 : f32
    %23 = vector.broadcast %cst_13 : f32 to vector<1x128xf32>
    %cst_14 = arith.constant dense<0x7F800000> : vector<128xf32>
    %24 = vector.multi_reduction <minimumf>, %20, %cst_14 [0] : vector<8x128xf32> to vector<128xf32>
    %25 = vector.shape_cast %24 : vector<128xf32> to vector<1x128xf32>
    %26 = vector.broadcast %25 : vector<1x128xf32> to vector<8x128xf32>
    %27 = arith.cmpf oeq, %20, %26 : vector<8x128xf32>
    %c8_i32 = arith.constant 8 : i32
    %28 = vector.broadcast %c8_i32 : i32 to vector<8x128xi32>
    %29 = arith.select %27, %21, %28 : vector<8x128xi1>, vector<8x128xi32>
    %cst_15 = arith.constant dense<2147483647> : vector<128xi32>
    %30 = vector.multi_reduction <minsi>, %29, %cst_15 [0] : vector<8x128xi32> to vector<128xi32>
    %31 = vector.shape_cast %30 : vector<128xi32> to vector<1x128xi32>
    %32 = vector.broadcast %31 : vector<1x128xi32> to vector<8x128xi32>
    %33 = arith.cmpi eq, %21, %32 : vector<8x128xi32>
    %34 = math.sqrt %25 : vector<1x128xf32>
    %cst_16 = arith.constant 9.99999993E-9 : f32
    %35 = vector.broadcast %cst_16 : f32 to vector<1x128xf32>
    %36 = arith.addf %34, %35 : vector<1x128xf32>
    %cst_17 = arith.constant 1.000000e+00 : f32
    %37 = vector.broadcast %cst_17 : f32 to vector<1x128xf32>
    %38 = arith.divf %37, %36 : vector<1x128xf32>
    %cst_18 = arith.constant 0.000000e+00 : f32
    %39 = vector.shape_cast %38 : vector<1x128xf32> to vector<1x128xf32>
    %40 = vector.broadcast %39 : vector<1x128xf32> to vector<8x128xf32>
    %41 = vector.broadcast %cst_18 : f32 to vector<8x128xf32>
    %42 = arith.select %33, %40, %41 : vector<8x128xi1>, vector<8x128xf32>
    %43 = arith.addf %22, %42 : vector<8x128xf32>
    %44 = arith.addf %23, %38 : vector<1x128xf32>
    %cst_19 = arith.constant 0x7F800000 : f32
    %45 = vector.broadcast %cst_19 : f32 to vector<8x128xf32>
    %46 = arith.select %33, %45, %20 : vector<8x128xi1>, vector<8x128xf32>
    %cst_20 = arith.constant dense<0x7F800000> : vector<128xf32>
    %47 = vector.multi_reduction <minimumf>, %46, %cst_20 [0] : vector<8x128xf32> to vector<128xf32>
    %48 = vector.shape_cast %47 : vector<128xf32> to vector<1x128xf32>
    %49 = vector.broadcast %48 : vector<1x128xf32> to vector<8x128xf32>
    %50 = arith.cmpf oeq, %46, %49 : vector<8x128xf32>
    %c8_i32_21 = arith.constant 8 : i32
    %51 = vector.broadcast %c8_i32_21 : i32 to vector<8x128xi32>
    %52 = arith.select %50, %21, %51 : vector<8x128xi1>, vector<8x128xi32>
    %cst_22 = arith.constant dense<2147483647> : vector<128xi32>
    %53 = vector.multi_reduction <minsi>, %52, %cst_22 [0] : vector<8x128xi32> to vector<128xi32>
    %54 = vector.shape_cast %53 : vector<128xi32> to vector<1x128xi32>
    %55 = vector.broadcast %54 : vector<1x128xi32> to vector<8x128xi32>
    %56 = arith.cmpi eq, %21, %55 : vector<8x128xi32>
    %57 = math.sqrt %48 : vector<1x128xf32>
    %cst_23 = arith.constant 9.99999993E-9 : f32
    %58 = vector.broadcast %cst_23 : f32 to vector<1x128xf32>
    %59 = arith.addf %57, %58 : vector<1x128xf32>
    %cst_24 = arith.constant 1.000000e+00 : f32
    %60 = vector.broadcast %cst_24 : f32 to vector<1x128xf32>
    %61 = arith.divf %60, %59 : vector<1x128xf32>
    %cst_25 = arith.constant 0.000000e+00 : f32
    %62 = vector.shape_cast %61 : vector<1x128xf32> to vector<1x128xf32>
    %63 = vector.broadcast %62 : vector<1x128xf32> to vector<8x128xf32>
    %64 = vector.broadcast %cst_25 : f32 to vector<8x128xf32>
    %65 = arith.select %56, %63, %64 : vector<8x128xi1>, vector<8x128xf32>
    %66 = arith.addf %43, %65 : vector<8x128xf32>
    %67 = arith.addf %44, %61 : vector<1x128xf32>
    %cst_26 = arith.constant 0x7F800000 : f32
    %68 = vector.broadcast %cst_26 : f32 to vector<8x128xf32>
    %69 = arith.select %56, %68, %46 : vector<8x128xi1>, vector<8x128xf32>
    %cst_27 = arith.constant dense<0x7F800000> : vector<128xf32>
    %70 = vector.multi_reduction <minimumf>, %69, %cst_27 [0] : vector<8x128xf32> to vector<128xf32>
    %71 = vector.shape_cast %70 : vector<128xf32> to vector<1x128xf32>
    %72 = vector.broadcast %71 : vector<1x128xf32> to vector<8x128xf32>
    %73 = arith.cmpf oeq, %69, %72 : vector<8x128xf32>
    %c8_i32_28 = arith.constant 8 : i32
    %74 = vector.broadcast %c8_i32_28 : i32 to vector<8x128xi32>
    %75 = arith.select %73, %21, %74 : vector<8x128xi1>, vector<8x128xi32>
    %cst_29 = arith.constant dense<2147483647> : vector<128xi32>
    %76 = vector.multi_reduction <minsi>, %75, %cst_29 [0] : vector<8x128xi32> to vector<128xi32>
    %77 = vector.shape_cast %76 : vector<128xi32> to vector<1x128xi32>
    %78 = vector.broadcast %77 : vector<1x128xi32> to vector<8x128xi32>
    %79 = arith.cmpi eq, %21, %78 : vector<8x128xi32>
    %80 = math.sqrt %71 : vector<1x128xf32>
    %cst_30 = arith.constant 9.99999993E-9 : f32
    %81 = vector.broadcast %cst_30 : f32 to vector<1x128xf32>
    %82 = arith.addf %80, %81 : vector<1x128xf32>
    %cst_31 = arith.constant 1.000000e+00 : f32
    %83 = vector.broadcast %cst_31 : f32 to vector<1x128xf32>
    %84 = arith.divf %83, %82 : vector<1x128xf32>
    %cst_32 = arith.constant 0.000000e+00 : f32
    %85 = vector.shape_cast %84 : vector<1x128xf32> to vector<1x128xf32>
    %86 = vector.broadcast %85 : vector<1x128xf32> to vector<8x128xf32>
    %87 = vector.broadcast %cst_32 : f32 to vector<8x128xf32>
    %88 = arith.select %79, %86, %87 : vector<8x128xi1>, vector<8x128xf32>
    %89 = arith.addf %66, %88 : vector<8x128xf32>
    %90 = arith.addf %67, %84 : vector<1x128xf32>
    %91 = arith.truncf %89 : vector<8x128xf32> to vector<8x128xbf16>
    %cst_33 = arith.constant dense<0.000000e+00> : vector<128x128xf32>
    %92 = tpu.matmul %5, %91, %cst_33 {dimension_numbers = #tpu.dot_dimension_numbers<[1], [0], [0], [1], [0, 0, 1, 1], [], []>} : vector<128x8xbf16>, vector<8x128xbf16>, vector<128x128xf32> -> vector<128x128xf32>
    %93 = tpu.reciprocal %90 {approx = true} : vector<1x128xf32> -> vector<1x128xf32>
    %94 = vector.broadcast %93 : vector<1x128xf32> to vector<128x128xf32>
    %95 = arith.mulf %92, %94 : vector<128x128xf32>
    %96 = arith.truncf %95 : vector<128x128xf32> to vector<128x128xbf16>
    %c0_34 = arith.constant 0 : index
    %c0_35 = arith.constant 0 : index
    %c0_36 = arith.constant 0 : index
    %97 = vector.load %arg5[%c0_34, %c0_35, %c0_36] : memref<1x128x128xf32, #tpu.memory_space<vmem>>, vector<1x128x128xf32>
    %98 = vector.shape_cast %97 : vector<1x128x128xf32> to vector<128x128xf32>
    %99 = arith.truncf %98 : vector<128x128xf32> to vector<128x128xbf16>
    %c0_37 = arith.constant 0 : index
    %c0_38 = arith.constant 0 : index
    %100 = vector.load %arg6[%c0_37, %c0_38] : memref<128x128xbf16, #tpu.memory_space<vmem>>, vector<128x128xbf16>
    %cst_39 = arith.constant dense<0.000000e+00> : vector<128x128xf32>
    %101 = tpu.matmul %100, %96, %cst_39 {dimension_numbers = #tpu.dot_dimension_numbers<[1], [0], [0], [1], [0, 0, 1, 1], [], []>} : vector<128x128xbf16>, vector<128x128xbf16>, vector<128x128xf32> -> vector<128x128xf32>
    %c0_40 = arith.constant 0 : index
    %c0_41 = arith.constant 0 : index
    %102 = vector.load %arg7[%c0_40, %c0_41] : memref<128x128xbf16, #tpu.memory_space<vmem>>, vector<128x128xbf16>
    %cst_42 = arith.constant dense<0.000000e+00> : vector<128x128xf32>
    %103 = tpu.matmul %102, %99, %cst_42 {dimension_numbers = #tpu.dot_dimension_numbers<[1], [0], [0], [1], [0, 0, 1, 1], [], []>} : vector<128x128xbf16>, vector<128x128xbf16>, vector<128x128xf32> -> vector<128x128xf32>
    %104 = arith.addf %101, %103 : vector<128x128xf32>
    %c0_43 = arith.constant 0 : index
    %c0_44 = arith.constant 0 : index
    %105 = vector.load %arg8[%c0_43, %c0_44] : memref<128x1xf32, #tpu.memory_space<vmem>>, vector<128x1xf32>
    %106 = vector.broadcast %105 : vector<128x1xf32> to vector<128x128xf32>
    %107 = arith.addf %104, %106 : vector<128x128xf32>
    %cst_45 = arith.constant 0.000000e+00 : f32
    %108 = vector.broadcast %cst_45 : f32 to vector<128x128xf32>
    %109 = arith.maximumf %107, %108 : vector<128x128xf32>
    %c0_46 = arith.constant 0 : index
    %c0_47 = arith.constant 0 : index
    %110 = vector.load %arg9[%c0_46, %c0_47] : memref<128x128xbf16, #tpu.memory_space<vmem>>, vector<128x128xbf16>
    %111 = arith.truncf %109 : vector<128x128xf32> to vector<128x128xbf16>
    %cst_48 = arith.constant dense<0.000000e+00> : vector<128x128xf32>
    %112 = tpu.matmul %110, %111, %cst_48 {dimension_numbers = #tpu.dot_dimension_numbers<[1], [0], [0], [1], [0, 0, 1, 1], [], []>} : vector<128x128xbf16>, vector<128x128xbf16>, vector<128x128xf32> -> vector<128x128xf32>
    %c0_49 = arith.constant 0 : index
    %c0_50 = arith.constant 0 : index
    %113 = vector.load %arg10[%c0_49, %c0_50] : memref<128x1xf32, #tpu.memory_space<vmem>>, vector<128x1xf32>
    %114 = vector.broadcast %113 : vector<128x1xf32> to vector<128x128xf32>
    %115 = arith.addf %112, %114 : vector<128x128xf32>
    %cst_51 = arith.constant 0.000000e+00 : f32
    %116 = vector.broadcast %cst_51 : f32 to vector<128x128xf32>
    %117 = arith.maximumf %115, %116 : vector<128x128xf32>
    %c0_52 = arith.constant 0 : index
    %c0_53 = arith.constant 0 : index
    %c0_54 = arith.constant 0 : index
    %118 = vector.load %arg11[%c0_52, %c0_53, %c0_54] : memref<1x128x128xf32, #tpu.memory_space<vmem>>, vector<1x128x128xf32>
    %119 = vector.shape_cast %118 : vector<1x128x128xf32> to vector<128x128xf32>
    %120 = vector.shape_cast %117 : vector<128x128xf32> to vector<1x128x128xf32>
    tpu.vector_store %arg11[%c0_52, %c0_53, %c0_54], %120 {strides = array<i32>} : memref<1x128x128xf32, #tpu.memory_space<vmem>>, vector<1x128x128xf32>,
    return
  }
  func.func @transform_0(%arg0: i32, %arg1: i32) -> (i32, i32, i32) {
    %c0_i32 = arith.constant 0 : i32
    %c0_i32_0 = arith.constant 0 : i32
    return %arg0, %c0_i32, %arg1 : i32, i32, i32
  }
  func.func @transform_1(%arg0: i32, %arg1: i32) -> (i32, i32, i32) {
    %c0_i32 = arith.constant 0 : i32
    %c0_i32_0 = arith.constant 0 : i32
    %c0_i32_1 = arith.constant 0 : i32
    return %arg0, %c0_i32, %c0_i32_0 : i32, i32, i32
  }
  func.func @transform_2(%arg0: i32, %arg1: i32) -> (i32, i32, i32) {
    %c0_i32 = arith.constant 0 : i32
    %c0_i32_0 = arith.constant 0 : i32
    %c0_i32_1 = arith.constant 0 : i32
    return %arg0, %c0_i32, %c0_i32_0 : i32, i32, i32
  }
  func.func @transform_3(%arg0: i32, %arg1: i32) -> (i32, i32, i32) {
    %c0_i32 = arith.constant 0 : i32
    %c0_i32_0 = arith.constant 0 : i32
    return %arg0, %c0_i32, %arg1 : i32, i32, i32
  }
  func.func @transform_4(%arg0: i32, %arg1: i32) -> (i32, i32) {
    %c0_i32 = arith.constant 0 : i32
    %c0_i32_0 = arith.constant 0 : i32
    %c0_i32_1 = arith.constant 0 : i32
    return %c0_i32, %c0_i32_0 : i32, i32
  }
  func.func @transform_5(%arg0: i32, %arg1: i32) -> (i32, i32) {
    %c0_i32 = arith.constant 0 : i32
    %c0_i32_0 = arith.constant 0 : i32
    %c0_i32_1 = arith.constant 0 : i32
    return %c0_i32, %c0_i32_0 : i32, i32
  }
  func.func @transform_6(%arg0: i32, %arg1: i32) -> (i32, i32) {
    %c0_i32 = arith.constant 0 : i32
    %c0_i32_0 = arith.constant 0 : i32
    %c0_i32_1 = arith.constant 0 : i32
    return %c0_i32, %c0_i32_0 : i32, i32
  }
  func.func @transform_7(%arg0: i32, %arg1: i32) -> (i32, i32) {
    %c0_i32 = arith.constant 0 : i32
    %c0_i32_0 = arith.constant 0 : i32
    %c0_i32_1 = arith.constant 0 : i32
    return %c0_i32, %c0_i32_0 : i32, i32
  }
  func.func @transform_8(%arg0: i32, %arg1: i32) -> (i32, i32) {
    %c0_i32 = arith.constant 0 : i32
    %c0_i32_0 = arith.constant 0 : i32
    %c0_i32_1 = arith.constant 0 : i32
    return %c0_i32, %c0_i32_0 : i32, i32
  }
  func.func @transform_9(%arg0: i32, %arg1: i32) -> (i32, i32, i32) {
    %c0_i32 = arith.constant 0 : i32
    %c0_i32_0 = arith.constant 0 : i32
    return %arg0, %c0_i32, %arg1 : i32, i32, i32
  }
}

</mosaic_0001>

<bundles_post_ra>
// kernel: tpu_custom_call.1
= control target key start
LH: loop header
LB: loop body
LE: loop exit
PB: predicated region body
PF: predicated region fallthrough
CT: control target
= control target key end

     0   :  { %s2879_s0 = inlined_call_operand.hbm [shape: f32[2,8,128], index: 0, kind: input, shape index: {}]   ;;  %s2880_s1 = inlined_call_operand.hbm [shape: f32[2,8,8], index: 1, kind: input, shape index: {}]   ;;  %s2881_s2 = inlined_call_operand.vmem [shape: bf16[2,128,8], index: 2, kind: input, shape index: {}]   ;;  %s2882_s3 = inlined_call_operand.vmem [shape: f32[2,128,128], index: 3, kind: input, shape index: {}]   ;;  %s2883_s4 = inlined_call_operand.vmem [shape: bf16[128,128], index: 4, kind: input, shape index: {}]   ;;  %s2884_s5 = inlined_call_operand.vmem [shape: bf16[128,128], index: 5, kind: input, shape index: {}]   ;;  %s2885_s6 = inlined_call_operand.vmem [shape: f32[128,1], index: 6, kind: input, shape index: {}]   ;;  %s2886_s7 = inlined_call_operand.hbm [shape: bf16[128,128], index: 7, kind: input, shape index: {}]   ;;  %s2887_s8 = inlined_call_operand.vmem [shape: f32[128,1], index: 8, kind: input, shape index: {}]   ;;  %s2888_s9 = inlined_call_operand.hbm [shape: f32[2,128,128], index: 9, kind: output, shape index: {}]  }
   0x1   :  { %2898 = sst [smem:[#allocation15_spill]] %s2880_s1 }
   0x2   :  { %2899 = sst [smem:[#allocation16_spill]] %s2886_s7 }
   0x3   :  { %2900 = sst [smem:[#allocation17_spill]] %s2888_s9 }
   0x4   :  { %14 = vsyncpa [#allocation3], 0 }
   0x5   :  { %16 = vsyncpa [#allocation3 + $0x1], 0 }
   0x6   :  { %17 = vsyncpa [#allocation6], 0 }
   0x7   :  { %18 = vsyncpa [#allocation4], 0 }
   0x8   :  { %20 = vsyncpa [#allocation4 + $0x1], 0  ;;  %s2397_s30 = smov 0   ;;  %s2399_s10 = smov 0  }
   0x9   :  { %s2401_s11 = smov 0   ;;  %s2403_s12 = smov 0  }
   0xa   :  { %s2405_s13 = smov 0   ;;  %s2407_s14 = smov 0  }
   0xb LB: > { %2901 = sst [smem:[#allocation13_spill]] %s2314_s30  ;;  %s1770_s15 = sadd.s32 4294967295, %s2334_s14   ;;  %s2334_s14 = sphi %s2407_s14, %s26_s14   ;;  %s2330_s13 = sphi %s2405_s13, %s2928_s13   ;;  %s2326_s12 = sphi %s2403_s12, %s2927_s12   ;;  %s2322_s11 = sphi %s2401_s11, %s2926_s11   ;;  %s2318_s10 = sphi %s2399_s10, %s2925_s10   ;;  %s2314_s30 = sphi %s2397_s30, %s2924_s30  }
   0xc   : > { %s1771_s16 = sadd.s32 4294967294, %s2334_s14   ;;  %p60_p0 = scmp.ne.s32.totalorder %s2318_s10, %s2314_s30 }
   0xd   : > { %p2431_p1 = scmp.eq.s32.totalorder %s1770_s15, 0  ;;  %p2435_p2 = scmp.eq.s32.totalorder %s1770_s15, 1 }
   0xe   : > { %p277_p3 = scmp.eq.s32.totalorder %s1771_s16, 1  ;;  %p1772_p5 = scmp.ge.s32.totalorder %s2334_s14, 1 }
   0xf   : > { %s2902_s17 = scalar_select %p2431_p1, 1, 0 }
  0x10   : > { %s2903_s18 = scalar_select %p2435_p2, 1, 0 }
  0x11   : > { %p2441_p4 = por %p2431_p1, %p60_p0  ;;  %p2446_p6 = por %p277_p3, %p60_p0 }
  0x12   : > { %p284_p7 = scmp.lt.s32.totalorder %s2334_s14, 3  ;;  %s1773_s21 = sshll.u32 %s2326_s12, 7 }
  0x13   : > { %s2904_s19 = scalar_select %p2441_p4, 1, 0 }
  0x14   : > { %s2905_s20 = scalar_select %p2446_p6, 1, 0 }
  0x15   : > { %p2452_p8 = pnand %p1772_p5, %p284_p7  ;;  %s2908_s1 = sld [smem:[#allocation15_spill]] }
  0x16   : > { %2906 = sst [smem:[#allocation14_spill]] %s2905_s20  ;;  %s2336_s26 = smov [#allocation5]  }
  0x17   : > { %s2907_s22 = scalar_select %p2452_p8, 1, 0 }
  0x18   : > { %s299_s27 = sshll.u32 %s2336_s26, 4  ;;  %p2040_p9 = pneg %p2452_p8  ;;  %s300_s27 = int_to_ptr.vmem [resolvable:$true] %s299_s27 }
  0x19   : > { %s2337_s15 = smov [#allocation7]  }
  0x1a   : > { %p2466_p11 = pnand %p2040_p9, %p2441_p4  ;;  %p2472_p12 = pnand %p2040_p9, %p2431_p1 }
  0x1b   : > { %s2459_s25 = scalar_lea.hbm %s2908_s1, %s1773_s21  ;;  %s326_s16 = sshll.u32 %s2337_s15, 4  ;;  %s327_s16 = int_to_ptr.vmem [resolvable:$true] %s326_s16 }
  0x1c   : > { %s2910_s29 = scalar_select %p2472_p12, 1, 0 }
  0x1d   : > { %s2164_s21 = scalar_lea.hbm %s2459_s25, 128  ;;  %p2166_p0 = pneg %p2466_p11 }
  0x1e   : > { %p2165_p13 = scmp.ne.s32.totalorder %s2459_s25, %s2164_s21  ;;  %s2169_s26 = scalar_lea.hbm %s2908_s1, 256 }
  0x1f   : > { %p2170_p7 = scmp.lt.s32.totalorder %s2459_s25, %s2908_s1  ;;  %p2171_p9 = scmp.lt.s32.totalorder %s2169_s26, %s2164_s21 }
  0x20   : > { %p2167_p3 = pnand %p2166_p0, %p2165_p13 }
  0x21   : > { %p2172_p10 = por %p2171_p9, %p2170_p7 }
  0x22   : > { %p2168_p5 = pneg %p2167_p3 }
  0x24   : > { %p2173_p6 = pnand %p2172_p10, %p2168_p5 }
  0x26   : > { %2176 = shalt.err (!%p2173_p6)
}
  0x27   : > { %s2177_s9 = scalar_lea.vmem %s300_s27, 128  ;;  %p2185_p2 = scmp.lt.s32.totalorder %s300_s27, %s300_s27 }
  0x28   : > { %p2178_p1 = scmp.ne.s32.totalorder %s300_s27, %s2177_s9  ;;  %p2186_p12 = scmp.lt.s32.totalorder %s2177_s9, %s2177_s9 }
  0x2a   : > { %p2180_p4 = pnand %p2178_p1, %p2166_p0  ;;  %p2187_p13 = por %p2186_p12, %p2185_p2 }
  0x2c   : > { %p2181_p8 = pneg %p2180_p4 }
  0x2e   : > { %p2188_p3 = pnand %p2187_p13, %p2181_p8 }
  0x30   : > { %2191 = shalt.err (!%p2188_p3)
}
  0x31   : > { %2043 = dma.hbm_to_vmem [thread:$0]  (!%p2466_p11), %s2459_s25, 128, %s300_s27, [#allocation6]  }
  0x32   : > { %p2911_p7 = scmp.ne.s32.totalorder %s2910_s29, 0  ;;  %s2203_s30 = scalar_lea.vmem %s327_s16, 1024 }
  0x33   : > { %p2204_p10 = scmp.ne.s32.totalorder %s327_s16, %s2203_s30  ;;  %p2211_p0 = scmp.lt.s32.totalorder %s327_s16, %s327_s16 }
  0x34   : > { %p2194_p9 = pneg %p2911_p7  ;;  %p2212_p1 = scmp.lt.s32.totalorder %s2203_s30, %s2203_s30 }
  0x36   : > { %p2206_p6 = pnand %p2204_p10, %p2194_p9  ;;  %p2213_p4 = por %p2212_p1, %p2211_p0 }
  0x38   : > { %p2207_p5 = pneg %p2206_p6 }
  0x3a   : > { %p2214_p2 = pnand %p2213_p4, %p2207_p5 }
  0x3c   : > { %2217 = shalt.err (!%p2214_p2)
}
  0x3d   : > { %s2338_s9 = smov 64   ;;  %s2339_s20 = smov 4  }
  0x3e   : > { %s2912_s7 = sld [smem:[#allocation16_spill]]  ;;  %s38_s28 = sadd.s32 1, %s2330_s13 }
  0x3f   : > { %s47_s15 = sadd.s32 1, %s2322_s11  ;;  %p40_p8 = scmp.ge.s32.totalorder %s38_s28, 2 }
  0x40   : > { %p54_p11 = scmp.ne.s32.totalorder %s2322_s11, %s2318_s10  ;;  %p55_p12 = scmp.eq.s32.totalorder %s2334_s14, 0 }
  0x41   : > { %p2056_p13 = scmp.lt.s32.totalorder %s2334_s14, 2  ;;  %s2930_s28 = smov (%p40_p8, %s38_s28), 0 }
  0x42   : > { %p56_p3 = por %p55_p12, %p54_p11  ;;  %p2913_p9 = scmp.ne.s32.totalorder %s2903_s18, 0 }
  0x43   : > { %s42_s29 = ssub.s32 %s2330_s13, %s2930_s28  ;;  %s343_s23 = sand.u32 1, %s2322_s11  }
  0x44   : > { %2046 = dma.hbm_to_vmem [thread:$0]  (!%p2911_p7), %s2912_s7, 1024, %s327_s16, [#allocation6], %s2338_s9, %s2338_s9, %s2339_s20  }
  0x45   : > { %p2507_p10 = por %p2913_p9, %p54_p11  ;;  %p45_p6 = scmp.eq.s32.totalorder %s42_s29, 0 }
  0x46   : > { %s1776_s16 = sshll.u32 %s343_s23, 3  ;;  %s1777_s24 = sshll.u32 %s2330_s13, 7 }
  0x47   : > { %s2516_s26 = scalar_select %p45_p6, %s2322_s11, %s47_s15  }
  0x48   : > { %s353_s20 = scalar_lea.hbm %s2879_s0, %s1777_s24  ;;  %s347_s25 = scalar_lea.vmem [#allocation2], %s1776_s16 }
  0x49   : > { %s355_s27 = sshll.u32 %s347_s25, 4  ;;  %p2523_p7 = pnand %p2056_p13, %p56_p3  ;;  %s356_s27 = int_to_ptr.vmem [resolvable:$true] %s355_s27 }
  0x4a   : > { %s344_s1 = scalar_lea.sflag [#allocation3], %s343_s23  ;;  %s2231_s29 = scalar_lea.vmem %s356_s27, 128 }
  0x4b   : > { %p2220_p5 = pneg %p2523_p7  ;;  %p2232_p0 = scmp.ne.s32.totalorder %s356_s27, %s2231_s29 }
  0x4c   : > { %s2340_s15 = smov [#allocation2]  }
  0x4d   : > { %p2234_p1 = pnand %p2232_p0, %p2220_p5  ;;  %s2236_s7 = sshll.u32 %s2340_s15, 4  ;;  %s2237_s7 = int_to_ptr.vmem [resolvable:$false] %s2236_s7 }
  0x4e   : > { %s2238_s24 = scalar_lea.vmem %s2237_s7, 256  ;;  %p2239_p2 = scmp.lt.s32.totalorder %s356_s27, %s2237_s7 }
  0x4f   : > { %p2235_p4 = pneg %p2234_p1  ;;  %p2240_p8 = scmp.lt.s32.totalorder %s2238_s24, %s2231_s29 }
  0x51   : > { %p2241_p11 = por %p2240_p8, %p2239_p2 }
  0x53   : > { %p2242_p12 = pnand %p2241_p11, %p2235_p4 }
  0x55   : > { %2245 = shalt.err (!%p2242_p12)
}
  0x56   : > { %2050 = dma.hbm_to_vmem [thread:$0]  (!%p2523_p7), %s353_s20, 128, %s356_s27, %s344_s1  }
  0x57   : > { %p2916_p13 = scmp.ne.s32.totalorder %s2907_s22, 0 }
  0x58   : > { %s2534_s23 = sand.u32 (!%p2916_p13), 1, %s2318_s10   ;;  %p2917_p3 = scmp.ne.s32.totalorder (!%p2916_p13), %s2904_s19, 0 }
  0x59   : > { %375 = sbr.rel (%p2916_p13) target bundleno = 1166 (0x48e), region = 56  ;;  %s1779_s16 = sshll.u32 (!%p2916_p13), %s2534_s23, 3 }
  0x5a   : > { %s378_s30 = scalar_lea.sflag (!%p2916_p13), [#allocation3], %s2534_s23  ;;  %s381_s9 = scalar_lea.vmem (!%p2916_p13), [#allocation2], %s1779_s16 }
  0x5e   : > { %2297 = dma.done.wait (%p2917_p3), %s378_s30, 128  }
  0x5f   : > { %2299 = vsyncadd (%p2917_p3), %s378_s30, 4294967168 }
  0x60   : > { %2301 = dma.done.wait (%p2917_p3), [#allocation6], 128  }
  0x61   : > { %2303 = vsyncadd (%p2917_p3), [#allocation6], 4294967168  ;;  %p2918_p9 = scmp.ne.s32.totalorder %s2902_s17, 0 }
  0x63   : > { %2305 = dma.done.wait (%p2918_p9), [#allocation6], 1024  }
  0x64   : > { %2307 = vsyncadd (%p2918_p9), [#allocation6], 4294966272  ;;  %v2341_v0 = vmov 0.0   ;;  %vm2342_vm0 = vmmov 0   ;;  %vm470_vm1 = vcmask 64512   ;;  %v451_v1 = vld [vmem:[%s381_s9] sm:$0xff]  ;;  %v558_v23 = vlaneseq }
  0x65   : > { %1894 = vmatprep.subr.mxu1 %v2341_v0  ;;  %1896 = vmatprep.mubr.msk.f32.mxu1 %vm2342_vm0, %v2341_v0  ;;  %v452_v2 = vld [vmem:[#allocation5] sm:$0xff]  ;;  %v474_v5 = vmul.f32 %v451_v1, %v451_v1  ;;  %p437_p6 = scmp.lt.s32.totalorder %s2326_s12, 1  ;;  %s1834_s17 = sshll.u32 %s2326_s12, 11 }
  0x66   : > { %1895 = vmatpush3.msra.mxu1 %v451_v1  ;;  %v469_v3 = vmul.f32 %v452_v2, %v452_v2  ;;  %v2564_v26 = vshrl.u32 %v558_v23, 7  ;;  %s2919_s25 = sld [smem:[#allocation17_spill]]  ;;  %s2344_s29 = smov [#allocation8]  }
  0x67   : > { %1897 = vmatmul.mubr.msk.f32.vlgmr.msra.gmra.mxu1 %vm470_vm1, %v452_v2  ;;  %v475_v6 = vrot.slane %v474_v5, 4  ;;  %s2554_s1 = scalar_select %p437_p6, %s2326_s12, 1 }
  0x68   : > { %v471_v4 = vsel %vm470_vm1, %v469_v3, 0.0  ;;  %s1618_s12 = scalar_lea.sflag [#allocation4], %s2534_s23  ;;  %s2250_s15 = sshll.u32 %s2344_s29, 4  ;;  %s2251_s15 = int_to_ptr.vmem [resolvable:$false] %s2250_s15 }
  0x69   : > { %472 = vadd.xlane.f32.xlu0 %v471_v4  ;;  %v476_v7 = vadd.f32 %v475_v6, %v474_v5  ;;  %s1832_s7 = sshll.u32 %s2554_s1, 6  ;;  %s1833_s20 = sshll.u32 %s2554_s1, 7 }
  0x6a   : > { %s2560_s22 = scalar_lea.vmem %s2881_s2, %s1832_s7  ;;  %s2600_s18 = scalar_lea.vmem %s2882_s3, %s1833_s20 }
  0x6b   : > { %v477_v8 = vrot.slane %v476_v7, 2  ;;  %v2118_v9 = vld [vmem:[%s2560_s22] sm:$0xff]   ;;  %s1781_s1 = sshll.u32 %s2534_s23, 7  ;;  %s2252_s24 = scalar_lea.vmem %s2251_s15, 4096 }
  0x6c   : > { %1901 = vmatprep.mubr.msk.bf16.mxu1 %vm470_vm1, %v2118_v9  ;;  %s2804_s7 = scalar_lea.vmem [#allocation8], %s1781_s1  ;;  %s2827_s27 = scalar_lea.hbm %s2919_s25, %s1834_s17 }
  0x6d   : > { %v478_v10 = vadd.f32 %v477_v8, %v476_v7  ;;  %s1632_s19 = sshll.u32 %s2804_s7, 4  ;;  %s2829_s19 = int_to_ptr.vmem [resolvable:$true] %s1632_s19 }
  0x6e   : > { %p2253_p1 = scmp.lt.s32.totalorder %s2829_s19, %s2251_s15 }
  0x6f   : > { %v479_v11 = vrot.slane %v478_v10, 1 }
  0x71   : > { %v480_v15 = vadd.f32 %v479_v11, %v478_v10 }
  0xf2   : > { %v473_v13 = vpop.xlane.xlu0 %472 }
 0x127   : > { %v550_v12 = vpop.f32.mrf.mxu1 }
 0x128   : > { %v554_v14 = vmul.f32 2.0, %v550_v12 }
 0x129   : > { %v1898_v16 = vpop.f32.mrf.mxu1 }
 0x12a   : > { %v555_v17 = vsub.f32 %v473_v13, %v554_v14 }
 0x12c   : > { %v556_v18 = vadd.f32 %v555_v17, %v480_v15 }
 0x12e   : > { %v557_v19 = vmax.f32 %v556_v18, 0.0 }
 0x130   : > { %v560_v20 = vrot.slane %v557_v19, 4 }
 0x132   : > { %v561_v21 = vmin.f32 %v557_v19, %v560_v20 }
 0x134   : > { %v562_v22 = vrot.slane %v561_v21, 2 }
 0x136   : > { %v563_v24 = vmin.f32 %v561_v21, %v562_v22 }
 0x138   : > { %v564_v25 = vrot.slane %v563_v24, 1 }
 0x13a   : > { %v565_v27 = vmin.f32 %v563_v24, %v564_v25 }
 0x13c   : > { %vm566_vm2 = vcmp.eq.f32.partialorder %v557_v19, %v565_v27  ;;  %2150 = vrsqrt.f32 %v565_v27  ;;  %vm580_vm7 = vcmp.eq.f32.partialorder %v565_v27, inf  ;;  %v583_v38 = vand.u32 2147483648, %v565_v27 }
 0x13d   : > { %v567_v28 = vsel %vm566_vm2, %v2564_v26, 8  ;;  %vm582_vm8 = vcmp.eq.f32.partialorder %v565_v27, 0.0 }
 0x13e   : > { %v568_v29 = vrot.slane %v567_v28, 4 }
 0x140   : > { %vm569_vm3 = vcmp.lt.s32.totalorder %v567_v28, %v568_v29 }
 0x141   : > { %v570_v30 = vsel %vm569_vm3, %v567_v28, %v568_v29 }
 0x142   : > { %v571_v31 = vrot.slane %v570_v30, 2 }
 0x144   : > { %vm572_vm4 = vcmp.lt.s32.totalorder %v570_v30, %v571_v31 }
 0x145   : > { %v573_v32 = vsel %vm572_vm4, %v570_v30, %v571_v31  ;;  %v2119_v30 = vld [vmem:[%s2560_s22 + $0x8] sm:$0xff]   ;;  %v2120_v31 = vld [vmem:[%s2560_s22 + $0x10] sm:$0xff]  }
 0x146   : > { %v574_v33 = vrot.slane %v573_v32, 1 }
 0x148   : > { %vm575_vm5 = vcmp.lt.s32.totalorder %v573_v32, %v574_v33 }
 0x149   : > { %v2151_v34 = vpop.eup %2150  ;;  %v576_v35 = vsel %vm575_vm5, %v573_v32, %v574_v33  ;;  %v2122_v32 = vld [vmem:[%s2560_s22 + $0x20] sm:$0xff]   ;;  %v2123_v33 = vld [vmem:[%s2560_s22 + $0x28] sm:$0xff]  }
 0x14a   : > { %vm577_vm6 = vcmp.eq.s32.totalorder %v2564_v26, %v576_v35  ;;  %v579_v36 = vmul.f32 %v2151_v34, %v565_v27  ;;  %v2124_v34 = vld [vmem:[%s2560_s22 + $0x30] sm:$0xff]   ;;  %v2125_v35 = vld [vmem:[%s2560_s22 + $0x38] sm:$0xff]  }
 0x14b   : > { %v591_v37 = vsel %vm577_vm6, inf, %v557_v19 }
 0x14c   : > { %v592_v39 = vrot.slane %v591_v37, 4  ;;  %v581_v40 = vsel %vm580_vm7, %v565_v27, %v579_v36  ;;  %v860_v36 = vld [vmem:[%s2600_s18 + $0x70] sm:$0xff] }
 0x14d   : > { %v584_v41 = vsel %vm582_vm8, %v583_v38, %v581_v40  ;;  %vm720_vm8 = vcmask 1043456   ;;  %v859_v40 = vld [vmem:[%s2600_s18 + $0x68] sm:$0xff] }
 0x14e   : > { %v593_v42 = vmin.f32 %v591_v37, %v592_v39  ;;  %v585_v43 = vadd.f32 1e-08, %v584_v41  ;;  %v858_v39 = vld [vmem:[%s2600_s18 + $0x60] sm:$0xff] }
 0x14f   : > { %v868_v41 = vpack.c.bf16 %v859_v40, %v858_v39  ;;  %v1354_v39 = vld [vmem:[%s2887_s8 + $0x50] sm:$0xff] }
 0x150   : > { %v594_v44 = vrot.slane %v593_v42, 2  ;;  %2152 = vrcp.f32 %v585_v43  ;;  %v857_v43 = vld [vmem:[%s2600_s18 + $0x58] sm:$0xff] }
 0x152   : > { %v595_v45 = vmin.f32 %v593_v42, %v594_v44  ;;  %v856_v42 = vld [vmem:[%s2600_s18 + $0x50] sm:$0xff] }
 0x153   : > { %v867_v44 = vpack.c.bf16 %v857_v43, %v856_v42  ;;  %v1356_v42 = vld [vmem:[%s2887_s8 + $0x60] sm:$0xff] }
 0x154   : > { %v596_v46 = vrot.slane %v595_v45, 1 }
 0x156   : > { %v597_v47 = vmin.f32 %v595_v45, %v596_v46  ;;  %v854_v45 = vld [vmem:[%s2600_s18 + $0x40] sm:$0xff]  ;;  %v855_v46 = vld [vmem:[%s2600_s18 + $0x48] sm:$0xff] }
 0x158   : > { %vm598_vm9 = vcmp.eq.f32.partialorder %v591_v37, %v597_v47  ;;  %2154 = vrsqrt.f32 %v597_v47  ;;  %vm612_vm14 = vcmp.eq.f32.partialorder %v597_v47, inf  ;;  %v615_v59 = vand.u32 2147483648, %v597_v47 }
 0x159   : > { %v599_v48 = vsel %vm598_vm9, %v2564_v26, 8  ;;  %vm614_vm15 = vcmp.eq.f32.partialorder %v597_v47, 0.0 }
 0x15a   : > { %v600_v49 = vrot.slane %v599_v48, 4 }
 0x15c   : > { %vm601_vm10 = vcmp.lt.s32.totalorder %v599_v48, %v600_v49 }
 0x15d   : > { %v2153_v50 = vpop.eup %2152  ;;  %v602_v51 = vsel %vm601_vm10, %v599_v48, %v600_v49  ;;  %v852_v48 = vld [vmem:[%s2600_s18 + $0x30] sm:$0xff]  ;;  %v853_v49 = vld [vmem:[%s2600_s18 + $0x38] sm:$0xff] }
 0x15e   : > { %v588_v52 = vsel %vm577_vm6, %v2153_v50, 0.0  ;;  %v603_v53 = vrot.slane %v602_v51, 2 }
 0x160   : > { %vm604_vm11 = vcmp.lt.s32.totalorder %v602_v51, %v603_v53 }
 0x161   : > { %v605_v54 = vsel %vm604_vm11, %v602_v51, %v603_v53  ;;  %v850_v51 = vld [vmem:[%s2600_s18 + $0x20] sm:$0xff] }
 0x162   : > { %v606_v55 = vrot.slane %v605_v54, 1 }
 0x164   : > { %vm607_vm12 = vcmp.lt.s32.totalorder %v605_v54, %v606_v55 }
 0x165   : > { %v2155_v56 = vpop.eup %2154  ;;  %v608_v57 = vsel %vm607_vm12, %v605_v54, %v606_v55  ;;  %v848_v54 = vld [vmem:[%s2600_s18 + $0x10] sm:$0xff]  ;;  %v849_v55 = vld [vmem:[%s2600_s18 + $0x18] sm:$0xff] }
 0x166   : > { %vm609_vm13 = vcmp.eq.s32.totalorder %v2564_v26, %v608_v57  ;;  %v611_v58 = vmul.f32 %v2155_v56, %v597_v47  ;;  %v863_v56 = vpack.c.bf16 %v849_v55, %v848_v54  ;;  %v846_v57 = vld [vmem:[%s2600_s18] sm:$0xff] }
 0x167   : > { %v623_v60 = vsel %vm609_vm13, inf, %v591_v37  ;;  %v861_v37 = vld [vmem:[%s2600_s18 + $0x78] sm:$0xff] }
 0x168   : > { %v613_v61 = vsel %vm612_vm14, %v597_v47, %v611_v58  ;;  %v624_v62 = vrot.slane %v623_v60, 4  ;;  %v869_v38 = vpack.c.bf16 %v861_v37, %v860_v36  ;;  %v866_v47 = vpack.c.bf16 %v855_v46, %v854_v45  ;;  %v847_v58 = vld [vmem:[%s2600_s18 + $0x8] sm:$0xff]  ;;  %v1359_v37 = vld [vmem:[%s2887_s8 + $0x78] sm:$0xff]  ;;  %v1358_v45 = vld [vmem:[%s2887_s8 + $0x70] sm:$0xff] }
 0x169   : > { %v616_v63 = vsel %vm614_vm15, %v615_v59, %v613_v61  ;;  %v862_v59 = vpack.c.bf16 %v847_v58, %v846_v57  ;;  %v2127_v61 = vld [vmem:[%s2884_s5 + $0x8] sm:$0xff]  }
 0x16a   : > { %v617_v0 = vadd.f32 1e-08, %v616_v63  ;;  %v625_v1 = vmin.f32 %v623_v60, %v624_v62  ;;  %1917 = vmatprep.subr.bf16.mxu0 %v869_v38  ;;  %v1207_v62 = vld [vmem:[%s2885_s6 + $0x78] sm:$0xff]  ;;  %v2128_v63 = vld [vmem:[%s2883_s4] sm:$0xff]  }
 0x16b   : > { %1918 = vmatpush3.bf16.msra.mxu0 %v869_v38 }
 0x16c   : > { %2156 = vrcp.f32 %v617_v0  ;;  %v626_v2 = vrot.slane %v625_v1, 2  ;;  %1919 = vmatprep.subr.bf16.mxu0 %v868_v41  ;;  %v2343_v0 = vmov 0  }
 0x16d   : > { %2117 = vset.pattern.permute.xlu1 %v2343_v0  ;;  %2116 = vset.pattern.permute.xlu0 %v2343_v0 }
 0x16e   : > { %v627_v3 = vmin.f32 %v625_v1, %v626_v2  ;;  %1285 = vperm.xlu1 %2117, %v1207_v62   ;;  %v2130_v1 = vld [vmem:[%s2884_s5 + $0x10] sm:$0xff]   ;;  %v2131_v2 = vld [vmem:[%s2884_s5 + $0x18] sm:$0xff]  }
 0x16f   : > { %1920 = vmatpush3.bf16.msra.mxu0 %v868_v41 }
 0x170   : > { %v628_v4 = vrot.slane %v627_v3, 1  ;;  %1921 = vmatprep.subr.bf16.mxu0 %v867_v44 }
 0x172   : > { %v629_v5 = vmin.f32 %v627_v3, %v628_v4  ;;  %v1204_v3 = vld [vmem:[%s2885_s6 + $0x60] sm:$0xff]  ;;  %v1205_v4 = vld [vmem:[%s2885_s6 + $0x68] sm:$0xff] }
 0x173   : > { %1922 = vmatpush3.bf16.msra.mxu0 %v867_v44  ;;  %1270 = vperm.xlu1 %2117, %v1204_v3  }
 0x174   : > { %vm630_vm0 = vcmp.eq.f32.partialorder %v623_v60, %v629_v5  ;;  %2158 = vrsqrt.f32 %v629_v5  ;;  %vm644_vm3 = vcmp.eq.f32.partialorder %v629_v5, inf  ;;  %v647_v16 = vand.u32 2147483648, %v629_v5  ;;  %1923 = vmatprep.subr.bf16.mxu0 %v866_v47  ;;  %v2126_v60 = vld [vmem:[%s2884_s5] sm:$0xff]  }
 0x175   : > { %v631_v6 = vsel %vm630_vm0, %v2564_v26, 8  ;;  %vm646_vm4 = vcmp.eq.f32.partialorder %v629_v5, 0.0  ;;  %1933 = vmatprep.mubr.bf16.mxu0 %v2126_v60 }
 0x176   : > { %v632_v7 = vrot.slane %v631_v6, 4 }
 0x177   : > { %1924 = vmatpush3.bf16.msra.mxu0 %v866_v47  ;;  %1275 = vperm.xlu1 %2117, %v1205_v4  }
 0x178   : > { %vm633_vm2 = vcmp.lt.s32.totalorder %v631_v6, %v632_v7 }
 0x179   : > { %v2157_v8 = vpop.eup %2156  ;;  %v634_v12 = vsel %vm633_vm2, %v631_v6, %v632_v7  ;;  %v2135_v6 = vld [vmem:[%s2884_s5 + $0x28] sm:$0xff]   ;;  %v1202_v7 = vld [vmem:[%s2885_s6 + $0x50] sm:$0xff] }
 0x17a   : > { %v620_v9 = vsel %vm609_vm13, %v2157_v8, 0.0  ;;  %v622_v10 = vadd.f32 %v2157_v8, %v2153_v50  ;;  %v635_v14 = vrot.slane %v634_v12, 2  ;;  %v865_v50 = vpack.c.bf16 %v853_v49, %v852_v48  ;;  %v1203_v8 = vld [vmem:[%s2885_s6 + $0x58] sm:$0xff] }
 0x17b   : > { %v621_v11 = vadd.f32 %v620_v9, %v588_v52  ;;  %v851_v52 = vld [vmem:[%s2600_s18 + $0x28] sm:$0xff]  ;;  %1260 = vperm.xlu1 %2117, %v1202_v7   ;;  %v2138_v9 = vld [vmem:[%s2884_s5 + $0x30] sm:$0xff]   ;;  %s2246_s18 = scalar_lea.vmem %s2829_s19, 2048 }
 0x17c   : > { %vm636_vm5 = vcmp.lt.s32.totalorder %v634_v12, %v635_v14  ;;  %1925 = vmatprep.subr.bf16.mxu0 %v865_v50  ;;  %v864_v53 = vpack.c.bf16 %v851_v52, %v850_v51  ;;  %p2247_p7 = scmp.ne.s32.totalorder %s2829_s19, %s2246_s18  ;;  %p2254_p4 = scmp.lt.s32.totalorder %s2252_s24, %s2246_s18 }
 0x17d   : > { %v637_v20 = vsel %vm636_vm5, %v634_v12, %v635_v14  ;;  %1926 = vmatpush3.bf16.msra.mxu0 %v865_v50  ;;  %v1201_v12 = vld [vmem:[%s2885_s6 + $0x48] sm:$0xff]  ;;  %v1206_v14 = vld [vmem:[%s2885_s6 + $0x70] sm:$0xff] }
 0x17e   : > { %v638_v21 = vrot.slane %v637_v20, 1  ;;  %1927 = vmatprep.subr.bf16.mxu0 %v864_v53  ;;  %1280 = vperm.xlu0 %2116, %v1206_v14   ;;  %p2248_p5 = pnand %p2247_p7, %p2507_p10  ;;  %p2255_p2 = por %p2254_p4, %p2253_p1 }
 0x17f   : > { %1265 = vperm.xlu1 %2117, %v1203_v8  }
 0x180   : > { %vm639_vm6 = vcmp.lt.s32.totalorder %v637_v20, %v638_v21  ;;  %p2249_p0 = pneg %p2248_p5 }
 0x181   : > { %v2159_v13 = vpop.eup %2158  ;;  %v640_v22 = vsel %vm639_vm6, %v637_v20, %v638_v21  ;;  %1928 = vmatpush3.bf16.msra.mxu0 %v864_v53  ;;  %v1345_v20 = vld [vmem:[%s2887_s8 + $0x8] sm:$0xff]  ;;  %v1194_v21 = vld [vmem:[%s2885_s6 + $0x10] sm:$0xff] }
 0x182   : > { %v643_v15 = vmul.f32 %v2159_v13, %v629_v5  ;;  %vm641_vm7 = vcmp.eq.s32.totalorder %v2564_v26, %v640_v22  ;;  %v2121_v26 = vld [vmem:[%s2560_s22 + $0x18] sm:$0xff]   ;;  %1929 = vmatprep.subr.bf16.mxu0 %v863_v56  ;;  %v1198_v13 = vld [vmem:[%s2885_s6 + $0x30] sm:$0xff]  ;;  %p2256_p8 = pnand %p2255_p2, %p2249_p0 }
 0x183   : > { %v1347_v22 = vld [vmem:[%s2887_s8 + $0x18] sm:$0xff] }
 0x184   : > { %v645_v17 = vsel %vm644_vm3, %v629_v5, %v643_v15  ;;  %v2134_v5 = vld [vmem:[%s2884_s5 + $0x20] sm:$0xff]   ;;  %v1199_v15 = vld [vmem:[%s2885_s6 + $0x38] sm:$0xff] }
 0x185   : > { %v648_v18 = vsel %vm646_vm4, %v647_v16, %v645_v17  ;;  %1930 = vmatpush3.bf16.msra.mxu0 %v863_v56  ;;  %v1195_v16 = vld [vmem:[%s2885_s6 + $0x18] sm:$0xff]  ;;  %v1196_v17 = vld [vmem:[%s2885_s6 + $0x20] sm:$0xff] }
 0x186   : > { %v649_v19 = vadd.f32 1e-08, %v648_v18  ;;  %1931 = vmatprep.subr.bf16.mxu0 %v862_v59  ;;  %1225 = vperm.xlu0 %2116, %v1195_v16   ;;  %v1193_v18 = vld [vmem:[%s2885_s6 + $0x8] sm:$0xff]  ;;  %v2132_v16 = vld [vmem:[%s2883_s4 + $0x10] sm:$0xff]  }
 0x188   : > { %2160 = vrcp.f32 %v649_v19  ;;  %v1197_v19 = vld [vmem:[%s2885_s6 + $0x28] sm:$0xff] }
 0x189   : > { %1932 = vmatpush3.bf16.msra.mxu0 %v862_v59 }
 0x18a   : > { %1215 = vperm.xlu0 %2116, %v1193_v18   ;;  %v2136_v18 = vld [vmem:[%s2883_s4 + $0x20] sm:$0xff]  }
 0x18c   : > { %1934 = vmatmul.mubr.bf16.vlgmr.msra.gmra.mxu0 %v2127_v61 }
 0x18d   : > { %1937 = vmatprep.mubr.bf16.mxu0 %v2130_v1 }
 0x18e   : > { %1367 = vperm.xlu0 %2116, %v1345_v20   ;;  %v2140_v20 = vld [vmem:[%s2883_s4 + $0x30] sm:$0xff]  }
 0x192   : > { %1377 = vperm.xlu0 %2116, %v1347_v22   ;;  %v2142_v22 = vld [vmem:[#allocation7] sm:$0xff]  }
 0x194   : > { %1938 = vmatmul.mubr.bf16.gmra.mxu0 %v2131_v2 }
 0x195   : > { %v2161_v23 = vpop.eup %2160  ;;  %1941 = vmatprep.mubr.bf16.mxu0 %v2134_v5 }
 0x196   : > { %v652_v24 = vsel %vm641_vm7, %v2161_v23, 0.0  ;;  %v2580_v25 = vadd.f32 %v2161_v23, %v622_v10  ;;  %v2139_v10 = vld [vmem:[%s2884_s5 + $0x38] sm:$0xff]   ;;  %v1192_v23 = vld [vmem:[%s2885_s6] sm:$0xff] }
 0x197   : > { %v653_v27 = vadd.f32 %v652_v24, %v621_v11  ;;  %v1200_v11 = vld [vmem:[%s2885_s6 + $0x40] sm:$0xff]  ;;  %v1349_v24 = vld [vmem:[%s2887_s8 + $0x28] sm:$0xff] }
 0x198   : > { %1250 = vperm.xlu1 %2117, %v1200_v11   ;;  %1387 = vperm.xlu0 %2116, %v1349_v24   ;;  %2162 = vrcp.f32 %v2580_v25 }
 0x199   : > { %v655_v28 = vpack.c.bf16 %v653_v27, %v653_v27  ;;  %v1344_v27 = vld [vmem:[%s2887_s8] sm:$0xff] }
 0x19b   : > { %2029 = vmatprep.subr.msk.bf16.mxu1 %vm720_vm8, %v655_v28  ;;  %v722_v29 = vsel %vm720_vm8, %v655_v28, 0  ;;  %v1351_v28 = vld [vmem:[%s2887_s8 + $0x38] sm:$0xff] }
 0x19c   : > { %1900 = vmatpush3.bf16.msra.mxu1 %v722_v29  ;;  %1942 = vmatmul.mubr.bf16.gmra.mxu0 %v2135_v6  ;;  %v1346_v29 = vld [vmem:[%s2887_s8 + $0x10] sm:$0xff] }
 0x19d   : > { %1945 = vmatprep.mubr.bf16.mxu0 %v2138_v9  ;;  %1255 = vperm.xlu1 %2117, %v1201_v12  }
 0x19e   : > { %1397 = vperm.xlu0 %2116, %v1351_v28  }
 0x19f   : > { %1902 = vmatmul.mubr.msk.bf16.vlgmr.msra.gmra.mxu1 %vm470_vm1, %v2119_v30  ;;  %v1353_v30 = vld [vmem:[%s2887_s8 + $0x48] sm:$0xff] }
 0x1a0   : > { %1905 = vmatprep.mubr.msk.bf16.mxu1 %vm470_vm1, %v2120_v31  ;;  %v1348_v31 = vld [vmem:[%s2887_s8 + $0x20] sm:$0xff] }
 0x1a1   : > { %1240 = vperm.xlu1 %2117, %v1198_v13  }
 0x1a2   : > { %1407 = vperm.xlu0 %2116, %v1353_v30  }
 0x1a4   : > { %1946 = vmatmul.mubr.bf16.gmra.mxu0 %v2139_v10 }
 0x1a5   : > { %1245 = vperm.xlu1 %2117, %v1199_v15   ;;  %v2163_v53 = vpop.eup %2162  ;;  %v2129_v15 = vld [vmem:[%s2883_s4 + $0x8] sm:$0xff]   ;;  %1997 = vmatprep.mubr.bf16.mxu0 %v2142_v22 }
 0x1a7   : > { %1906 = vmatmul.mubr.msk.bf16.gmra.mxu1 %vm470_vm1, %v2121_v26  ;;  %v1355_v26 = vld [vmem:[%s2887_s8 + $0x58] sm:$0xff] }
 0x1a8   : > { %1909 = vmatprep.mubr.msk.bf16.mxu1 %vm470_vm1, %v2122_v32  ;;  %v1350_v32 = vld [vmem:[%s2887_s8 + $0x30] sm:$0xff]  ;;  %1417 = vperm.xlu0 %2116, %v1355_v26  }
 0x1a9   : > { %1230 = vperm.xlu1 %2117, %v1196_v17   ;;  %v2133_v17 = vld [vmem:[%s2883_s4 + $0x18] sm:$0xff]  }
 0x1ad   : > { %1235 = vperm.xlu1 %2117, %v1197_v19   ;;  %v2137_v19 = vld [vmem:[%s2883_s4 + $0x28] sm:$0xff]  }
 0x1af   : > { %1910 = vmatmul.mubr.msk.bf16.gmra.mxu1 %vm470_vm1, %v2123_v33  ;;  %v1357_v33 = vld [vmem:[%s2887_s8 + $0x68] sm:$0xff] }
 0x1b0   : > { %1913 = vmatprep.mubr.msk.bf16.mxu1 %vm470_vm1, %v2124_v34  ;;  %1427 = vperm.xlu0 %2116, %v1357_v33  }
 0x1b1   : > { %1220 = vperm.xlu1 %2117, %v1194_v21   ;;  %v2141_v21 = vld [vmem:[%s2883_s4 + $0x38] sm:$0xff]  }
 0x1b4   : > { %1437 = vperm.xlu0 %2116, %v1359_v37  }
 0x1b5   : > { %1210 = vperm.xlu1 %2117, %v1192_v23   ;;  %v2143_v23 = vld [vmem:[#allocation7 + $0x30] sm:$0xff]  }
 0x1b7   : > { %1914 = vmatmul.mubr.msk.bf16.gmra.mxu1 %vm470_vm1, %v2125_v35  ;;  %v1352_v35 = vld [vmem:[%s2887_s8 + $0x40] sm:$0xff] }
 0x1b8   : > { %1965 = vmatprep.mubr.bf16.mxu1 %v2128_v63 }
 0x1b9   : > { %1362 = vperm.xlu1 %2117, %v1344_v27  }
 0x1bd   : > { %1372 = vperm.xlu1 %2117, %v1346_v29  }
 0x1c1   : > { %1382 = vperm.xlu1 %2117, %v1348_v31  }
 0x1c5   : > { %1392 = vperm.xlu1 %2117, %v1350_v32  }
 0x1c9   : > { %1402 = vperm.xlu1 %2117, %v1352_v35  }
 0x1cd   : > { %1412 = vperm.xlu1 %2117, %v1354_v39  }
 0x1d1   : > { %1422 = vperm.xlu1 %2117, %v1356_v42  }
 0x1d5   : > { %1432 = vperm.xlu1 %2117, %v1358_v45  }
 0x1e9   : > { %v1286_v29 = vpop.permute.xlu1 %1285 }
 0x1ee   : > { %v1271_v26 = vpop.permute.xlu1 %1270 }
 0x1f2   : > { %v1276_v33 = vpop.permute.xlu1 %1275 }
 0x24c   : > { %v2763_v24 = vpop.f32.mrf.mxu0 }
 0x24e   : > { %v2765_v27 = vpop.f32.mrf.mxu0 }
 0x250   : > { %v2767_v28 = vpop.f32.mrf.mxu0 }
 0x252   : > { %v2769_v30 = vpop.f32.mrf.mxu0 }
 0x254   : > { %v2771_v31 = vpop.f32.mrf.mxu0 }
 0x256   : > { %v2773_v32 = vpop.f32.mrf.mxu0 }
 0x25f   : > { %v1903_v34 = vpop.f32.mrf.mxu1 }
 0x260   : > { %v824_v10 = vmul.f32 %v2163_v53, %v1903_v34  ;;  %v1940_v34 = vpop.f32.mrf.mxu0 }
 0x261   : > { %v758_v36 = vpop.f32.mrf.mxu1 }
 0x262   : > { %v822_v13 = vmul.f32 %v2163_v53, %v758_v36  ;;  %v2775_v35 = vpop.f32.mrf.mxu0  ;;  %v1261_v36 = vpop.permute.xlu1 %1260 }
 0x263   : > { %v1904_v38 = vpop.f32.mrf.mxu1 }
 0x264   : > { %v825_v8 = vmul.f32 %v2163_v53, %v1904_v38  ;;  %v1943_v39 = vpop.f32.mrf.mxu0 }
 0x265   : > { %v761_v40 = vpop.f32.mrf.mxu1 }
 0x266   : > { %v839_v11 = vpack.c.bf16 %v825_v8, %v824_v10  ;;  %v823_v12 = vmul.f32 %v2163_v53, %v761_v40 }
 0x267   : > { %v1907_v41 = vpop.f32.mrf.mxu1 }
 0x268   : > { %v828_v4 = vmul.f32 %v2163_v53, %v1907_v41  ;;  %v838_v14 = vpack.c.bf16 %v823_v12, %v822_v13  ;;  %v1266_v41 = vpop.permute.xlu1 %1265 }
 0x269   : > { %v774_v43 = vpop.f32.mrf.mxu1 }
 0x26a   : > { %v826_v7 = vmul.f32 %v2163_v53, %v774_v43  ;;  %v1016_v43 = vpop.f32.mrf.mxu0 }
 0x26b   : > { %v1908_v44 = vpop.f32.mrf.mxu1 }
 0x26c   : > { %v829_v2 = vmul.f32 %v2163_v53, %v1908_v44 }
 0x26d   : > { %v777_v46 = vpop.f32.mrf.mxu1 }
 0x26e   : > { %v841_v5 = vpack.c.bf16 %v829_v2, %v828_v4  ;;  %v827_v6 = vmul.f32 %v2163_v53, %v777_v46  ;;  %v1944_v46 = vpop.f32.mrf.mxu0 }
 0x26f   : > { %v1911_v47 = vpop.f32.mrf.mxu1 }
 0x270   : > { %v832_v25 = vmul.f32 %v2163_v53, %v1911_v47  ;;  %v840_v9 = vpack.c.bf16 %v827_v6, %v826_v7  ;;  %v1251_v47 = vpop.permute.xlu1 %1250 }
 0x271   : > { %v790_v48 = vpop.f32.mrf.mxu1 }
 0x272   : > { %v830_v1 = vmul.f32 %v2163_v53, %v790_v48 }
 0x273   : > { %v1912_v49 = vpop.f32.mrf.mxu1 }
 0x274   : > { %v833_v61 = vmul.f32 %v2163_v53, %v1912_v49 }
 0x275   : > { %v793_v50 = vpop.f32.mrf.mxu1 }
 0x276   : > { %v843_v63 = vpack.c.bf16 %v833_v61, %v832_v25  ;;  %v831_v0 = vmul.f32 %v2163_v53, %v793_v50  ;;  %v1019_v50 = vpop.f32.mrf.mxu0 }
 0x277   : > { %v1915_v51 = vpop.f32.mrf.mxu1 }
 0x278   : > { %v836_v55 = vmul.f32 %v2163_v53, %v1915_v51  ;;  %v842_v3 = vpack.c.bf16 %v831_v0, %v830_v1 }
 0x279   : > { %v806_v52 = vpop.f32.mrf.mxu1 }
 0x27a   : > { %v834_v58 = vmul.f32 %v2163_v53, %v806_v52  ;;  %v1256_v52 = vpop.permute.xlu1 %1255 }
 0x27b   : > { %v1916_v54 = vpop.f32.mrf.mxu1 }
 0x27c   : > { %v837_v56 = vmul.f32 %v2163_v53, %v1916_v54 }
 0x27d   : > { %v809_v57 = vpop.f32.mrf.mxu1 }
 0x27e   : > { %v845_v59 = vpack.c.bf16 %v837_v56, %v836_v55  ;;  %v835_v60 = vmul.f32 %v2163_v53, %v809_v57  ;;  %v1947_v53 = vpop.f32.mrf.mxu0 }
 0x280   : > { %v844_v62 = vpack.c.bf16 %v835_v60, %v834_v58  ;;  %1949 = vmatprep.subr.bf16.mxu1 %v845_v59  ;;  %v1032_v56 = vpop.f32.mrf.mxu0  ;;  %v1241_v58 = vpop.permute.xlu1 %1240 }
 0x281   : > { %1950 = vmatpush3.bf16.msra.mxu1 %v845_v59 }
 0x282   : > { %1951 = vmatprep.subr.bf16.mxu1 %v844_v62  ;;  %v1948_v61 = vpop.f32.mrf.mxu0 }
 0x284   : > { %v1246_v2 = vpop.permute.xlu1 %1245  ;;  %v1035_v6 = vpop.f32.mrf.mxu0 }
 0x285   : > { %1952 = vmatpush3.bf16.msra.mxu1 %v844_v62 }
 0x286   : > { %1953 = vmatprep.subr.bf16.mxu1 %v843_v63 }
 0x289   : > { %1954 = vmatpush3.bf16.msra.mxu1 %v843_v63  ;;  %v1281_v63 = vpop.permute.xlu0 %1280 }
 0x28a   : > { %1955 = vmatprep.subr.bf16.mxu1 %v842_v3 }
 0x28d   : > { %1956 = vmatpush3.bf16.msra.mxu1 %v842_v3 }
 0x28e   : > { %1957 = vmatprep.subr.bf16.mxu1 %v841_v5 }
 0x291   : > { %1958 = vmatpush3.bf16.msra.mxu1 %v841_v5 }
 0x292   : > { %1959 = vmatprep.subr.bf16.mxu1 %v840_v9 }
 0x295   : > { %1960 = vmatpush3.bf16.msra.mxu1 %v840_v9 }
 0x296   : > { %1961 = vmatprep.subr.bf16.mxu1 %v839_v11 }
 0x299   : > { %1962 = vmatpush3.bf16.msra.mxu1 %v839_v11 }
 0x29a   : > { %1963 = vmatprep.subr.bf16.mxu1 %v838_v14 }
 0x29d   : > { %1964 = vmatpush3.bf16.msra.mxu1 %v838_v14 }
 0x2a0   : > { %1966 = vmatmul.mubr.bf16.vlgmr.msra.gmra.mxu1 %v2129_v15 }
 0x2a1   : > { %1969 = vmatprep.mubr.bf16.mxu1 %v2132_v16 }
 0x2a8   : > { %1970 = vmatmul.mubr.bf16.gmra.mxu1 %v2133_v17 }
 0x2a9   : > { %1973 = vmatprep.mubr.bf16.mxu1 %v2136_v18 }
 0x2b0   : > { %1974 = vmatmul.mubr.bf16.gmra.mxu1 %v2137_v19 }
 0x2b1   : > { %1977 = vmatprep.mubr.bf16.mxu1 %v2140_v20 }
 0x2b8   : > { %1978 = vmatmul.mubr.bf16.gmra.mxu1 %v2141_v21  ;;  %v1231_v21 = vpop.permute.xlu1 %1230 }
 0x2b9   : > { %2009 = vmatprep.mubr.bf16.mxu1 %v2143_v23 }
 0x360   : > { %v2777_v37 = vpop.f32.mrf.mxu1 }
 0x362   : > { %v2779_v38 = vpop.f32.mrf.mxu1 }
 0x364   : > { %v2781_v40 = vpop.f32.mrf.mxu1 }
 0x366   : > { %v2783_v42 = vpop.f32.mrf.mxu1 }
 0x368   : > { %v1971_v44 = vpop.f32.mrf.mxu1 }
 0x36a   : > { %v2785_v45 = vpop.f32.mrf.mxu1 }
 0x36c   : > { %v1972_v48 = vpop.f32.mrf.mxu1 }
 0x36d   : > { %v1157_v22 = vadd.f32 %v1972_v48, %v1940_v34  ;;  %v1146_v48 = vadd.f32 %v2785_v45, %v2773_v32 }
 0x36e   : > { %v1148_v49 = vpop.f32.mrf.mxu1 }
 0x370   : > { %v1975_v51 = vpop.f32.mrf.mxu1 }
 0x371   : > { %v1170_v5 = vadd.f32 %v1975_v51, %v1943_v39  ;;  %v1236_v51 = vpop.permute.xlu1 %1235 }
 0x372   : > { %v1161_v54 = vpop.f32.mrf.mxu1 }
 0x373   : > { %v1298_v16 = vadd.f32 %v1261_v36, %v1170_v5  ;;  %v1162_v17 = vadd.f32 %v1161_v54, %v1016_v43  ;;  %v1149_v36 = vadd.f32 %v1148_v49, %v2775_v35  ;;  %v1226_v54 = vpop.permute.xlu0 %1225  ;;  %v1138_v35 = vadd.f32 %v2777_v37, %v2763_v24  ;;  %v2149_v5 = vld [vmem:[#allocation7 + $0x28] sm:$0xff]  }
 0x374   : > { %v1976_v55 = vpop.f32.mrf.mxu1 }
 0x375   : > { %v1173_v0 = vadd.f32 %v1976_v55, %v1944_v46  ;;  %v1292_v55 = vadd.f32 %v1231_v21, %v1146_v48  ;;  %v1221_v32 = vpop.permute.xlu1 %1220 }
 0x376   : > { %v1164_v57 = vpop.f32.mrf.mxu1 }
 0x377   : > { %v1299_v11 = vadd.f32 %v1266_v41, %v1173_v0  ;;  %v1165_v12 = vadd.f32 %v1164_v57, %v1019_v50  ;;  %v1296_v41 = vadd.f32 %v1251_v47, %v1162_v17  ;;  %v1293_v47 = vadd.f32 %v1236_v51, %v1149_v36  ;;  %v1216_v24 = vpop.permute.xlu0 %1215 }
 0x378   : > { %v1979_v59 = vpop.f32.mrf.mxu1 }
 0x379   : > { %v1186_v60 = vadd.f32 %v1979_v59, %v1947_v53  ;;  %v1315_v23 = vmax.f32 %v1299_v11, 0.0  ;;  %v1297_v46 = vadd.f32 %v1256_v52, %v1165_v12  ;;  %v1312_v52 = vmax.f32 %v1296_v41, 0.0 }
 0x37a   : > { %v1177_v62 = vpop.f32.mrf.mxu1  ;;  %v1308_v59 = vmax.f32 %v1292_v55, 0.0 }
 0x37b   : > { %v1178_v25 = vadd.f32 %v1177_v62, %v1032_v56  ;;  %v1302_v3 = vadd.f32 %v1281_v63, %v1186_v60  ;;  %v1313_v50 = vmax.f32 %v1297_v46, 0.0  ;;  %v1133_v56 = vadd.f32 %v2783_v42, %v2769_v30  ;;  %v1211_v62 = vpop.permute.xlu1 %1210 }
 0x37c   : > { %v1980_v1 = vpop.f32.mrf.mxu1 }
 0x37d   : > { %v1189_v4 = vadd.f32 %v1980_v1, %v1948_v61  ;;  %v1300_v8 = vadd.f32 %v1271_v26, %v1178_v25  ;;  %v1318_v13 = vmax.f32 %v1302_v3, 0.0  ;;  %v1314_v26 = vmax.f32 %v1298_v16, 0.0  ;;  %v2145_v1 = vld [vmem:[#allocation7 + $0x38] sm:$0xff]  }
 0x37e   : > { %v1180_v7 = vpop.f32.mrf.mxu1  ;;  %v1340_v53 = vpack.c.bf16 %v1313_v50, %v1312_v52  ;;  %v1289_v60 = vadd.f32 %v1216_v24, %v1133_v56  ;;  %v2147_v3 = vld [vmem:[#allocation7 + $0x18] sm:$0xff]  }
 0x37f   : > { %v1303_v9 = vadd.f32 %v1286_v29, %v1189_v4  ;;  %v1181_v10 = vadd.f32 %v1180_v7, %v1035_v6  ;;  %v1316_v18 = vmax.f32 %v1300_v8, 0.0  ;;  %v1154_v29 = vadd.f32 %v1971_v44, %v2771_v31  ;;  %v2148_v4 = vld [vmem:[#allocation7 + $0x20] sm:$0xff]   ;;  %v1363_v6 = vpop.permute.xlu1 %1362  ;;  %v1368_v7 = vpop.permute.xlu0 %1367 }
 0x380   : > { %v1341_v43 = vpack.c.bf16 %v1315_v23, %v1314_v26  ;;  %v1141_v31 = vadd.f32 %v2781_v40, %v2767_v28  ;;  %v1309_v28 = vmax.f32 %v1293_v47, 0.0  ;;  %v1290_v40 = vadd.f32 %v1221_v32, %v1138_v35 }
 0x381   : > { %v1319_v14 = vmax.f32 %v1303_v9, 0.0  ;;  %v1301_v15 = vadd.f32 %v1276_v33, %v1181_v10  ;;  %v1295_v33 = vadd.f32 %v1246_v2, %v1157_v22  ;;  %v1294_v34 = vadd.f32 %v1241_v58, %v1154_v29  ;;  %v2146_v2 = vld [vmem:[#allocation7 + $0x10] sm:$0xff]  }
 0x382   : > { %v1291_v45 = vadd.f32 %v1226_v54, %v1141_v31  ;;  %v1130_v58 = vadd.f32 %v2779_v38, %v2765_v27  ;;  %v1338_v61 = vpack.c.bf16 %v1309_v28, %v1308_v59  ;;  %v1306_v25 = vmax.f32 %v1290_v40, 0.0  ;;  %v2144_v38 = vld [vmem:[#allocation7 + $0x8] sm:$0xff]  }
 0x383   : > { %v1343_v19 = vpack.c.bf16 %v1319_v14, %v1318_v13  ;;  %v1317_v20 = vmax.f32 %v1301_v15, 0.0  ;;  %v1311_v44 = vmax.f32 %v1295_v33, 0.0  ;;  %v1310_v49 = vmax.f32 %v1294_v34, 0.0  ;;  %v1373_v8 = vpop.permute.xlu1 %1372  ;;  %v1378_v9 = vpop.permute.xlu0 %1377 }
 0x384   : > { %v1307_v37 = vmax.f32 %v1291_v45, 0.0  ;;  %v1288_v30 = vadd.f32 %v1211_v62, %v1130_v58  ;;  %v1305_v63 = vmax.f32 %v1289_v60, 0.0 }
 0x385   : > { %v1342_v39 = vpack.c.bf16 %v1317_v20, %v1316_v18  ;;  %1981 = vmatprep.subr.bf16.mxu0 %v1343_v19  ;;  %2013 = vmatprep.subr.bf16.mxu1 %v1343_v19  ;;  %v1339_v57 = vpack.c.bf16 %v1311_v44, %v1310_v49 }
 0x386   : > { %1982 = vmatpush3.bf16.msra.mxu0 %v1343_v19  ;;  %2021 = vmatpush3.bf16.msra.mxu1 %v1343_v19  ;;  %v1337_v42 = vpack.c.bf16 %v1307_v37, %v1306_v25  ;;  %v1304_v0 = vmax.f32 %v1288_v30, 0.0 }
 0x387   : > { %1983 = vmatprep.subr.bf16.mxu0 %v1342_v39  ;;  %2014 = vmatprep.subr.bf16.mxu1 %v1342_v39  ;;  %v1383_v10 = vpop.permute.xlu1 %1382  ;;  %v1388_v11 = vpop.permute.xlu0 %1387 }
 0x388   : > { %v1336_v27 = vpack.c.bf16 %v1305_v63, %v1304_v0 }
 0x38a   : > { %1984 = vmatpush3.bf16.msra.mxu0 %v1342_v39  ;;  %2022 = vmatpush3.bf16.msra.mxu1 %v1342_v39 }
 0x38b   : > { %1985 = vmatprep.subr.bf16.mxu0 %v1341_v43  ;;  %2015 = vmatprep.subr.bf16.mxu1 %v1341_v43  ;;  %v1393_v12 = vpop.permute.xlu1 %1392  ;;  %v1398_v13 = vpop.permute.xlu0 %1397 }
 0x38e   : > { %1986 = vmatpush3.bf16.msra.mxu0 %v1341_v43  ;;  %2023 = vmatpush3.bf16.msra.mxu1 %v1341_v43 }
 0x38f   : > { %1987 = vmatprep.subr.bf16.mxu0 %v1340_v53  ;;  %2016 = vmatprep.subr.bf16.mxu1 %v1340_v53  ;;  %v1403_v14 = vpop.permute.xlu1 %1402  ;;  %v2799_v15 = vpop.permute.xlu0 %1407 }
 0x392   : > { %1988 = vmatpush3.bf16.msra.mxu0 %v1340_v53  ;;  %2024 = vmatpush3.bf16.msra.mxu1 %v1340_v53 }
 0x393   : > { %1989 = vmatprep.subr.bf16.mxu0 %v1339_v57  ;;  %2017 = vmatprep.subr.bf16.mxu1 %v1339_v57  ;;  %v1413_v16 = vpop.permute.xlu1 %1412  ;;  %v2801_v17 = vpop.permute.xlu0 %1417 }
 0x396   : > { %1990 = vmatpush3.bf16.msra.mxu0 %v1339_v57  ;;  %2025 = vmatpush3.bf16.msra.mxu1 %v1339_v57 }
 0x397   : > { %1991 = vmatprep.subr.bf16.mxu0 %v1338_v61  ;;  %2018 = vmatprep.subr.bf16.mxu1 %v1338_v61  ;;  %v1423_v18 = vpop.permute.xlu1 %1422  ;;  %v1428_v19 = vpop.permute.xlu0 %1427 }
 0x39a   : > { %1992 = vmatpush3.bf16.msra.mxu0 %v1338_v61  ;;  %2026 = vmatpush3.bf16.msra.mxu1 %v1338_v61 }
 0x39b   : > { %1993 = vmatprep.subr.bf16.mxu0 %v1337_v42  ;;  %2019 = vmatprep.subr.bf16.mxu1 %v1337_v42  ;;  %v1433_v20 = vpop.permute.xlu1 %1432  ;;  %v1438_v26 = vpop.permute.xlu0 %1437 }
 0x39e   : > { %1994 = vmatpush3.bf16.msra.mxu0 %v1337_v42  ;;  %2027 = vmatpush3.bf16.msra.mxu1 %v1337_v42 }
 0x39f   : > { %1995 = vmatprep.subr.bf16.mxu0 %v1336_v27  ;;  %2020 = vmatprep.subr.bf16.mxu1 %v1336_v27 }
 0x3a2   : > { %1996 = vmatpush3.bf16.msra.mxu0 %v1336_v27  ;;  %2028 = vmatpush3.bf16.msra.mxu1 %v1336_v27 }
 0x3a5   : > { %1998 = vmatmul.mubr.bf16.vlgmr.msra.gmra.mxu0 %v2144_v38  ;;  %2010 = vmatmul.mubr.bf16.vlgmr.msra.gmra.mxu1 %v2145_v1 }
 0x3a6   : > { %2001 = vmatprep.mubr.bf16.mxu0 %v2146_v2 }
 0x3ad   : > { %2002 = vmatmul.mubr.bf16.gmra.mxu0 %v2147_v3 }
 0x3ae   : > { %2005 = vmatprep.mubr.bf16.mxu0 %v2148_v4 }
 0x3b5   : > { %2006 = vmatmul.mubr.bf16.gmra.mxu0 %v2149_v5 }
 0x465   : > { %v1999_v21 = vpop.f32.mrf.mxu0  ;;  %v2011_v22 = vpop.f32.mrf.mxu1 }
 0x466   : > { %v1531_v23 = vadd.f32 %v1999_v21, %v1373_v8  ;;  %v1579_v46 = vadd.f32 %v2011_v22, %v1433_v20 }
 0x467   : > { %v1522_v39 = vpop.f32.mrf.mxu0  ;;  %v1570_v29 = vpop.f32.mrf.mxu1 }
 0x468   : > { %v1587_v41 = vmax.f32 %v1531_v23, 0.0  ;;  %v1599_v33 = vmax.f32 %v1579_v46, 0.0  ;;  %v1523_v36 = vadd.f32 %v1522_v39, %v1363_v6  ;;  %v1571_v43 = vadd.f32 %v1570_v29, %v1423_v18 }
 0x469   : > { %v2000_v50 = vpop.f32.mrf.mxu0  ;;  %v2012_v51 = vpop.f32.mrf.mxu1 }
 0x46a   : > { %1603 = vst [vmem:[%s2804_s7 + $0x10] sm:$0xff] %v1587_v41  ;;  %1615 = vst [vmem:[%s2804_s7 + $0x70] sm:$0xff] %v1599_v33  ;;  %v1585_v34 = vmax.f32 %v1523_v36, 0.0  ;;  %v1597_v48 = vmax.f32 %v1571_v43, 0.0  ;;  %v1534_v52 = vadd.f32 %v2000_v50, %v1378_v9  ;;  %v1582_v31 = vadd.f32 %v2012_v51, %v1438_v26 }
 0x46b   : > { %v1525_v44 = vpop.f32.mrf.mxu0  ;;  %v1573_v47 = vpop.f32.mrf.mxu1 }
 0x46c   : > { %1601 = vst [vmem:[%s2804_s7] sm:$0xff] %v1585_v34  ;;  %1613 = vst [vmem:[%s2804_s7 + $0x60] sm:$0xff] %v1597_v48  ;;  %v1588_v53 = vmax.f32 %v1534_v52, 0.0  ;;  %v1600_v54 = vmax.f32 %v1582_v31, 0.0  ;;  %v1526_v35 = vadd.f32 %v1525_v44, %v1368_v7  ;;  %v1574_v49 = vadd.f32 %v1573_v47, %v1428_v19 }
 0x46d   : > { %v2003_v55 = vpop.f32.mrf.mxu0 }
 0x46e   : > { %1604 = vst [vmem:[%s2804_s7 + $0x18] sm:$0xff] %v1588_v53  ;;  %1616 = vst [vmem:[%s2804_s7 + $0x78] sm:$0xff] %v1600_v54  ;;  %v1586_v32 = vmax.f32 %v1526_v35, 0.0  ;;  %v1598_v45 = vmax.f32 %v1574_v49, 0.0  ;;  %v1547_v56 = vadd.f32 %v2003_v55, %v1393_v12 }
 0x46f   : > { %v1538_v57 = vpop.f32.mrf.mxu0 }
 0x470   : > { %1602 = vst [vmem:[%s2804_s7 + $0x8] sm:$0xff] %v1586_v32  ;;  %1614 = vst [vmem:[%s2804_s7 + $0x68] sm:$0xff] %v1598_v45  ;;  %v1591_v28 = vmax.f32 %v1547_v56, 0.0  ;;  %v1539_v40 = vadd.f32 %v1538_v57, %v1383_v10 }
 0x471   : > { %v2004_v58 = vpop.f32.mrf.mxu0 }
 0x472   : > { %1607 = vst [vmem:[%s2804_s7 + $0x30] sm:$0xff] %v1591_v28  ;;  %v1589_v59 = vmax.f32 %v1539_v40, 0.0  ;;  %v1550_v24 = vadd.f32 %v2004_v58, %v1398_v13 }
 0x473   : > { %v1541_v37 = vpop.f32.mrf.mxu0 }
 0x474   : > { %1605 = vst [vmem:[%s2804_s7 + $0x20] sm:$0xff] %v1589_v59  ;;  %v1592_v60 = vmax.f32 %v1550_v24, 0.0  ;;  %v1542_v61 = vadd.f32 %v1541_v37, %v1388_v11 }
 0x475   : > { %v2007_v62 = vpop.f32.mrf.mxu0 }
 0x476   : > { %1608 = vst [vmem:[%s2804_s7 + $0x38] sm:$0xff] %v1592_v60  ;;  %v1590_v25 = vmax.f32 %v1542_v61, 0.0  ;;  %v1563_v30 = vadd.f32 %v2007_v62, %v1413_v16 }
 0x477   : > { %v1554_v42 = vpop.f32.mrf.mxu0 }
 0x478   : > { %1606 = vst [vmem:[%s2804_s7 + $0x28] sm:$0xff] %v1590_v25  ;;  %v1595_v63 = vmax.f32 %v1563_v30, 0.0  ;;  %v1555_v0 = vadd.f32 %v1554_v42, %v1403_v14 }
 0x479   : > { %v2008_v27 = vpop.f32.mrf.mxu0 }
 0x47a   : > { %1611 = vst [vmem:[%s2804_s7 + $0x50] sm:$0xff] %v1595_v63  ;;  %v1593_v38 = vmax.f32 %v1555_v0, 0.0  ;;  %v1566_v1 = vadd.f32 %v2008_v27, %v2801_v17 }
 0x47b   : > { %v1557_v2 = vpop.f32.mrf.mxu0 }
 0x47c   : > { %1609 = vst [vmem:[%s2804_s7 + $0x40] sm:$0xff] %v1593_v38  ;;  %v1596_v3 = vmax.f32 %v1566_v1, 0.0  ;;  %v1558_v4 = vadd.f32 %v1557_v2, %v2799_v15 }
 0x47e   : > { %1612 = vst [vmem:[%s2804_s7 + $0x58] sm:$0xff] %v1596_v3  ;;  %v1594_v5 = vmax.f32 %v1558_v4, 0.0 }
 0x480   : > { %1610 = vst [vmem:[%s2804_s7 + $0x48] sm:$0xff] %v1594_v5 }
 0x481   : > { %2259 = shalt.err (!%p2256_p8)
}
 0x482   : > { %s2260_s16 = scalar_lea.hbm %s2827_s27, 2048  ;;  %s2264_s1 = scalar_lea.hbm %s2919_s25, 4096 }
 0x483   : > { %p2261_p11 = scmp.ne.s32.totalorder %s2827_s27, %s2260_s16  ;;  %p2265_p3 = scmp.lt.s32.totalorder %s2827_s27, %s2919_s25 }
 0x484   : > { %p2266_p9 = scmp.lt.s32.totalorder %s2264_s1, %s2260_s16 }
 0x485   : > { %p2262_p12 = pnand %p2261_p11, %p2507_p10 }
 0x486   : > { %p2267_p6 = por %p2266_p9, %p2265_p3 }
 0x487   : > { %p2263_p13 = pneg %p2262_p12 }
 0x489   : > { %p2268_p7 = pnand %p2267_p6, %p2263_p13 }
 0x48b   : > { %2271 = shalt.err (!%p2268_p7)
}
 0x48c   : > { %s2345_s22 = smov 128   ;;  %s2346_s20 = smov 8  }
 0x48d   : > { %2038 = dma.vmem_to_hbm [thread:$0]  (%p2507_p10), %s2829_s19, 2048, %s2827_s27, %s1618_s12, %s2345_s22, %s2345_s22, %s2346_s20  }
 0x48e PF: > { %s2920_s18 = sld [smem:[#allocation13_spill]]  ;;  %p2923_p0 = scmp.ge.s32.totalorder %s2334_s14, 2 }
 0x48f   : > { %s2921_s29 = sld [smem:[#allocation14_spill]] }
 0x494   : > { %s1647_s15 = sand.u32 1, %s2920_s18  }
 0x495   : > { %p2922_p5 = scmp.ne.s32.totalorder %s2921_s29, 0  ;;  %s1648_s24 = scalar_lea.sflag [#allocation4], %s1647_s15 }
 0x497   : > { %p2052_p1 = pnand %p2923_p0, %p2922_p5 }
 0x499   : > { %p2053_p4 = pneg %p2052_p1 }
 0x49b   : > { %2309 = dma.done.wait (%p2053_p4), %s1648_s24, 2048  }
 0x49c   : > { %2311 = vsyncadd (%p2053_p4), %s1648_s24, 4294965248  ;;  %s26_s14 = sadd.s32 1, %s2334_s14   ;;  %s2924_s30 = smov %s2318_s10 }
 0x49d   : > { %p23_p2 = scmp.ge.s32.totalorder %s26_s14, 4   ;;  %s2925_s10 = smov %s2322_s11 }
 0x49e   : > { %s2926_s11 = smov %s2516_s26  ;;  %s2927_s12 = smov %s2330_s13 }
 0x49f   : > { %s2928_s13 = smov %s2930_s28  ;;  %25 = sbr.rel (!%p23_p2) target bundleno = 11 (0xb), region = 116 }
 0x4a4   :  { %1653 = vsyncpa [#allocation3], 1 }
 0x4a5   :  { %1655 = vsyncpa [#allocation3 + $0x1], 1 }
 0x4a6   :  { %1656 = vsyncpa [#allocation6], 1 }
 0x4a7   :  { %1657 = vsyncpa [#allocation4], 1 }
 0x4a8   :  { %1659 = vsyncpa [#allocation4 + $0x1], 1 }

// kernel: tpu_custom_call.1
= control target key start
LH: loop header
LB: loop body
LE: loop exit
PB: predicated region body
PF: predicated region fallthrough
CT: control target
= control target key end

     0   :  { %s2895_s0 = inlined_call_operand.hbm [shape: f32[2,8,128], index: 0, kind: input, shape index: {}]   ;;  %s2896_s1 = inlined_call_operand.hbm [shape: f32[2,8,8], index: 1, kind: input, shape index: {}]   ;;  %s2897_s2 = inlined_call_operand.vmem [shape: bf16[2,128,8], index: 2, kind: input, shape index: {}]   ;;  %s2898_s3 = inlined_call_operand.vmem [shape: f32[2,128,128], index: 3, kind: input, shape index: {}]   ;;  %s2899_s4 = inlined_call_operand.vmem [shape: bf16[128,128], index: 4, kind: input, shape index: {}]   ;;  %s2900_s5 = inlined_call_operand.vmem [shape: bf16[128,128], index: 5, kind: input, shape index: {}]   ;;  %s2901_s6 = inlined_call_operand.vmem [shape: f32[128,1], index: 6, kind: input, shape index: {}]   ;;  %s2902_s7 = inlined_call_operand.hbm [shape: bf16[128,128], index: 7, kind: input, shape index: {}]   ;;  %s2903_s8 = inlined_call_operand.vmem [shape: f32[128,1], index: 8, kind: input, shape index: {}]   ;;  %s2904_s9 = inlined_call_operand.hbm [shape: f32[2,128,128], index: 9, kind: output, shape index: {}]  }
   0x1   :  { %2912 = sst [smem:[#allocation18_spill]] %s2902_s7 }
   0x2   :  { %2913 = sst [smem:[#allocation19_spill]] %s2904_s9 }
   0x3   :  { %14 = vsyncpa [#allocation3], 0 }
   0x4   :  { %16 = vsyncpa [#allocation3 + $0x1], 0 }
   0x5   :  { %17 = vsyncpa [#allocation6], 0 }
   0x6   :  { %19 = vsyncpa [#allocation6 + $0x1], 0 }
   0x7   :  { %20 = vsyncpa [#allocation4], 0 }
   0x8   :  { %22 = vsyncpa [#allocation4 + $0x1], 0  ;;  %s2423_s30 = smov 0   ;;  %s2425_s10 = smov 0  }
   0x9   :  { %s2427_s11 = smov 0   ;;  %s2429_s12 = smov 0  }
   0xa   :  { %s2431_s13 = smov 0   ;;  %s2433_s14 = smov 0  }
   0xb LB: > { %2914 = sst [smem:[#allocation13_spill]] %s2340_s30  ;;  %s2454_s15 = sadd.s32 4294967295, %s2360_s14   ;;  %s2360_s14 = sphi %s2433_s14, %s28_s14   ;;  %s2356_s13 = sphi %s2431_s13, %s2935_s13   ;;  %s2352_s12 = sphi %s2429_s12, %s2934_s12   ;;  %s2348_s11 = sphi %s2427_s11, %s2938_s11   ;;  %s2344_s10 = sphi %s2425_s10, %s2937_s10   ;;  %s2340_s30 = sphi %s2423_s30, %s2936_s30  }
   0xc   : > { %2915 = sst [smem:[#allocation14_spill]] %s2356_s13  ;;  %s1796_s16 = sadd.s32 4294967294, %s2360_s14  }
   0xd   : > { %p62_p0 = scmp.ne.s32.totalorder %s2344_s10, %s2340_s30  ;;  %p63_p1 = scmp.eq.s32.totalorder %s2454_s15, 0 }
   0xe   : > { %p279_p3 = scmp.eq.s32.totalorder %s1796_s16, 1  ;;  %p1797_p5 = scmp.ge.s32.totalorder %s2360_s14, 1 }
   0xf   : > { %p2463_p4 = por %p63_p1, %p62_p0  ;;  %p286_p7 = scmp.lt.s32.totalorder %s2360_s14, 3 }
  0x10   : > { %p2468_p6 = por %p279_p3, %p62_p0  ;;  %s2362_s20 = smov [#allocation7]  }
  0x11   : > { %p2473_p8 = pnand %p1797_p5, %p286_p7  ;;  %s307_s21 = sshll.u32 %s2362_s20, 4  ;;  %s308_s21 = int_to_ptr.vmem [resolvable:$true] %s307_s21 }
  0x12   : > { %s2917_s18 = scalar_select %p2468_p6, 1, 0 }
  0x13   : > { %p2067_p9 = pneg %p2473_p8  ;;  %s40_s23 = sadd.s32 1, %s2356_s13 }
  0x14   : > { %2918 = sst [smem:[#allocation15_spill]] %s2917_s18  ;;  %s2201_s24 = scalar_lea.vmem %s308_s21, 1024 }
  0x15   : > { %p2482_p11 = pnand %p2067_p9, %p63_p1  ;;  %p2202_p13 = scmp.ne.s32.totalorder %s308_s21, %s2201_s24 }
  0x16   : > { %p2209_p5 = scmp.lt.s32.totalorder %s308_s21, %s308_s21  ;;  %p2210_p7 = scmp.lt.s32.totalorder %s2201_s24, %s2201_s24 }
  0x17   : > { %p2192_p12 = pneg %p2482_p11 }
  0x18   : > { %p2211_p2 = por %p2210_p7, %p2209_p5 }
  0x19   : > { %p2204_p0 = pnand %p2202_p13, %p2192_p12 }
  0x1b   : > { %p2205_p3 = pneg %p2204_p0 }
  0x1d   : > { %p2212_p6 = pnand %p2211_p2, %p2205_p3 }
  0x1f   : > { %2215 = shalt.err (!%p2212_p6)
}
  0x20   : > { %s2363_s25 = smov 64   ;;  %s2364_s26 = smov 4  }
  0x21   : > { %s2921_s7 = sld [smem:[#allocation18_spill]]  ;;  %p42_p2 = scmp.ge.s32.totalorder %s40_s23, 2 }
  0x22   : > { %s49_s29 = sadd.s32 1, %s2348_s11  ;;  %p56_p6 = scmp.ne.s32.totalorder %s2348_s11, %s2344_s10 }
  0x23   : > { %p57_p9 = scmp.eq.s32.totalorder %s2360_s14, 0  ;;  %s2940_s23 = smov (%p42_p2, %s40_s23), 0 }
  0x24   : > { %2922 = sst [smem:[#allocation16_spill]] %s2940_s23  ;;  %p2924_p13 = scmp.eq.s32.totalorder %s2454_s15, 1 }
  0x25   : > { %p2500_p12 = por %p57_p9, %p56_p6  ;;  %s44_s22 = ssub.s32 %s2356_s13, %s2940_s23 }
  0x26   : > { %p2506_p0 = por %p2924_p13, %p56_p6  ;;  %p47_p3 = scmp.eq.s32.totalorder %s44_s22, 0 }
  0x27   : > { %2070 = dma.hbm_to_vmem [thread:$0]  (!%p2482_p11), %s2921_s7, 1024, %s308_s21, [#allocation6], %s2363_s25, %s2363_s25, %s2364_s26  }
  0x28   : > { %s2925_s20 = scalar_select %p2506_p0, 1, 0 }
  0x29   : > { %p2083_p11 = scmp.lt.s32.totalorder %s2360_s14, 2  ;;  %s324_s21 = sand.u32 1, %s2348_s11  }
  0x2a   : > { %2926 = sst [smem:[#allocation17_spill]] %s2925_s20  ;;  %s1800_s24 = sshll.u32 %s324_s21, 3 }
  0x2b   : > { %s2515_s25 = scalar_select %p47_p3, %s2348_s11, %s49_s29  }
  0x2c   : > { %s1801_s26 = sshll.u32 %s2356_s13, 7  ;;  %s328_s18 = scalar_lea.vmem [#allocation2], %s1800_s24 }
  0x2d   : > { %s334_s7 = scalar_lea.hbm %s2895_s0, %s1801_s26  ;;  %s336_s30 = sshll.u32 %s328_s18, 4  ;;  %s337_s30 = int_to_ptr.vmem [resolvable:$true] %s336_s30 }
  0x2e   : > { %p2523_p5 = pnand %p2083_p11, %p2500_p12  ;;  %s2530_s29 = scalar_lea.hbm %s2896_s1, %s1801_s26 }
  0x2f   : > { %s343_s22 = sand.u32 1, %s2360_s14   ;;  %s325_s13 = scalar_lea.sflag [#allocation3], %s324_s21 }
  0x30   : > { %p2218_p7 = pneg %p2523_p5  ;;  %s2229_s27 = scalar_lea.vmem %s337_s30, 128 }
  0x31   : > { %p2230_p2 = scmp.ne.s32.totalorder %s337_s30, %s2229_s27  ;;  %s2365_s18 = smov [#allocation2]  }
  0x32   : > { %s2234_s16 = sshll.u32 %s2365_s18, 4  ;;  %s2235_s16 = int_to_ptr.vmem [resolvable:$false] %s2234_s16 }
  0x33   : > { %p2232_p6 = pnand %p2230_p2, %p2218_p7  ;;  %s2236_s28 = scalar_lea.vmem %s2235_s16, 256 }
  0x34   : > { %p2237_p12 = scmp.lt.s32.totalorder %s337_s30, %s2235_s16  ;;  %p2238_p13 = scmp.lt.s32.totalorder %s2236_s28, %s2229_s27 }
  0x35   : > { %p2233_p9 = pneg %p2232_p6 }
  0x36   : > { %p2239_p11 = por %p2238_p13, %p2237_p12 }
  0x38   : > { %p2240_p3 = pnand %p2239_p11, %p2233_p9 }
  0x3a   : > { %2243 = shalt.err (!%p2240_p3)
}
  0x3b   : > { %2074 = dma.hbm_to_vmem [thread:$0]  (!%p2523_p5), %s334_s7, 128, %s337_s30, %s325_s13  }
  0x3c   : > { %s347_s23 = scalar_lea.vmem [#allocation5], %s1800_s24  ;;  %s344_s21 = scalar_lea.sflag [#allocation6], %s343_s22 }
  0x3d   : > { %s354_s20 = sshll.u32 %s347_s23, 4  ;;  %s2366_s18 = smov [#allocation5]   ;;  %s355_s20 = int_to_ptr.vmem [resolvable:$true] %s354_s20 }
  0x3e   : > { %s2257_s26 = scalar_lea.vmem %s355_s20, 128  ;;  %s2262_s16 = sshll.u32 %s2366_s18, 4  ;;  %s2263_s16 = int_to_ptr.vmem [resolvable:$false] %s2262_s16 }
  0x3f   : > { %p2258_p2 = scmp.ne.s32.totalorder %s355_s20, %s2257_s26  ;;  %s2264_s27 = scalar_lea.vmem %s2263_s16, 256 }
  0x40   : > { %p2265_p9 = scmp.lt.s32.totalorder %s355_s20, %s2263_s16  ;;  %p2266_p12 = scmp.lt.s32.totalorder %s2264_s27, %s2257_s26 }
  0x41   : > { %p2260_p6 = pnand %p2258_p2, %p2218_p7 }
  0x42   : > { %p2267_p13 = por %p2266_p12, %p2265_p9 }
  0x43   : > { %p2261_p10 = pneg %p2260_p6 }
  0x45   : > { %p2268_p11 = pnand %p2267_p13, %p2261_p10 }
  0x47   : > { %2271 = shalt.err (!%p2268_p11)
}
  0x48   : > { %2077 = dma.hbm_to_vmem [thread:$0]  (!%p2523_p5), %s2530_s29, 128, %s355_s20, %s344_s21  }
  0x49   : > { %382 = sbr.rel (%p2473_p8) target bundleno = 1150 (0x47e), region = 56  ;;  %s2549_s7 = sand.u32 (!%p2473_p8), 1, %s2344_s10  }
  0x4a   : > { %s1805_s30 = sshll.u32 (!%p2473_p8), %s2549_s7, 3  ;;  %s385_s13 = scalar_lea.sflag (!%p2473_p8), [#allocation3], %s2549_s7 }
  0x4b   : > { %s388_s24 = scalar_lea.vmem (!%p2473_p8), [#allocation2], %s1805_s30 }
  0x4e   : > { %2323 = dma.done.wait (%p2463_p4), %s385_s13, 128  }
  0x4f   : > { %2325 = vsyncadd (%p2463_p4), %s385_s13, 4294967168  ;;  %s393_s9 = sand.u32 1, %s2454_s15   ;;  %s397_s19 = scalar_lea.vmem [#allocation5], %s1805_s30 }
  0x50   : > { %s394_s29 = scalar_lea.sflag [#allocation6], %s393_s9 }
  0x51   : > { %2327 = dma.done.wait (%p2463_p4), %s394_s29, 128  }
  0x52   : > { %2329 = vsyncadd (%p2463_p4), %s394_s29, 4294967168 }
  0x53   : > { %2331 = dma.done.wait (%p63_p1), [#allocation6], 1024  }
  0x54   : > { %2333 = vsyncadd (%p63_p1), [#allocation6], 4294966272  ;;  %v2367_v0 = vmov 0.0   ;;  %vm2368_vm0 = vmmov 0   ;;  %vm487_vm1 = vcmask 64512   ;;  %v468_v1 = vld [vmem:[%s388_s24] sm:$0xff]  ;;  %v575_v23 = vlaneseq }
  0x55   : > { %1921 = vmatprep.subr.mxu1 %v2367_v0  ;;  %1923 = vmatprep.mubr.msk.f32.mxu1 %vm2368_vm0, %v2367_v0  ;;  %v469_v2 = vld [vmem:[%s397_s19] sm:$0xff]  ;;  %v491_v5 = vmul.f32 %v468_v1, %v468_v1  ;;  %p454_p4 = scmp.lt.s32.totalorder %s2352_s12, 1  ;;  %s1808_s28 = sshll.u32 %s2549_s7, 7 }
  0x56   : > { %1922 = vmatpush3.msra.mxu1 %v468_v1  ;;  %v486_v3 = vmul.f32 %v469_v2, %v469_v2  ;;  %v2580_v26 = vshrl.u32 %v575_v23, 7  ;;  %s1861_s21 = sshll.u32 %s2352_s12, 11  ;;  %s2929_s27 = sld [smem:[#allocation19_spill]] }
  0x57   : > { %1924 = vmatmul.mubr.msk.f32.vlgmr.msra.gmra.mxu1 %vm487_vm1, %v469_v2  ;;  %v492_v6 = vrot.slane %v491_v5, 4  ;;  %s2570_s15 = scalar_select %p454_p4, %s2352_s12, 1 }
  0x58   : > { %v488_v4 = vsel %vm487_vm1, %v486_v3, 0.0  ;;  %s1635_s12 = scalar_lea.sflag [#allocation4], %s2549_s7  ;;  %s2370_s24 = smov [#allocation8]  }
  0x59   : > { %489 = vadd.xlane.f32.xlu0 %v488_v4  ;;  %v493_v7 = vadd.f32 %v492_v6, %v491_v5  ;;  %s1859_s17 = sshll.u32 %s2570_s15, 6  ;;  %s1860_s20 = sshll.u32 %s2570_s15, 7 }
  0x5a   : > { %s2576_s23 = scalar_lea.vmem %s2897_s2, %s1859_s17  ;;  %s2616_s18 = scalar_lea.vmem %s2898_s3, %s1860_s20 }
  0x5b   : > { %v494_v8 = vrot.slane %v493_v7, 2  ;;  %v2144_v9 = vld [vmem:[%s2576_s23] sm:$0xff]   ;;  %s2276_s9 = sshll.u32 %s2370_s24, 4  ;;  %s2277_s9 = int_to_ptr.vmem [resolvable:$false] %s2276_s9 }
  0x5c   : > { %1928 = vmatprep.mubr.msk.bf16.mxu1 %vm487_vm1, %v2144_v9  ;;  %s2843_s30 = scalar_lea.hbm %s2929_s27, %s1861_s21  ;;  %s2278_s29 = scalar_lea.vmem %s2277_s9, 4096 }
  0x5d   : > { %v495_v10 = vadd.f32 %v494_v8, %v493_v7 }
  0x5f   : > { %v496_v11 = vrot.slane %v495_v10, 1 }
  0x61   : > { %v497_v15 = vadd.f32 %v496_v11, %v495_v10 }
  0xe2   : > { %v490_v13 = vpop.xlane.xlu0 %489 }
 0x117   : > { %v567_v12 = vpop.f32.mrf.mxu1 }
 0x118   : > { %v571_v14 = vmul.f32 2.0, %v567_v12 }
 0x119   : > { %v1925_v16 = vpop.f32.mrf.mxu1 }
 0x11a   : > { %v572_v17 = vsub.f32 %v490_v13, %v571_v14 }
 0x11c   : > { %v573_v18 = vadd.f32 %v572_v17, %v497_v15 }
 0x11e   : > { %v574_v19 = vmax.f32 %v573_v18, 0.0 }
 0x120   : > { %v577_v20 = vrot.slane %v574_v19, 4 }
 0x122   : > { %v578_v21 = vmin.f32 %v574_v19, %v577_v20 }
 0x124   : > { %v579_v22 = vrot.slane %v578_v21, 2 }
 0x126   : > { %v580_v24 = vmin.f32 %v578_v21, %v579_v22 }
 0x128   : > { %v581_v25 = vrot.slane %v580_v24, 1 }
 0x12a   : > { %v582_v27 = vmin.f32 %v580_v24, %v581_v25 }
 0x12c   : > { %vm583_vm2 = vcmp.eq.f32.partialorder %v574_v19, %v582_v27  ;;  %2176 = vrsqrt.f32 %v582_v27  ;;  %vm597_vm7 = vcmp.eq.f32.partialorder %v582_v27, inf  ;;  %v600_v38 = vand.u32 2147483648, %v582_v27 }
 0x12d   : > { %v584_v28 = vsel %vm583_vm2, %v2580_v26, 8  ;;  %vm599_vm8 = vcmp.eq.f32.partialorder %v582_v27, 0.0 }
 0x12e   : > { %v585_v29 = vrot.slane %v584_v28, 4 }
 0x130   : > { %vm586_vm3 = vcmp.lt.s32.totalorder %v584_v28, %v585_v29 }
 0x131   : > { %v587_v30 = vsel %vm586_vm3, %v584_v28, %v585_v29 }
 0x132   : > { %v588_v31 = vrot.slane %v587_v30, 2 }
 0x134   : > { %vm589_vm4 = vcmp.lt.s32.totalorder %v587_v30, %v588_v31 }
 0x135   : > { %v590_v32 = vsel %vm589_vm4, %v587_v30, %v588_v31  ;;  %v2145_v30 = vld [vmem:[%s2576_s23 + $0x8] sm:$0xff]   ;;  %v2146_v31 = vld [vmem:[%s2576_s23 + $0x10] sm:$0xff]  }
 0x136   : > { %v591_v33 = vrot.slane %v590_v32, 1 }
 0x138   : > { %vm592_vm5 = vcmp.lt.s32.totalorder %v590_v32, %v591_v33 }
 0x139   : > { %v2177_v34 = vpop.eup %2176  ;;  %v593_v35 = vsel %vm592_vm5, %v590_v32, %v591_v33  ;;  %v2148_v32 = vld [vmem:[%s2576_s23 + $0x20] sm:$0xff]   ;;  %v2149_v33 = vld [vmem:[%s2576_s23 + $0x28] sm:$0xff]  }
 0x13a   : > { %vm594_vm6 = vcmp.eq.s32.totalorder %v2580_v26, %v593_v35  ;;  %v596_v36 = vmul.f32 %v2177_v34, %v582_v27  ;;  %v2150_v34 = vld [vmem:[%s2576_s23 + $0x30] sm:$0xff]   ;;  %v2151_v35 = vld [vmem:[%s2576_s23 + $0x38] sm:$0xff]  }
 0x13b   : > { %v608_v37 = vsel %vm594_vm6, inf, %v574_v19 }
 0x13c   : > { %v609_v39 = vrot.slane %v608_v37, 4  ;;  %v598_v40 = vsel %vm597_vm7, %v582_v27, %v596_v36  ;;  %v877_v36 = vld [vmem:[%s2616_s18 + $0x70] sm:$0xff] }
 0x13d   : > { %v601_v41 = vsel %vm599_vm8, %v600_v38, %v598_v40  ;;  %vm737_vm8 = vcmask 1043456   ;;  %v876_v40 = vld [vmem:[%s2616_s18 + $0x68] sm:$0xff] }
 0x13e   : > { %v610_v42 = vmin.f32 %v608_v37, %v609_v39  ;;  %v602_v43 = vadd.f32 1e-08, %v601_v41  ;;  %v875_v39 = vld [vmem:[%s2616_s18 + $0x60] sm:$0xff] }
 0x13f   : > { %v885_v41 = vpack.c.bf16 %v876_v40, %v875_v39  ;;  %v1371_v39 = vld [vmem:[%s2903_s8 + $0x50] sm:$0xff] }
 0x140   : > { %v611_v44 = vrot.slane %v610_v42, 2  ;;  %2178 = vrcp.f32 %v602_v43  ;;  %v874_v43 = vld [vmem:[%s2616_s18 + $0x58] sm:$0xff] }
 0x142   : > { %v612_v45 = vmin.f32 %v610_v42, %v611_v44  ;;  %v873_v42 = vld [vmem:[%s2616_s18 + $0x50] sm:$0xff] }
 0x143   : > { %v884_v44 = vpack.c.bf16 %v874_v43, %v873_v42  ;;  %v1373_v42 = vld [vmem:[%s2903_s8 + $0x60] sm:$0xff] }
 0x144   : > { %v613_v46 = vrot.slane %v612_v45, 1 }
 0x146   : > { %v614_v47 = vmin.f32 %v612_v45, %v613_v46  ;;  %v871_v45 = vld [vmem:[%s2616_s18 + $0x40] sm:$0xff]  ;;  %v872_v46 = vld [vmem:[%s2616_s18 + $0x48] sm:$0xff] }
 0x148   : > { %vm615_vm9 = vcmp.eq.f32.partialorder %v608_v37, %v614_v47  ;;  %2180 = vrsqrt.f32 %v614_v47  ;;  %vm629_vm14 = vcmp.eq.f32.partialorder %v614_v47, inf  ;;  %v632_v59 = vand.u32 2147483648, %v614_v47 }
 0x149   : > { %v616_v48 = vsel %vm615_vm9, %v2580_v26, 8  ;;  %vm631_vm15 = vcmp.eq.f32.partialorder %v614_v47, 0.0 }
 0x14a   : > { %v617_v49 = vrot.slane %v616_v48, 4 }
 0x14c   : > { %vm618_vm10 = vcmp.lt.s32.totalorder %v616_v48, %v617_v49 }
 0x14d   : > { %v2179_v50 = vpop.eup %2178  ;;  %v619_v51 = vsel %vm618_vm10, %v616_v48, %v617_v49  ;;  %v869_v48 = vld [vmem:[%s2616_s18 + $0x30] sm:$0xff]  ;;  %v870_v49 = vld [vmem:[%s2616_s18 + $0x38] sm:$0xff] }
 0x14e   : > { %v605_v52 = vsel %vm594_vm6, %v2179_v50, 0.0  ;;  %v620_v53 = vrot.slane %v619_v51, 2 }
 0x150   : > { %vm621_vm11 = vcmp.lt.s32.totalorder %v619_v51, %v620_v53 }
 0x151   : > { %v622_v54 = vsel %vm621_vm11, %v619_v51, %v620_v53  ;;  %v867_v51 = vld [vmem:[%s2616_s18 + $0x20] sm:$0xff] }
 0x152   : > { %v623_v55 = vrot.slane %v622_v54, 1 }
 0x154   : > { %vm624_vm12 = vcmp.lt.s32.totalorder %v622_v54, %v623_v55 }
 0x155   : > { %v2181_v56 = vpop.eup %2180  ;;  %v625_v57 = vsel %vm624_vm12, %v622_v54, %v623_v55  ;;  %v865_v54 = vld [vmem:[%s2616_s18 + $0x10] sm:$0xff]  ;;  %v866_v55 = vld [vmem:[%s2616_s18 + $0x18] sm:$0xff] }
 0x156   : > { %vm626_vm13 = vcmp.eq.s32.totalorder %v2580_v26, %v625_v57  ;;  %v628_v58 = vmul.f32 %v2181_v56, %v614_v47  ;;  %v880_v56 = vpack.c.bf16 %v866_v55, %v865_v54  ;;  %v863_v57 = vld [vmem:[%s2616_s18] sm:$0xff] }
 0x157   : > { %v640_v60 = vsel %vm626_vm13, inf, %v608_v37  ;;  %v878_v37 = vld [vmem:[%s2616_s18 + $0x78] sm:$0xff] }
 0x158   : > { %v630_v61 = vsel %vm629_vm14, %v614_v47, %v628_v58  ;;  %v641_v62 = vrot.slane %v640_v60, 4  ;;  %v886_v38 = vpack.c.bf16 %v878_v37, %v877_v36  ;;  %v883_v47 = vpack.c.bf16 %v872_v46, %v871_v45  ;;  %v864_v58 = vld [vmem:[%s2616_s18 + $0x8] sm:$0xff]  ;;  %v1376_v37 = vld [vmem:[%s2903_s8 + $0x78] sm:$0xff]  ;;  %v1375_v45 = vld [vmem:[%s2903_s8 + $0x70] sm:$0xff] }
 0x159   : > { %v633_v63 = vsel %vm631_vm15, %v632_v59, %v630_v61  ;;  %v879_v59 = vpack.c.bf16 %v864_v58, %v863_v57  ;;  %v2153_v61 = vld [vmem:[%s2900_s5 + $0x8] sm:$0xff]  }
 0x15a   : > { %v634_v0 = vadd.f32 1e-08, %v633_v63  ;;  %v642_v1 = vmin.f32 %v640_v60, %v641_v62  ;;  %1944 = vmatprep.subr.bf16.mxu0 %v886_v38  ;;  %v1224_v62 = vld [vmem:[%s2901_s6 + $0x78] sm:$0xff]  ;;  %v2154_v63 = vld [vmem:[%s2899_s4] sm:$0xff]  }
 0x15b   : > { %1945 = vmatpush3.bf16.msra.mxu0 %v886_v38 }
 0x15c   : > { %2182 = vrcp.f32 %v634_v0  ;;  %v643_v2 = vrot.slane %v642_v1, 2  ;;  %1946 = vmatprep.subr.bf16.mxu0 %v885_v41  ;;  %v2369_v0 = vmov 0  }
 0x15d   : > { %2143 = vset.pattern.permute.xlu1 %v2369_v0  ;;  %2142 = vset.pattern.permute.xlu0 %v2369_v0 }
 0x15e   : > { %v644_v3 = vmin.f32 %v642_v1, %v643_v2  ;;  %1302 = vperm.xlu1 %2143, %v1224_v62   ;;  %v2156_v1 = vld [vmem:[%s2900_s5 + $0x10] sm:$0xff]   ;;  %v2157_v2 = vld [vmem:[%s2900_s5 + $0x18] sm:$0xff]  }
 0x15f   : > { %1947 = vmatpush3.bf16.msra.mxu0 %v885_v41 }
 0x160   : > { %v645_v4 = vrot.slane %v644_v3, 1  ;;  %1948 = vmatprep.subr.bf16.mxu0 %v884_v44 }
 0x162   : > { %v646_v5 = vmin.f32 %v644_v3, %v645_v4  ;;  %v1221_v3 = vld [vmem:[%s2901_s6 + $0x60] sm:$0xff]  ;;  %v1222_v4 = vld [vmem:[%s2901_s6 + $0x68] sm:$0xff] }
 0x163   : > { %1949 = vmatpush3.bf16.msra.mxu0 %v884_v44  ;;  %1287 = vperm.xlu1 %2143, %v1221_v3  }
 0x164   : > { %vm647_vm0 = vcmp.eq.f32.partialorder %v640_v60, %v646_v5  ;;  %2184 = vrsqrt.f32 %v646_v5  ;;  %vm661_vm3 = vcmp.eq.f32.partialorder %v646_v5, inf  ;;  %v664_v16 = vand.u32 2147483648, %v646_v5  ;;  %1950 = vmatprep.subr.bf16.mxu0 %v883_v47  ;;  %v2152_v60 = vld [vmem:[%s2900_s5] sm:$0xff]  }
 0x165   : > { %v648_v6 = vsel %vm647_vm0, %v2580_v26, 8  ;;  %vm663_vm4 = vcmp.eq.f32.partialorder %v646_v5, 0.0  ;;  %1960 = vmatprep.mubr.bf16.mxu0 %v2152_v60 }
 0x166   : > { %v649_v7 = vrot.slane %v648_v6, 4 }
 0x167   : > { %1951 = vmatpush3.bf16.msra.mxu0 %v883_v47  ;;  %1292 = vperm.xlu1 %2143, %v1222_v4  }
 0x168   : > { %vm650_vm2 = vcmp.lt.s32.totalorder %v648_v6, %v649_v7 }
 0x169   : > { %v2183_v8 = vpop.eup %2182  ;;  %v651_v12 = vsel %vm650_vm2, %v648_v6, %v649_v7  ;;  %v2161_v6 = vld [vmem:[%s2900_s5 + $0x28] sm:$0xff]   ;;  %v1219_v7 = vld [vmem:[%s2901_s6 + $0x50] sm:$0xff] }
 0x16a   : > { %v637_v9 = vsel %vm626_vm13, %v2183_v8, 0.0  ;;  %v639_v10 = vadd.f32 %v2183_v8, %v2179_v50  ;;  %v652_v14 = vrot.slane %v651_v12, 2  ;;  %v882_v50 = vpack.c.bf16 %v870_v49, %v869_v48  ;;  %v1220_v8 = vld [vmem:[%s2901_s6 + $0x58] sm:$0xff] }
 0x16b   : > { %v638_v11 = vadd.f32 %v637_v9, %v605_v52  ;;  %v868_v52 = vld [vmem:[%s2616_s18 + $0x28] sm:$0xff]  ;;  %1277 = vperm.xlu1 %2143, %v1219_v7   ;;  %v2164_v9 = vld [vmem:[%s2900_s5 + $0x30] sm:$0xff]  }
 0x16c   : > { %vm653_vm5 = vcmp.lt.s32.totalorder %v651_v12, %v652_v14  ;;  %1952 = vmatprep.subr.bf16.mxu0 %v882_v50  ;;  %v881_v53 = vpack.c.bf16 %v868_v52, %v867_v51 }
 0x16d   : > { %v654_v20 = vsel %vm653_vm5, %v651_v12, %v652_v14  ;;  %1953 = vmatpush3.bf16.msra.mxu0 %v882_v50  ;;  %v1218_v12 = vld [vmem:[%s2901_s6 + $0x48] sm:$0xff]  ;;  %v1223_v14 = vld [vmem:[%s2901_s6 + $0x70] sm:$0xff] }
 0x16e   : > { %v655_v21 = vrot.slane %v654_v20, 1  ;;  %1954 = vmatprep.subr.bf16.mxu0 %v881_v53  ;;  %1297 = vperm.xlu0 %2142, %v1223_v14  }
 0x16f   : > { %1282 = vperm.xlu1 %2143, %v1220_v8  }
 0x170   : > { %vm656_vm6 = vcmp.lt.s32.totalorder %v654_v20, %v655_v21 }
 0x171   : > { %v2185_v13 = vpop.eup %2184  ;;  %v657_v22 = vsel %vm656_vm6, %v654_v20, %v655_v21  ;;  %1955 = vmatpush3.bf16.msra.mxu0 %v881_v53  ;;  %v1362_v20 = vld [vmem:[%s2903_s8 + $0x8] sm:$0xff]  ;;  %v1211_v21 = vld [vmem:[%s2901_s6 + $0x10] sm:$0xff] }
 0x172   : > { %v660_v15 = vmul.f32 %v2185_v13, %v646_v5  ;;  %vm658_vm7 = vcmp.eq.s32.totalorder %v2580_v26, %v657_v22  ;;  %v2147_v26 = vld [vmem:[%s2576_s23 + $0x18] sm:$0xff]   ;;  %1956 = vmatprep.subr.bf16.mxu0 %v880_v56  ;;  %v1215_v13 = vld [vmem:[%s2901_s6 + $0x30] sm:$0xff]  ;;  %s2820_s23 = scalar_lea.vmem [#allocation8], %s1808_s28 }
 0x173   : > { %v1364_v22 = vld [vmem:[%s2903_s8 + $0x18] sm:$0xff]  ;;  %s1649_s26 = sshll.u32 %s2820_s23, 4  ;;  %s2845_s26 = int_to_ptr.vmem [resolvable:$true] %s1649_s26 }
 0x174   : > { %v662_v17 = vsel %vm661_vm3, %v646_v5, %v660_v15  ;;  %v2160_v5 = vld [vmem:[%s2900_s5 + $0x20] sm:$0xff]   ;;  %v1216_v15 = vld [vmem:[%s2901_s6 + $0x38] sm:$0xff]  ;;  %s2272_s13 = scalar_lea.vmem %s2845_s26, 2048  ;;  %p2279_p5 = scmp.lt.s32.totalorder %s2845_s26, %s2277_s9 }
 0x175   : > { %v665_v18 = vsel %vm663_vm4, %v664_v16, %v662_v17  ;;  %1957 = vmatpush3.bf16.msra.mxu0 %v880_v56  ;;  %v1212_v16 = vld [vmem:[%s2901_s6 + $0x18] sm:$0xff]  ;;  %v1213_v17 = vld [vmem:[%s2901_s6 + $0x20] sm:$0xff]  ;;  %p2273_p1 = scmp.ne.s32.totalorder %s2845_s26, %s2272_s13  ;;  %p2280_p7 = scmp.lt.s32.totalorder %s2278_s29, %s2272_s13 }
 0x176   : > { %v666_v19 = vadd.f32 1e-08, %v665_v18  ;;  %1958 = vmatprep.subr.bf16.mxu0 %v879_v59  ;;  %1242 = vperm.xlu0 %2142, %v1212_v16   ;;  %v1210_v18 = vld [vmem:[%s2901_s6 + $0x8] sm:$0xff]  ;;  %v2158_v16 = vld [vmem:[%s2899_s4 + $0x10] sm:$0xff]  }
 0x177   : > { %p2274_p8 = pnand %p2273_p1, %p2506_p0  ;;  %p2281_p3 = por %p2280_p7, %p2279_p5 }
 0x178   : > { %2186 = vrcp.f32 %v666_v19  ;;  %v1214_v19 = vld [vmem:[%s2901_s6 + $0x28] sm:$0xff] }
 0x179   : > { %1959 = vmatpush3.bf16.msra.mxu0 %v879_v59  ;;  %p2275_p10 = pneg %p2274_p8 }
 0x17a   : > { %1232 = vperm.xlu0 %2142, %v1210_v18   ;;  %v2162_v18 = vld [vmem:[%s2899_s4 + $0x20] sm:$0xff]  }
 0x17b   : > { %p2282_p2 = pnand %p2281_p3, %p2275_p10 }
 0x17c   : > { %1961 = vmatmul.mubr.bf16.vlgmr.msra.gmra.mxu0 %v2153_v61 }
 0x17d   : > { %1964 = vmatprep.mubr.bf16.mxu0 %v2156_v1 }
 0x17e   : > { %1384 = vperm.xlu0 %2142, %v1362_v20   ;;  %v2166_v20 = vld [vmem:[%s2899_s4 + $0x30] sm:$0xff]  }
 0x182   : > { %1394 = vperm.xlu0 %2142, %v1364_v22   ;;  %v2168_v22 = vld [vmem:[#allocation7] sm:$0xff]  }
 0x184   : > { %1965 = vmatmul.mubr.bf16.gmra.mxu0 %v2157_v2 }
 0x185   : > { %v2187_v23 = vpop.eup %2186  ;;  %1968 = vmatprep.mubr.bf16.mxu0 %v2160_v5 }
 0x186   : > { %v669_v24 = vsel %vm658_vm7, %v2187_v23, 0.0  ;;  %v2596_v25 = vadd.f32 %v2187_v23, %v639_v10  ;;  %v2165_v10 = vld [vmem:[%s2900_s5 + $0x38] sm:$0xff]   ;;  %v1209_v23 = vld [vmem:[%s2901_s6] sm:$0xff] }
 0x187   : > { %v670_v27 = vadd.f32 %v669_v24, %v638_v11  ;;  %v1217_v11 = vld [vmem:[%s2901_s6 + $0x40] sm:$0xff]  ;;  %v1366_v24 = vld [vmem:[%s2903_s8 + $0x28] sm:$0xff] }
 0x188   : > { %1267 = vperm.xlu1 %2143, %v1217_v11   ;;  %1404 = vperm.xlu0 %2142, %v1366_v24   ;;  %2188 = vrcp.f32 %v2596_v25 }
 0x189   : > { %v672_v28 = vpack.c.bf16 %v670_v27, %v670_v27  ;;  %v1361_v27 = vld [vmem:[%s2903_s8] sm:$0xff] }
 0x18b   : > { %2056 = vmatprep.subr.msk.bf16.mxu1 %vm737_vm8, %v672_v28  ;;  %v739_v29 = vsel %vm737_vm8, %v672_v28, 0  ;;  %v1368_v28 = vld [vmem:[%s2903_s8 + $0x38] sm:$0xff] }
 0x18c   : > { %1927 = vmatpush3.bf16.msra.mxu1 %v739_v29  ;;  %1969 = vmatmul.mubr.bf16.gmra.mxu0 %v2161_v6  ;;  %v1363_v29 = vld [vmem:[%s2903_s8 + $0x10] sm:$0xff] }
 0x18d   : > { %1972 = vmatprep.mubr.bf16.mxu0 %v2164_v9  ;;  %1272 = vperm.xlu1 %2143, %v1218_v12  }
 0x18e   : > { %1414 = vperm.xlu0 %2142, %v1368_v28  }
 0x18f   : > { %1929 = vmatmul.mubr.msk.bf16.vlgmr.msra.gmra.mxu1 %vm487_vm1, %v2145_v30  ;;  %v1370_v30 = vld [vmem:[%s2903_s8 + $0x48] sm:$0xff] }
 0x190   : > { %1932 = vmatprep.mubr.msk.bf16.mxu1 %vm487_vm1, %v2146_v31  ;;  %v1365_v31 = vld [vmem:[%s2903_s8 + $0x20] sm:$0xff] }
 0x191   : > { %1257 = vperm.xlu1 %2143, %v1215_v13  }
 0x192   : > { %1424 = vperm.xlu0 %2142, %v1370_v30  }
 0x194   : > { %1973 = vmatmul.mubr.bf16.gmra.mxu0 %v2165_v10 }
 0x195   : > { %1262 = vperm.xlu1 %2143, %v1216_v15   ;;  %v2189_v53 = vpop.eup %2188  ;;  %v2155_v15 = vld [vmem:[%s2899_s4 + $0x8] sm:$0xff]   ;;  %2024 = vmatprep.mubr.bf16.mxu0 %v2168_v22 }
 0x197   : > { %1933 = vmatmul.mubr.msk.bf16.gmra.mxu1 %vm487_vm1, %v2147_v26  ;;  %v1372_v26 = vld [vmem:[%s2903_s8 + $0x58] sm:$0xff] }
 0x198   : > { %1936 = vmatprep.mubr.msk.bf16.mxu1 %vm487_vm1, %v2148_v32  ;;  %v1367_v32 = vld [vmem:[%s2903_s8 + $0x30] sm:$0xff]  ;;  %1434 = vperm.xlu0 %2142, %v1372_v26  }
 0x199   : > { %1247 = vperm.xlu1 %2143, %v1213_v17   ;;  %v2159_v17 = vld [vmem:[%s2899_s4 + $0x18] sm:$0xff]  }
 0x19d   : > { %1252 = vperm.xlu1 %2143, %v1214_v19   ;;  %v2163_v19 = vld [vmem:[%s2899_s4 + $0x28] sm:$0xff]  }
 0x19f   : > { %1937 = vmatmul.mubr.msk.bf16.gmra.mxu1 %vm487_vm1, %v2149_v33  ;;  %v1374_v33 = vld [vmem:[%s2903_s8 + $0x68] sm:$0xff] }
 0x1a0   : > { %1940 = vmatprep.mubr.msk.bf16.mxu1 %vm487_vm1, %v2150_v34  ;;  %1444 = vperm.xlu0 %2142, %v1374_v33  }
 0x1a1   : > { %1237 = vperm.xlu1 %2143, %v1211_v21   ;;  %v2167_v21 = vld [vmem:[%s2899_s4 + $0x38] sm:$0xff]  }
 0x1a4   : > { %1454 = vperm.xlu0 %2142, %v1376_v37  }
 0x1a5   : > { %1227 = vperm.xlu1 %2143, %v1209_v23   ;;  %v2169_v23 = vld [vmem:[#allocation7 + $0x30] sm:$0xff]  }
 0x1a7   : > { %1941 = vmatmul.mubr.msk.bf16.gmra.mxu1 %vm487_vm1, %v2151_v35  ;;  %v1369_v35 = vld [vmem:[%s2903_s8 + $0x40] sm:$0xff] }
 0x1a8   : > { %1992 = vmatprep.mubr.bf16.mxu1 %v2154_v63 }
 0x1a9   : > { %1379 = vperm.xlu1 %2143, %v1361_v27  }
 0x1ad   : > { %1389 = vperm.xlu1 %2143, %v1363_v29  }
 0x1b1   : > { %1399 = vperm.xlu1 %2143, %v1365_v31  }
 0x1b5   : > { %1409 = vperm.xlu1 %2143, %v1367_v32  }
 0x1b9   : > { %1419 = vperm.xlu1 %2143, %v1369_v35  }
 0x1bd   : > { %1429 = vperm.xlu1 %2143, %v1371_v39  }
 0x1c1   : > { %1439 = vperm.xlu1 %2143, %v1373_v42  }
 0x1c5   : > { %1449 = vperm.xlu1 %2143, %v1375_v45  }
 0x1d9   : > { %v1303_v29 = vpop.permute.xlu1 %1302 }
 0x1de   : > { %v1288_v26 = vpop.permute.xlu1 %1287 }
 0x1e2   : > { %v1293_v33 = vpop.permute.xlu1 %1292 }
 0x23c   : > { %v2779_v24 = vpop.f32.mrf.mxu0 }
 0x23e   : > { %v2781_v27 = vpop.f32.mrf.mxu0 }
 0x240   : > { %v2783_v28 = vpop.f32.mrf.mxu0 }
 0x242   : > { %v2785_v30 = vpop.f32.mrf.mxu0 }
 0x244   : > { %v2787_v31 = vpop.f32.mrf.mxu0 }
 0x246   : > { %v2789_v32 = vpop.f32.mrf.mxu0 }
 0x24f   : > { %v1930_v34 = vpop.f32.mrf.mxu1 }
 0x250   : > { %v841_v10 = vmul.f32 %v2189_v53, %v1930_v34  ;;  %v1967_v34 = vpop.f32.mrf.mxu0 }
 0x251   : > { %v775_v36 = vpop.f32.mrf.mxu1 }
 0x252   : > { %v839_v13 = vmul.f32 %v2189_v53, %v775_v36  ;;  %v2791_v35 = vpop.f32.mrf.mxu0  ;;  %v1278_v36 = vpop.permute.xlu1 %1277 }
 0x253   : > { %v1931_v38 = vpop.f32.mrf.mxu1 }
 0x254   : > { %v842_v8 = vmul.f32 %v2189_v53, %v1931_v38  ;;  %v1970_v39 = vpop.f32.mrf.mxu0 }
 0x255   : > { %v778_v40 = vpop.f32.mrf.mxu1 }
 0x256   : > { %v856_v11 = vpack.c.bf16 %v842_v8, %v841_v10  ;;  %v840_v12 = vmul.f32 %v2189_v53, %v778_v40 }
 0x257   : > { %v1934_v41 = vpop.f32.mrf.mxu1 }
 0x258   : > { %v845_v4 = vmul.f32 %v2189_v53, %v1934_v41  ;;  %v855_v14 = vpack.c.bf16 %v840_v12, %v839_v13  ;;  %v1283_v41 = vpop.permute.xlu1 %1282 }
 0x259   : > { %v791_v43 = vpop.f32.mrf.mxu1 }
 0x25a   : > { %v843_v7 = vmul.f32 %v2189_v53, %v791_v43  ;;  %v1033_v43 = vpop.f32.mrf.mxu0 }
 0x25b   : > { %v1935_v44 = vpop.f32.mrf.mxu1 }
 0x25c   : > { %v846_v2 = vmul.f32 %v2189_v53, %v1935_v44 }
 0x25d   : > { %v794_v46 = vpop.f32.mrf.mxu1 }
 0x25e   : > { %v858_v5 = vpack.c.bf16 %v846_v2, %v845_v4  ;;  %v844_v6 = vmul.f32 %v2189_v53, %v794_v46  ;;  %v1971_v46 = vpop.f32.mrf.mxu0 }
 0x25f   : > { %v1938_v47 = vpop.f32.mrf.mxu1 }
 0x260   : > { %v849_v25 = vmul.f32 %v2189_v53, %v1938_v47  ;;  %v857_v9 = vpack.c.bf16 %v844_v6, %v843_v7  ;;  %v1268_v47 = vpop.permute.xlu1 %1267 }
 0x261   : > { %v807_v48 = vpop.f32.mrf.mxu1 }
 0x262   : > { %v847_v1 = vmul.f32 %v2189_v53, %v807_v48 }
 0x263   : > { %v1939_v49 = vpop.f32.mrf.mxu1 }
 0x264   : > { %v850_v61 = vmul.f32 %v2189_v53, %v1939_v49 }
 0x265   : > { %v810_v50 = vpop.f32.mrf.mxu1 }
 0x266   : > { %v860_v63 = vpack.c.bf16 %v850_v61, %v849_v25  ;;  %v848_v0 = vmul.f32 %v2189_v53, %v810_v50  ;;  %v1036_v50 = vpop.f32.mrf.mxu0 }
 0x267   : > { %v1942_v51 = vpop.f32.mrf.mxu1 }
 0x268   : > { %v853_v55 = vmul.f32 %v2189_v53, %v1942_v51  ;;  %v859_v3 = vpack.c.bf16 %v848_v0, %v847_v1 }
 0x269   : > { %v823_v52 = vpop.f32.mrf.mxu1 }
 0x26a   : > { %v851_v58 = vmul.f32 %v2189_v53, %v823_v52  ;;  %v1273_v52 = vpop.permute.xlu1 %1272 }
 0x26b   : > { %v1943_v54 = vpop.f32.mrf.mxu1 }
 0x26c   : > { %v854_v56 = vmul.f32 %v2189_v53, %v1943_v54 }
 0x26d   : > { %v826_v57 = vpop.f32.mrf.mxu1 }
 0x26e   : > { %v862_v59 = vpack.c.bf16 %v854_v56, %v853_v55  ;;  %v852_v60 = vmul.f32 %v2189_v53, %v826_v57  ;;  %v1974_v53 = vpop.f32.mrf.mxu0 }
 0x270   : > { %v861_v62 = vpack.c.bf16 %v852_v60, %v851_v58  ;;  %1976 = vmatprep.subr.bf16.mxu1 %v862_v59  ;;  %v1049_v56 = vpop.f32.mrf.mxu0  ;;  %v1258_v58 = vpop.permute.xlu1 %1257 }
 0x271   : > { %1977 = vmatpush3.bf16.msra.mxu1 %v862_v59 }
 0x272   : > { %1978 = vmatprep.subr.bf16.mxu1 %v861_v62  ;;  %v1975_v61 = vpop.f32.mrf.mxu0 }
 0x274   : > { %v1263_v2 = vpop.permute.xlu1 %1262  ;;  %v1052_v6 = vpop.f32.mrf.mxu0 }
 0x275   : > { %1979 = vmatpush3.bf16.msra.mxu1 %v861_v62 }
 0x276   : > { %1980 = vmatprep.subr.bf16.mxu1 %v860_v63 }
 0x279   : > { %1981 = vmatpush3.bf16.msra.mxu1 %v860_v63  ;;  %v1298_v63 = vpop.permute.xlu0 %1297 }
 0x27a   : > { %1982 = vmatprep.subr.bf16.mxu1 %v859_v3 }
 0x27d   : > { %1983 = vmatpush3.bf16.msra.mxu1 %v859_v3 }
 0x27e   : > { %1984 = vmatprep.subr.bf16.mxu1 %v858_v5 }
 0x281   : > { %1985 = vmatpush3.bf16.msra.mxu1 %v858_v5 }
 0x282   : > { %1986 = vmatprep.subr.bf16.mxu1 %v857_v9 }
 0x285   : > { %1987 = vmatpush3.bf16.msra.mxu1 %v857_v9 }
 0x286   : > { %1988 = vmatprep.subr.bf16.mxu1 %v856_v11 }
 0x289   : > { %1989 = vmatpush3.bf16.msra.mxu1 %v856_v11 }
 0x28a   : > { %1990 = vmatprep.subr.bf16.mxu1 %v855_v14 }
 0x28d   : > { %1991 = vmatpush3.bf16.msra.mxu1 %v855_v14 }
 0x290   : > { %1993 = vmatmul.mubr.bf16.vlgmr.msra.gmra.mxu1 %v2155_v15 }
 0x291   : > { %1996 = vmatprep.mubr.bf16.mxu1 %v2158_v16 }
 0x298   : > { %1997 = vmatmul.mubr.bf16.gmra.mxu1 %v2159_v17 }
 0x299   : > { %2000 = vmatprep.mubr.bf16.mxu1 %v2162_v18 }
 0x2a0   : > { %2001 = vmatmul.mubr.bf16.gmra.mxu1 %v2163_v19 }
 0x2a1   : > { %2004 = vmatprep.mubr.bf16.mxu1 %v2166_v20 }
 0x2a8   : > { %2005 = vmatmul.mubr.bf16.gmra.mxu1 %v2167_v21  ;;  %v1248_v21 = vpop.permute.xlu1 %1247 }
 0x2a9   : > { %2036 = vmatprep.mubr.bf16.mxu1 %v2169_v23 }
 0x350   : > { %v2793_v37 = vpop.f32.mrf.mxu1 }
 0x352   : > { %v2795_v38 = vpop.f32.mrf.mxu1 }
 0x354   : > { %v2797_v40 = vpop.f32.mrf.mxu1 }
 0x356   : > { %v2799_v42 = vpop.f32.mrf.mxu1 }
 0x358   : > { %v1998_v44 = vpop.f32.mrf.mxu1 }
 0x35a   : > { %v2801_v45 = vpop.f32.mrf.mxu1 }
 0x35c   : > { %v1999_v48 = vpop.f32.mrf.mxu1 }
 0x35d   : > { %v1174_v22 = vadd.f32 %v1999_v48, %v1967_v34  ;;  %v1163_v48 = vadd.f32 %v2801_v45, %v2789_v32 }
 0x35e   : > { %v1165_v49 = vpop.f32.mrf.mxu1 }
 0x360   : > { %v2002_v51 = vpop.f32.mrf.mxu1 }
 0x361   : > { %v1187_v5 = vadd.f32 %v2002_v51, %v1970_v39  ;;  %v1253_v51 = vpop.permute.xlu1 %1252 }
 0x362   : > { %v1178_v54 = vpop.f32.mrf.mxu1 }
 0x363   : > { %v1315_v16 = vadd.f32 %v1278_v36, %v1187_v5  ;;  %v1179_v17 = vadd.f32 %v1178_v54, %v1033_v43  ;;  %v1166_v36 = vadd.f32 %v1165_v49, %v2791_v35  ;;  %v1243_v54 = vpop.permute.xlu0 %1242  ;;  %v1155_v35 = vadd.f32 %v2793_v37, %v2779_v24  ;;  %v2175_v5 = vld [vmem:[#allocation7 + $0x28] sm:$0xff]  }
 0x364   : > { %v2003_v55 = vpop.f32.mrf.mxu1 }
 0x365   : > { %v1190_v0 = vadd.f32 %v2003_v55, %v1971_v46  ;;  %v1309_v55 = vadd.f32 %v1248_v21, %v1163_v48  ;;  %v1238_v32 = vpop.permute.xlu1 %1237 }
 0x366   : > { %v1181_v57 = vpop.f32.mrf.mxu1 }
 0x367   : > { %v1316_v11 = vadd.f32 %v1283_v41, %v1190_v0  ;;  %v1182_v12 = vadd.f32 %v1181_v57, %v1036_v50  ;;  %v1313_v41 = vadd.f32 %v1268_v47, %v1179_v17  ;;  %v1310_v47 = vadd.f32 %v1253_v51, %v1166_v36  ;;  %v1233_v24 = vpop.permute.xlu0 %1232 }
 0x368   : > { %v2006_v59 = vpop.f32.mrf.mxu1 }
 0x369   : > { %v1203_v60 = vadd.f32 %v2006_v59, %v1974_v53  ;;  %v1332_v23 = vmax.f32 %v1316_v11, 0.0  ;;  %v1314_v46 = vadd.f32 %v1273_v52, %v1182_v12  ;;  %v1329_v52 = vmax.f32 %v1313_v41, 0.0 }
 0x36a   : > { %v1194_v62 = vpop.f32.mrf.mxu1  ;;  %v1325_v59 = vmax.f32 %v1309_v55, 0.0 }
 0x36b   : > { %v1195_v25 = vadd.f32 %v1194_v62, %v1049_v56  ;;  %v1319_v3 = vadd.f32 %v1298_v63, %v1203_v60  ;;  %v1330_v50 = vmax.f32 %v1314_v46, 0.0  ;;  %v1150_v56 = vadd.f32 %v2799_v42, %v2785_v30  ;;  %v1228_v62 = vpop.permute.xlu1 %1227 }
 0x36c   : > { %v2007_v1 = vpop.f32.mrf.mxu1 }
 0x36d   : > { %v1206_v4 = vadd.f32 %v2007_v1, %v1975_v61  ;;  %v1317_v8 = vadd.f32 %v1288_v26, %v1195_v25  ;;  %v1335_v13 = vmax.f32 %v1319_v3, 0.0  ;;  %v1331_v26 = vmax.f32 %v1315_v16, 0.0  ;;  %v2171_v1 = vld [vmem:[#allocation7 + $0x38] sm:$0xff]  }
 0x36e   : > { %v1197_v7 = vpop.f32.mrf.mxu1  ;;  %v1357_v53 = vpack.c.bf16 %v1330_v50, %v1329_v52  ;;  %v1306_v60 = vadd.f32 %v1233_v24, %v1150_v56  ;;  %v2173_v3 = vld [vmem:[#allocation7 + $0x18] sm:$0xff]  }
 0x36f   : > { %v1320_v9 = vadd.f32 %v1303_v29, %v1206_v4  ;;  %v1198_v10 = vadd.f32 %v1197_v7, %v1052_v6  ;;  %v1333_v18 = vmax.f32 %v1317_v8, 0.0  ;;  %v1171_v29 = vadd.f32 %v1998_v44, %v2787_v31  ;;  %v2174_v4 = vld [vmem:[#allocation7 + $0x20] sm:$0xff]   ;;  %v1380_v6 = vpop.permute.xlu1 %1379  ;;  %v1385_v7 = vpop.permute.xlu0 %1384 }
 0x370   : > { %v1358_v43 = vpack.c.bf16 %v1332_v23, %v1331_v26  ;;  %v1158_v31 = vadd.f32 %v2797_v40, %v2783_v28  ;;  %v1326_v28 = vmax.f32 %v1310_v47, 0.0  ;;  %v1307_v40 = vadd.f32 %v1238_v32, %v1155_v35 }
 0x371   : > { %v1336_v14 = vmax.f32 %v1320_v9, 0.0  ;;  %v1318_v15 = vadd.f32 %v1293_v33, %v1198_v10  ;;  %v1312_v33 = vadd.f32 %v1263_v2, %v1174_v22  ;;  %v1311_v34 = vadd.f32 %v1258_v58, %v1171_v29  ;;  %v2172_v2 = vld [vmem:[#allocation7 + $0x10] sm:$0xff]  }
 0x372   : > { %v1308_v45 = vadd.f32 %v1243_v54, %v1158_v31  ;;  %v1147_v58 = vadd.f32 %v2795_v38, %v2781_v27  ;;  %v1355_v61 = vpack.c.bf16 %v1326_v28, %v1325_v59  ;;  %v1323_v25 = vmax.f32 %v1307_v40, 0.0  ;;  %v2170_v38 = vld [vmem:[#allocation7 + $0x8] sm:$0xff]  }
 0x373   : > { %v1360_v19 = vpack.c.bf16 %v1336_v14, %v1335_v13  ;;  %v1334_v20 = vmax.f32 %v1318_v15, 0.0  ;;  %v1328_v44 = vmax.f32 %v1312_v33, 0.0  ;;  %v1327_v49 = vmax.f32 %v1311_v34, 0.0  ;;  %v1390_v8 = vpop.permute.xlu1 %1389  ;;  %v1395_v9 = vpop.permute.xlu0 %1394 }
 0x374   : > { %v1324_v37 = vmax.f32 %v1308_v45, 0.0  ;;  %v1305_v30 = vadd.f32 %v1228_v62, %v1147_v58  ;;  %v1322_v63 = vmax.f32 %v1306_v60, 0.0 }
 0x375   : > { %v1359_v39 = vpack.c.bf16 %v1334_v20, %v1333_v18  ;;  %2008 = vmatprep.subr.bf16.mxu0 %v1360_v19  ;;  %2040 = vmatprep.subr.bf16.mxu1 %v1360_v19  ;;  %v1356_v57 = vpack.c.bf16 %v1328_v44, %v1327_v49 }
 0x376   : > { %2009 = vmatpush3.bf16.msra.mxu0 %v1360_v19  ;;  %2048 = vmatpush3.bf16.msra.mxu1 %v1360_v19  ;;  %v1354_v42 = vpack.c.bf16 %v1324_v37, %v1323_v25  ;;  %v1321_v0 = vmax.f32 %v1305_v30, 0.0 }
 0x377   : > { %2010 = vmatprep.subr.bf16.mxu0 %v1359_v39  ;;  %2041 = vmatprep.subr.bf16.mxu1 %v1359_v39  ;;  %v1400_v10 = vpop.permute.xlu1 %1399  ;;  %v1405_v11 = vpop.permute.xlu0 %1404 }
 0x378   : > { %v1353_v27 = vpack.c.bf16 %v1322_v63, %v1321_v0 }
 0x37a   : > { %2011 = vmatpush3.bf16.msra.mxu0 %v1359_v39  ;;  %2049 = vmatpush3.bf16.msra.mxu1 %v1359_v39 }
 0x37b   : > { %2012 = vmatprep.subr.bf16.mxu0 %v1358_v43  ;;  %2042 = vmatprep.subr.bf16.mxu1 %v1358_v43  ;;  %v1410_v12 = vpop.permute.xlu1 %1409  ;;  %v1415_v13 = vpop.permute.xlu0 %1414 }
 0x37e   : > { %2013 = vmatpush3.bf16.msra.mxu0 %v1358_v43  ;;  %2050 = vmatpush3.bf16.msra.mxu1 %v1358_v43 }
 0x37f   : > { %2014 = vmatprep.subr.bf16.mxu0 %v1357_v53  ;;  %2043 = vmatprep.subr.bf16.mxu1 %v1357_v53  ;;  %v1420_v14 = vpop.permute.xlu1 %1419  ;;  %v2815_v15 = vpop.permute.xlu0 %1424 }
 0x382   : > { %2015 = vmatpush3.bf16.msra.mxu0 %v1357_v53  ;;  %2051 = vmatpush3.bf16.msra.mxu1 %v1357_v53 }
 0x383   : > { %2016 = vmatprep.subr.bf16.mxu0 %v1356_v57  ;;  %2044 = vmatprep.subr.bf16.mxu1 %v1356_v57  ;;  %v1430_v16 = vpop.permute.xlu1 %1429  ;;  %v2817_v17 = vpop.permute.xlu0 %1434 }
 0x386   : > { %2017 = vmatpush3.bf16.msra.mxu0 %v1356_v57  ;;  %2052 = vmatpush3.bf16.msra.mxu1 %v1356_v57 }
 0x387   : > { %2018 = vmatprep.subr.bf16.mxu0 %v1355_v61  ;;  %2045 = vmatprep.subr.bf16.mxu1 %v1355_v61  ;;  %v1440_v18 = vpop.permute.xlu1 %1439  ;;  %v1445_v19 = vpop.permute.xlu0 %1444 }
 0x38a   : > { %2019 = vmatpush3.bf16.msra.mxu0 %v1355_v61  ;;  %2053 = vmatpush3.bf16.msra.mxu1 %v1355_v61 }
 0x38b   : > { %2020 = vmatprep.subr.bf16.mxu0 %v1354_v42  ;;  %2046 = vmatprep.subr.bf16.mxu1 %v1354_v42  ;;  %v1450_v20 = vpop.permute.xlu1 %1449  ;;  %v1455_v26 = vpop.permute.xlu0 %1454 }
 0x38e   : > { %2021 = vmatpush3.bf16.msra.mxu0 %v1354_v42  ;;  %2054 = vmatpush3.bf16.msra.mxu1 %v1354_v42 }
 0x38f   : > { %2022 = vmatprep.subr.bf16.mxu0 %v1353_v27  ;;  %2047 = vmatprep.subr.bf16.mxu1 %v1353_v27 }
 0x392   : > { %2023 = vmatpush3.bf16.msra.mxu0 %v1353_v27  ;;  %2055 = vmatpush3.bf16.msra.mxu1 %v1353_v27 }
 0x395   : > { %2025 = vmatmul.mubr.bf16.vlgmr.msra.gmra.mxu0 %v2170_v38  ;;  %2037 = vmatmul.mubr.bf16.vlgmr.msra.gmra.mxu1 %v2171_v1 }
 0x396   : > { %2028 = vmatprep.mubr.bf16.mxu0 %v2172_v2 }
 0x39d   : > { %2029 = vmatmul.mubr.bf16.gmra.mxu0 %v2173_v3 }
 0x39e   : > { %2032 = vmatprep.mubr.bf16.mxu0 %v2174_v4 }
 0x3a5   : > { %2033 = vmatmul.mubr.bf16.gmra.mxu0 %v2175_v5 }
 0x455   : > { %v2026_v21 = vpop.f32.mrf.mxu0  ;;  %v2038_v22 = vpop.f32.mrf.mxu1 }
 0x456   : > { %v1548_v23 = vadd.f32 %v2026_v21, %v1390_v8  ;;  %v1596_v46 = vadd.f32 %v2038_v22, %v1450_v20 }
 0x457   : > { %v1539_v39 = vpop.f32.mrf.mxu0  ;;  %v1587_v29 = vpop.f32.mrf.mxu1 }
 0x458   : > { %v1604_v41 = vmax.f32 %v1548_v23, 0.0  ;;  %v1616_v33 = vmax.f32 %v1596_v46, 0.0  ;;  %v1540_v36 = vadd.f32 %v1539_v39, %v1380_v6  ;;  %v1588_v43 = vadd.f32 %v1587_v29, %v1440_v18 }
 0x459   : > { %v2027_v50 = vpop.f32.mrf.mxu0  ;;  %v2039_v51 = vpop.f32.mrf.mxu1 }
 0x45a   : > { %1620 = vst [vmem:[%s2820_s23 + $0x10] sm:$0xff] %v1604_v41  ;;  %1632 = vst [vmem:[%s2820_s23 + $0x70] sm:$0xff] %v1616_v33  ;;  %v1602_v34 = vmax.f32 %v1540_v36, 0.0  ;;  %v1614_v48 = vmax.f32 %v1588_v43, 0.0  ;;  %v1551_v52 = vadd.f32 %v2027_v50, %v1395_v9  ;;  %v1599_v31 = vadd.f32 %v2039_v51, %v1455_v26 }
 0x45b   : > { %v1542_v44 = vpop.f32.mrf.mxu0  ;;  %v1590_v47 = vpop.f32.mrf.mxu1 }
 0x45c   : > { %1618 = vst [vmem:[%s2820_s23] sm:$0xff] %v1602_v34  ;;  %1630 = vst [vmem:[%s2820_s23 + $0x60] sm:$0xff] %v1614_v48  ;;  %v1605_v53 = vmax.f32 %v1551_v52, 0.0  ;;  %v1617_v54 = vmax.f32 %v1599_v31, 0.0  ;;  %v1543_v35 = vadd.f32 %v1542_v44, %v1385_v7  ;;  %v1591_v49 = vadd.f32 %v1590_v47, %v1445_v19 }
 0x45d   : > { %v2030_v55 = vpop.f32.mrf.mxu0 }
 0x45e   : > { %1621 = vst [vmem:[%s2820_s23 + $0x18] sm:$0xff] %v1605_v53  ;;  %1633 = vst [vmem:[%s2820_s23 + $0x78] sm:$0xff] %v1617_v54  ;;  %v1603_v32 = vmax.f32 %v1543_v35, 0.0  ;;  %v1615_v45 = vmax.f32 %v1591_v49, 0.0  ;;  %v1564_v56 = vadd.f32 %v2030_v55, %v1410_v12 }
 0x45f   : > { %v1555_v57 = vpop.f32.mrf.mxu0 }
 0x460   : > { %1619 = vst [vmem:[%s2820_s23 + $0x8] sm:$0xff] %v1603_v32  ;;  %1631 = vst [vmem:[%s2820_s23 + $0x68] sm:$0xff] %v1615_v45  ;;  %v1608_v28 = vmax.f32 %v1564_v56, 0.0  ;;  %v1556_v40 = vadd.f32 %v1555_v57, %v1400_v10 }
 0x461   : > { %v2031_v58 = vpop.f32.mrf.mxu0 }
 0x462   : > { %1624 = vst [vmem:[%s2820_s23 + $0x30] sm:$0xff] %v1608_v28  ;;  %v1606_v59 = vmax.f32 %v1556_v40, 0.0  ;;  %v1567_v24 = vadd.f32 %v2031_v58, %v1415_v13 }
 0x463   : > { %v1558_v37 = vpop.f32.mrf.mxu0 }
 0x464   : > { %1622 = vst [vmem:[%s2820_s23 + $0x20] sm:$0xff] %v1606_v59  ;;  %v1609_v60 = vmax.f32 %v1567_v24, 0.0  ;;  %v1559_v61 = vadd.f32 %v1558_v37, %v1405_v11 }
 0x465   : > { %v2034_v62 = vpop.f32.mrf.mxu0 }
 0x466   : > { %1625 = vst [vmem:[%s2820_s23 + $0x38] sm:$0xff] %v1609_v60  ;;  %v1607_v25 = vmax.f32 %v1559_v61, 0.0  ;;  %v1580_v30 = vadd.f32 %v2034_v62, %v1430_v16 }
 0x467   : > { %v1571_v42 = vpop.f32.mrf.mxu0 }
 0x468   : > { %1623 = vst [vmem:[%s2820_s23 + $0x28] sm:$0xff] %v1607_v25  ;;  %v1612_v63 = vmax.f32 %v1580_v30, 0.0  ;;  %v1572_v0 = vadd.f32 %v1571_v42, %v1420_v14 }
 0x469   : > { %v2035_v27 = vpop.f32.mrf.mxu0 }
 0x46a   : > { %1628 = vst [vmem:[%s2820_s23 + $0x50] sm:$0xff] %v1612_v63  ;;  %v1610_v38 = vmax.f32 %v1572_v0, 0.0  ;;  %v1583_v1 = vadd.f32 %v2035_v27, %v2817_v17 }
 0x46b   : > { %v1574_v2 = vpop.f32.mrf.mxu0 }
 0x46c   : > { %1626 = vst [vmem:[%s2820_s23 + $0x40] sm:$0xff] %v1610_v38  ;;  %v1613_v3 = vmax.f32 %v1583_v1, 0.0  ;;  %v1575_v4 = vadd.f32 %v1574_v2, %v2815_v15 }
 0x46e   : > { %1629 = vst [vmem:[%s2820_s23 + $0x58] sm:$0xff] %v1613_v3  ;;  %v1611_v5 = vmax.f32 %v1575_v4, 0.0 }
 0x470   : > { %1627 = vst [vmem:[%s2820_s23 + $0x48] sm:$0xff] %v1611_v5 }
 0x471   : > { %2285 = shalt.err (!%p2282_p2)
}
 0x472   : > { %s2286_s19 = scalar_lea.hbm %s2843_s30, 2048  ;;  %s2290_s22 = scalar_lea.hbm %s2929_s27, 4096 }
 0x473   : > { %p2287_p6 = scmp.ne.s32.totalorder %s2843_s30, %s2286_s19  ;;  %p2291_p13 = scmp.lt.s32.totalorder %s2843_s30, %s2929_s27 }
 0x474   : > { %p2292_p11 = scmp.lt.s32.totalorder %s2290_s22, %s2286_s19 }
 0x475   : > { %p2288_p9 = pnand %p2287_p6, %p2506_p0 }
 0x476   : > { %p2293_p4 = por %p2292_p11, %p2291_p13 }
 0x477   : > { %p2289_p12 = pneg %p2288_p9 }
 0x479   : > { %p2294_p1 = pnand %p2293_p4, %p2289_p12 }
 0x47b   : > { %2297 = shalt.err (!%p2294_p1)
}
 0x47c   : > { %s2371_s21 = smov 128   ;;  %s2372_s18 = smov 8  }
 0x47d   : > { %2065 = dma.vmem_to_hbm [thread:$0]  (%p2506_p0), %s2845_s26, 2048, %s2843_s30, %s1635_s12, %s2371_s21, %s2371_s21, %s2372_s18  }
 0x47e PF: > { %s2930_s16 = sld [smem:[#allocation13_spill]]  ;;  %p2933_p10 = scmp.ge.s32.totalorder %s2360_s14, 2 }
 0x47f   : > { %s2931_s13 = sld [smem:[#allocation15_spill]] }
 0x484   : > { %s1664_s24 = sand.u32 1, %s2930_s16  }
 0x485   : > { %p2932_p8 = scmp.ne.s32.totalorder %s2931_s13, 0  ;;  %s1665_s9 = scalar_lea.sflag [#allocation4], %s1664_s24 }
 0x487   : > { %p2079_p5 = pnand %p2933_p10, %p2932_p8 }
 0x489   : > { %p2080_p7 = pneg %p2079_p5 }
 0x48b   : > { %2335 = dma.done.wait (%p2080_p7), %s1665_s9, 2048  }
 0x48c   : > { %2337 = vsyncadd (%p2080_p7), %s1665_s9, 4294965248  ;;  %s28_s14 = sadd.s32 1, %s2360_s14   ;;  %s2934_s12 = sld [smem:[#allocation14_spill]] }
 0x48d   : > { %p25_p3 = scmp.ge.s32.totalorder %s28_s14, 4   ;;  %s2935_s13 = sld [smem:[#allocation16_spill]] }
 0x48e   : > { %s2936_s30 = smov %s2344_s10  ;;  %s2937_s10 = smov %s2348_s11 }
 0x48f   : > { %s2938_s11 = smov %s2515_s25  ;;  %27 = sbr.rel (!%p25_p3) target bundleno = 11 (0xb), region = 124 }
 0x494   :  { %1670 = vsyncpa [#allocation3], 1 }
 0x495   :  { %1672 = vsyncpa [#allocation3 + $0x1], 1 }
 0x496   :  { %1673 = vsyncpa [#allocation6], 1 }
 0x497   :  { %1675 = vsyncpa [#allocation6 + $0x1], 1 }
 0x498   :  { %1676 = vsyncpa [#allocation4], 1 }
 0x499   :  { %1678 = vsyncpa [#allocation4 + $0x1], 1 }

</bundles_post_ra>
